<compile_context>
chip_gen: v5e
topology: v5e:2x2
jax: 0.10.0
libtpu: 0.0.40
codegen_flags: <defaults>
</compile_context>

<pallas_src>
import functools
import numpy as np
import jax
import jax.numpy as jnp
from jax.experimental import pallas as pl
from jax.experimental.pallas import tpu as pltpu


# contract the last dim of both operands (A @ B^T)
_NT = (((1,), (1,)), ((), ()))


# ------------------------------ kernel helpers ------------------------------

def _layernorm(x, g, b, eps):
    mu = jnp.mean(x, axis=-1, keepdims=True)
    xc = x - mu
    var = jnp.mean(xc * xc, axis=-1, keepdims=True)
    return xc * jax.lax.rsqrt(var + eps) * g + b


def _mha(xq, xkv, mask_rows, w_in, b_in, w_out, b_out, *, nb, num_heads, self_attn):
    """nn.MultiheadAttention math for nb batch elements (flattened rows).

    xq:  (nb*Lq, E)  query activations
    xkv: (nb*Skv, E) key/value activations
    mask_rows: (nb*H*Lq, S_mask) additive mask, pre-tiled once per kernel.
    w_in: (E, 3E) = in_proj_weight.T (q columns pre-scaled by 1/sqrt(D))
    b_in: (1, 3E), w_out: (E, E) = out_proj_weight.T, b_out: (1, E)
    Returns (attn_out (nb*Lq, E), [head-averaged weights (Lq, Skv)] * nb).
    """
    E = xq.shape[-1]
    Lq = xq.shape[0] // nb
    Skv = xkv.shape[0] // nb
    H = num_heads
    D = E // H

    # ---- fused, lane-wide projection matmuls; bias added once ----
    if self_attn:
        qkv = jnp.dot(xq, w_in, preferred_element_type=jnp.float32) + b_in
        q, k, v = qkv[:, :E], qkv[:, E:2 * E], qkv[:, 2 * E:]
    else:
        q = jnp.dot(xq, w_in[:, :E], preferred_element_type=jnp.float32) + b_in[:, :E]
        kv = jnp.dot(xkv, w_in[:, E:], preferred_element_type=jnp.float32) + b_in[:, E:]
        k, v = kv[:, :E], kv[:, E:]

    # ---- per-(batch, head) score tiles, gathered into one slab so the
    #      mask add + softmax run once on a (nb*H*Lq, Skv) block ----
    pieces = []
    for n in range(nb):
        qn = q[n * Lq:(n + 1) * Lq]
        kn = k[n * Skv:(n + 1) * Skv]
        for h in range(H):
            pieces.append(jax.lax.dot_general(qn[:, h * D:(h + 1) * D],
                                              kn[:, h * D:(h + 1) * D],
                                              _NT, preferred_element_type=jnp.float32))
    s = jnp.concatenate(pieces, axis=0) + mask_rows
    s = s - jnp.max(s, axis=-1, keepdims=True)
    e = jnp.exp(s)
    p = e / jnp.sum(e, axis=-1, keepdims=True)        # exact divide (matches PyTorch)

    # ---- per-(batch, head) attention @ V, packed back lane-dense so the
    #      out-projection is a single wide matmul ----
    ctx_rows, attw = [], []
    inv_h = 1.0 / H
    for n in range(nb):
        vn = v[n * Skv:(n + 1) * Skv]
        cols, wacc = [], None
        for h in range(H):
            ph = p[(n * H + h) * Lq:(n * H + h + 1) * Lq]          # (Lq, Skv)
            wacc = ph if wacc is None else wacc + ph
            cols.append(jnp.dot(ph, vn[:, h * D:(h + 1) * D],
                                preferred_element_type=jnp.float32))
        ctx_rows.append(jnp.concatenate(cols, axis=-1))            # (Lq, E)
        attw.append(wacc * inv_h)                                  # head-avg weights
    ctx = jnp.concatenate(ctx_rows, axis=0)                        # (nb*Lq, E)

    out = jnp.dot(ctx, w_out, preferred_element_type=jnp.float32) + b_out
    return out, attw


# --------------------------- fused decoder stack ----------------------------

def _decoder_stack_kernel(x_ref, enc_ref, mask_ref,
                          win1_ref, bin1_ref, wo1_ref, bo1_ref,
                          win2_ref, bin2_ref, wo2_ref, bo2_ref,
                          lng_ref, lnb_ref,
                          w1_ref, b1_ref, w2_ref, b2_ref,
                          out_ref, attw_ref,
                          *, num_layers, num_heads, eps):
    nb, L, E = x_ref.shape
    S = enc_ref.shape[1]
    H = num_heads

    x = x_ref[...].reshape(nb * L, E)          # (nb*L, E) activations
    enc = enc_ref[...].reshape(nb * S, E)      # (nb*S, E) encoder activations
    # Shared additive mask, tiled once for all (batch, head) score tiles.
    mask_rows = jnp.tile(mask_ref[...], (nb * H, 1))

    attw_pieces = [[] for _ in range(nb)]      # per batch element, layer order
    for li in range(num_layers):
        # ---- masked self-attention + residual + LayerNorm1 ----
        att, w_self = _mha(x, x, mask_rows,
                           win1_ref[li], bin1_ref[li], wo1_ref[li], bo1_ref[li],
                           nb=nb, num_heads=H, self_attn=True)
        x = _layernorm(x + att, lng_ref[3 * li], lnb_ref[3 * li], eps)

        # ---- decoder-encoder attention + residual + LayerNorm2 ----
        att, w_cross = _mha(x, enc, mask_rows,
                            win2_ref[li], bin2_ref[li], wo2_ref[li], bo2_ref[li],
                            nb=nb, num_heads=H, self_attn=False)
        x = _layernorm(x + att, lng_ref[3 * li + 1], lnb_ref[3 * li + 1], eps)

        # ---- FFN (Linear -> ReLU -> Linear) + residual + LayerNorm3 ----
        h = jnp.maximum(
            jnp.dot(x, w1_ref[li], preferred_element_type=jnp.float32) + b1_ref[li],
            0.0)
        fc = jnp.dot(h, w2_ref[li], preferred_element_type=jnp.float32) + b2_ref[li]
        # TODO(synk): nn.Dropout (input + fc_output) is stochastic; eval-mode identity.
        x = _layernorm(x + fc, lng_ref[3 * li + 2], lnb_ref[3 * li + 2], eps)

        for n in range(nb):
            attw_pieces[n].append(w_self[n])       # (L, L)
            attw_pieces[n].append(w_cross[n])      # (L, S)

    # lane-dense main output slab: (L, nb*E), column block n holds batch elem n
    out_ref[0] = jnp.concatenate([x[n * L:(n + 1) * L] for n in range(nb)], axis=-1)
    # lane-dense attention-weights slab: per n: [L0 self | L0 cross | L1 self | ...]
    attw_ref[0] = jnp.concatenate([w for per_n in attw_pieces for w in per_n], axis=-1)


def decoder_stack(x_nle, enc_nle, mask, stack, num_heads, eps, n_split):
    """All decoder layers in one pallas_call.  x_nle/enc_nle are (N, L, E)
    with the batch axis N leading; grid=(n_split,) over the batch axis."""
    N, L, E = x_nle.shape
    S = enc_nle.shape[1]
    NL = stack['win1'].shape[0]
    nb = N // n_split
    W = NL * (L + S)                       # attn-weight slab width per batch element

    def batched(shape):
        nd = len(shape)
        return pl.BlockSpec(shape, lambda i: (i,) + (0,) * (nd - 1))

    def shared(arr):
        nd = arr.ndim
        return pl.BlockSpec(arr.shape, lambda i: (0,) * nd)

    kern = functools.partial(_decoder_stack_kernel,
                             num_layers=NL, num_heads=num_heads, eps=eps)

    out_packed, attw_packed = pl.pallas_call(
        kern,
        out_shape=(jax.ShapeDtypeStruct((n_split, L, nb * E), jnp.float32),
                   jax.ShapeDtypeStruct((n_split, L, nb * W), jnp.float32)),
        grid=(n_split,),
        in_specs=[
            batched((nb, L, E)),                       # x
            batched((nb, S, E)),                       # encoder output
            shared(mask),                              # additive attention mask
            shared(stack['win1']), shared(stack['bin1']),
            shared(stack['wo1']), shared(stack['bo1']),
            shared(stack['win2']), shared(stack['bin2']),
            shared(stack['wo2']), shared(stack['bo2']),
            shared(stack['ln_g']), shared(stack['ln_b']),
            shared(stack['ffn_w1']), shared(stack['ffn_b1']),
            shared(stack['ffn_w2']), shared(stack['ffn_b2']),
        ],
        out_specs=(pl.BlockSpec((1, L, nb * E), lambda i: (i, 0, 0)),
                   pl.BlockSpec((1, L, nb * W), lambda i: (i, 0, 0))),
        compiler_params=pltpu.CompilerParams(
            dimension_semantics=("parallel",)),        # 2-way split for v7x megacore
    )(x_nle, enc_nle, mask,
      stack['win1'], stack['bin1'], stack['wo1'], stack['bo1'],
      stack['win2'], stack['bin2'], stack['wo2'], stack['bo2'],
      stack['ln_g'], stack['ln_b'],
      stack['ffn_w1'], stack['ffn_b1'], stack['ffn_w2'], stack['ffn_b2'])
    return out_packed, attw_packed


# --------------------------- parameter preparation --------------------------

def convert_mha_params(in_proj_weight, in_proj_bias, out_proj_weight, out_proj_bias,
                       num_heads):
    """PyTorch nn.MultiheadAttention params -> kernel layout (done once at init)."""
    E = out_proj_weight.shape[0]
    D = E // num_heads
    scale = 1.0 / float(np.sqrt(D))
    w_in = jnp.asarray(in_proj_weight).T                    # (E, 3E), cols [q|k|v]
    b_in = jnp.asarray(in_proj_bias).reshape(1, 3 * E)
    # Fold PyTorch's q /= sqrt(D) into the q projection (free: outside the fwd jit).
    w_in = w_in.at[:, :E].multiply(scale)
    b_in = b_in.at[:, :E].multiply(scale)
    w_out = jnp.asarray(out_proj_weight).T                  # (E, E)
    b_out = jnp.asarray(out_proj_bias).reshape(1, E)
    return w_in, b_in, w_out, b_out


def positional_encoding(max_positions, encoding_size):
    pos = np.expand_dims(np.arange(max_positions), 1).astype(np.float64)
    dims = np.expand_dims(np.arange(encoding_size), 0).astype(np.float64)
    angles = pos / np.power(10000.0, (2.0 * dims) / encoding_size)
    angles[:, 0::2] = np.sin(angles[:, 0::2])
    angles[:, 1::2] = np.cos(angles[:, 1::2])
    return jnp.asarray(np.expand_dims(angles, 0), dtype=jnp.float32)


def init_params(key, num_layers, embed_dim, num_heads, fc_dim, vocab, max_pos):
    hid = fc_dim * 4
    keys = jax.random.split(key, 1 + num_layers)

    win1, bin1, wo1, bo1 = [], [], [], []
    win2, bin2, wo2, bo2 = [], [], [], []
    w1l, b1l, w2l, b2l = [], [], [], []

    def mha(k):
        k1, k2 = jax.random.split(k)
        in_w = jax.random.normal(k1, (3 * embed_dim, embed_dim), jnp.float32) * 0.05
        in_b = jnp.zeros((3 * embed_dim,), jnp.float32)
        out_w = jax.random.normal(k2, (embed_dim, embed_dim), jnp.float32) * 0.05
        out_b = jnp.zeros((embed_dim,), jnp.float32)
        return convert_mha_params(in_w, in_b, out_w, out_b, num_heads)

    for li in range(num_layers):
        lk = jax.random.split(keys[1 + li], 4)
        wi, bi, wo, bo = mha(lk[0])
        win1.append(wi); bin1.append(bi); wo1.append(wo); bo1.append(bo)
        wi, bi, wo, bo = mha(lk[1])
        win2.append(wi); bin2.append(bi); wo2.append(wo); bo2.append(bo)
        fw1 = jax.random.normal(lk[2], (hid, embed_dim), jnp.float32) * 0.05
        fw2 = jax.random.normal(lk[3], (embed_dim, hid), jnp.float32) * 0.05
        w1l.append(fw1.T); b1l.append(jnp.zeros((1, hid), jnp.float32))
        w2l.append(fw2.T); b2l.append(jnp.zeros((1, embed_dim), jnp.float32))

    stack = {
        'win1': jnp.stack(win1), 'bin1': jnp.stack(bin1),
        'wo1': jnp.stack(wo1), 'bo1': jnp.stack(bo1),
        'win2': jnp.stack(win2), 'bin2': jnp.stack(bin2),
        'wo2': jnp.stack(wo2), 'bo2': jnp.stack(bo2),
        'ffn_w1': jnp.stack(w1l), 'ffn_b1': jnp.stack(b1l),
        'ffn_w2': jnp.stack(w2l), 'ffn_b2': jnp.stack(b2l),
        # LayerNorm params, flattened to (num_layers*3, 1, E): [ln1, ln2, ln3] per layer
        'ln_g': jnp.ones((num_layers * 3, 1, embed_dim), jnp.float32),
        'ln_b': jnp.zeros((num_layers * 3, 1, embed_dim), jnp.float32),
    }
    return {'embedding': jax.random.normal(keys[0], (vocab, embed_dim),
                                           jnp.float32) * 0.1,
            'pos_encoding': positional_encoding(max_pos, embed_dim),
            'stack': stack}


# -------------------------------- forward pass ------------------------------

def decoder_forward(tokens, mask, encoder_output, params, num_heads,
                    eps=1e-6, n_split=2):
    # eps=1e-6 matches the module's explicit epsilon=1e-06 (not the nn.LayerNorm default).
    attention_values = {}
    seq_length = tokens.shape[1]
    emb = jnp.take(params['embedding'], tokens, axis=0)               # (B, S, E)
    E = emb.shape[-1]
    x = emb * jnp.float32(np.sqrt(E)) + params['pos_encoding'][:, :seq_length, :]
    # TODO(synk): input nn.Dropout is stochastic; eval-mode identity here.

    # nn.MultiheadAttention (batch_first=False): dim0 = attended length L, dim1 = batch N.
    L, N = x.shape[0], x.shape[1]
    S = encoder_output.shape[0]
    if N % n_split != 0:
        n_split = 1
    nb = N // n_split

    x_nle = jnp.transpose(x, (1, 0, 2))                               # (N, L, E)
    enc_nle = jnp.transpose(encoder_output, (1, 0, 2))                # (N, S, E)

    stack = params['stack']
    NL = stack['win1'].shape[0]
    out_packed, attw_packed = decoder_stack(x_nle, enc_nle, mask, stack,
                                            num_heads, eps, n_split)

    # Unpack lane-dense slabs (layout plumbing only; stays in plain XLA).
    out = jnp.transpose(out_packed.reshape(n_split, L, nb, E),
                        (1, 0, 2, 3)).reshape(L, N, E)                # == (B, S, E)

    W = NL * (L + S)
    attw = jnp.transpose(attw_packed.reshape(n_split, L, nb, W),
                         (0, 2, 1, 3)).reshape(N, L, W)
    for li in range(NL):
        base = li * (L + S)
        attention_values[f'Decoder Layer {li + 1} Self Attention Values'] = \
            attw[:, :, base:base + L]                                 # (N, L, L)
        attention_values[f'Decoder Layer {li + 1} Dec-Enc Attention values'] = \
            attw[:, :, base + L:base + L + S]                         # (N, L, S)
    return out, attention_values


# ------------------------------------ main ----------------------------------

if __name__ == "__main__":
    B, S, E, H, FC = 8, 4, 32, 4, 16          # B = attended axis, S = batch axis
    VOCAB, MAX_POS, NUM_LAYERS = 50, 16, 2

    key = jax.random.PRNGKey(0)
    pkey, tkey, ekey = jax.random.split(key, 3)

    params = init_params(pkey, NUM_LAYERS, E, H, FC, VOCAB, MAX_POS)
    tokens = jax.random.randint(tkey, (B, S), 0, VOCAB, dtype=jnp.int32)
    encoder_output = jax.random.normal(ekey, (B, S, E), jnp.float32)
    # additive float attn_mask of shape (L, S_src) = (B, B), causal over dim0
    mask = jnp.where(jnp.tril(jnp.ones((B, B), jnp.bool_)), 0.0, -1e9
                     ).astype(jnp.float32)

    fwd = jax.jit(functools.partial(decoder_forward, num_heads=H))
    out, attn_vals = fwd(tokens, mask, encoder_output, params)
    jax.block_until_ready(out)
    jax.block_until_ready(attn_vals)

    assert out.shape == (B, S, E)
    assert bool(jnp.all(jnp.isfinite(out)))
    for i in range(NUM_LAYERS):
        assert attn_vals[f'Decoder Layer {i + 1} Self Attention Values'].shape == (S, B, B)
        assert attn_vals[f'Decoder Layer {i + 1} Dec-Enc Attention values'].shape == (S, B, B)
    print("KERNEL_OK")
</pallas_src>

<mosaic_0001>
module attributes {stable_mosaic.version = 11 : i64} {
  func.func @_decoder_stack_kernel(%arg0: i32, %arg1: memref<2x8x32xf32, #tpu.memory_space<vmem>>, %arg2: memref<2x8x32xf32, #tpu.memory_space<vmem>>, %arg3: memref<8x8xf32, #tpu.memory_space<vmem>>, %arg4: memref<2x32x96xf32, #tpu.memory_space<vmem>>, %arg5: memref<2x1x96xf32, #tpu.memory_space<vmem>>, %arg6: memref<2x32x32xf32, #tpu.memory_space<vmem>>, %arg7: memref<2x1x32xf32, #tpu.memory_space<vmem>>, %arg8: memref<2x32x96xf32, #tpu.memory_space<vmem>>, %arg9: memref<2x1x96xf32, #tpu.memory_space<vmem>>, %arg10: memref<2x32x32xf32, #tpu.memory_space<vmem>>, %arg11: memref<2x1x32xf32, #tpu.memory_space<vmem>>, %arg12: memref<6x1x32xf32, #tpu.memory_space<vmem>>, %arg13: memref<6x1x32xf32, #tpu.memory_space<vmem>>, %arg14: memref<2x32x64xf32, #tpu.memory_space<vmem>>, %arg15: memref<2x1x64xf32, #tpu.memory_space<vmem>>, %arg16: memref<2x64x32xf32, #tpu.memory_space<vmem>>, %arg17: memref<2x1x32xf32, #tpu.memory_space<vmem>>, %arg18: memref<1x8x64xf32, #tpu.memory_space<vmem>>, %arg19: memref<1x8x64xf32, #tpu.memory_space<vmem>>) attributes {dimension_semantics = [#tpu.dimension_semantics<parallel>], iteration_bounds = array<i64: 2>, scalar_prefetch = 0 : i64, scratch_operands = 0 : i64, tpu.core_type = #tpu.core_type<tc>, window_params = [{transform_indices = @transform_0, window_bounds = array<i64: 2, 8, 32>}, {transform_indices = @transform_1, window_bounds = array<i64: 2, 8, 32>}, {pipeline_mode = #tpu.pipeline_mode<synchronous>, transform_indices = @transform_2, window_bounds = array<i64: 8, 8>}, {pipeline_mode = #tpu.pipeline_mode<synchronous>, transform_indices = @transform_3, window_bounds = array<i64: 2, 32, 96>}, {pipeline_mode = #tpu.pipeline_mode<synchronous>, transform_indices = @transform_4, window_bounds = array<i64: 2, 1, 96>}, {pipeline_mode = #tpu.pipeline_mode<synchronous>, transform_indices = @transform_5, window_bounds = array<i64: 2, 32, 32>}, {pipeline_mode = #tpu.pipeline_mode<synchronous>, transform_indices = @transform_6, window_bounds = array<i64: 2, 1, 32>}, {pipeline_mode = #tpu.pipeline_mode<synchronous>, transform_indices = @transform_7, window_bounds = array<i64: 2, 32, 96>}, {pipeline_mode = #tpu.pipeline_mode<synchronous>, transform_indices = @transform_8, window_bounds = array<i64: 2, 1, 96>}, {pipeline_mode = #tpu.pipeline_mode<synchronous>, transform_indices = @transform_9, window_bounds = array<i64: 2, 32, 32>}, {pipeline_mode = #tpu.pipeline_mode<synchronous>, transform_indices = @transform_10, window_bounds = array<i64: 2, 1, 32>}, {pipeline_mode = #tpu.pipeline_mode<synchronous>, transform_indices = @transform_11, window_bounds = array<i64: 6, 1, 32>}, {pipeline_mode = #tpu.pipeline_mode<synchronous>, transform_indices = @transform_12, window_bounds = array<i64: 6, 1, 32>}, {pipeline_mode = #tpu.pipeline_mode<synchronous>, transform_indices = @transform_13, window_bounds = array<i64: 2, 32, 64>}, {pipeline_mode = #tpu.pipeline_mode<synchronous>, transform_indices = @transform_14, window_bounds = array<i64: 2, 1, 64>}, {pipeline_mode = #tpu.pipeline_mode<synchronous>, transform_indices = @transform_15, window_bounds = array<i64: 2, 64, 32>}, {pipeline_mode = #tpu.pipeline_mode<synchronous>, transform_indices = @transform_16, window_bounds = array<i64: 2, 1, 32>}, {transform_indices = @transform_17, window_bounds = array<i64: 1, 8, 64>}, {transform_indices = @transform_18, window_bounds = array<i64: 1, 8, 64>}]} {
    %c0 = arith.constant 0 : index
    %c0_0 = arith.constant 0 : index
    %c0_1 = arith.constant 0 : index
    %0 = vector.load %arg1[%c0, %c0_0, %c0_1] : memref<2x8x32xf32, #tpu.memory_space<vmem>>, vector<2x8x32xf32>
    %1 = vector.shape_cast %0 : vector<2x8x32xf32> to vector<16x32xf32>
    %c0_2 = arith.constant 0 : index
    %c0_3 = arith.constant 0 : index
    %c0_4 = arith.constant 0 : index
    %2 = vector.load %arg2[%c0_2, %c0_3, %c0_4] : memref<2x8x32xf32, #tpu.memory_space<vmem>>, vector<2x8x32xf32>
    %3 = vector.shape_cast %2 : vector<2x8x32xf32> to vector<16x32xf32>
    %c0_5 = arith.constant 0 : index
    %c0_6 = arith.constant 0 : index
    %4 = vector.load %arg3[%c0_5, %c0_6] : memref<8x8xf32, #tpu.memory_space<vmem>>, vector<8x8xf32>
    %5 = tpu.concatenate %4, %4, %4, %4, %4, %4, %4, %4 in 0 : vector<8x8xf32>, vector<8x8xf32>, vector<8x8xf32>, vector<8x8xf32>, vector<8x8xf32>, vector<8x8xf32>, vector<8x8xf32>, vector<8x8xf32> -> vector<64x8xf32>
    %c0_7 = arith.constant 0 : index
    %c0_8 = arith.constant 0 : index
    %c0_9 = arith.constant 0 : index
    %6 = vector.load %arg4[%c0_7, %c0_8, %c0_9] : memref<2x32x96xf32, #tpu.memory_space<vmem>>, vector<1x32x96xf32>
    %7 = vector.shape_cast %6 : vector<1x32x96xf32> to vector<32x96xf32>
    %c0_10 = arith.constant 0 : index
    %c0_11 = arith.constant 0 : index
    %c0_12 = arith.constant 0 : index
    %8 = vector.load %arg5[%c0_10, %c0_11, %c0_12] : memref<2x1x96xf32, #tpu.memory_space<vmem>>, vector<1x1x96xf32>
    %9 = vector.shape_cast %8 : vector<1x1x96xf32> to vector<1x96xf32>
    %c0_13 = arith.constant 0 : index
    %c0_14 = arith.constant 0 : index
    %c0_15 = arith.constant 0 : index
    %10 = vector.load %arg6[%c0_13, %c0_14, %c0_15] : memref<2x32x32xf32, #tpu.memory_space<vmem>>, vector<1x32x32xf32>
    %11 = vector.shape_cast %10 : vector<1x32x32xf32> to vector<32x32xf32>
    %c0_16 = arith.constant 0 : index
    %c0_17 = arith.constant 0 : index
    %c0_18 = arith.constant 0 : index
    %12 = vector.load %arg7[%c0_16, %c0_17, %c0_18] : memref<2x1x32xf32, #tpu.memory_space<vmem>>, vector<1x1x32xf32>
    %13 = vector.shape_cast %12 : vector<1x1x32xf32> to vector<1x32xf32>
    %cst = arith.constant dense<0.000000e+00> : vector<16x96xf32>
    %14 = tpu.matmul %1, %7, %cst {dimension_numbers = #tpu.dot_dimension_numbers<[1], [0], [0], [1], [0, 0, 1, 1], [], []>} : vector<16x32xf32>, vector<32x96xf32>, vector<16x96xf32> -> vector<16x96xf32>
    %15 = vector.broadcast %9 : vector<1x96xf32> to vector<16x96xf32>
    %16 = arith.addf %14, %15 : vector<16x96xf32>
    %17 = vector.extract_strided_slice %16 {offsets = [0, 0], sizes = [16, 32], strides = [1, 1]} : vector<16x96xf32> to vector<16x32xf32>
    %18 = vector.extract_strided_slice %16 {offsets = [0, 32], sizes = [16, 32], strides = [1, 1]} : vector<16x96xf32> to vector<16x32xf32>
    %19 = vector.extract_strided_slice %16 {offsets = [0, 64], sizes = [16, 32], strides = [1, 1]} : vector<16x96xf32> to vector<16x32xf32>
    %20 = vector.extract_strided_slice %17 {offsets = [0, 0], sizes = [8, 32], strides = [1, 1]} : vector<16x32xf32> to vector<8x32xf32>
    %21 = vector.extract_strided_slice %18 {offsets = [0, 0], sizes = [8, 32], strides = [1, 1]} : vector<16x32xf32> to vector<8x32xf32>
    %22 = vector.extract_strided_slice %20 {offsets = [0, 0], sizes = [8, 8], strides = [1, 1]} : vector<8x32xf32> to vector<8x8xf32>
    %23 = vector.extract_strided_slice %21 {offsets = [0, 0], sizes = [8, 8], strides = [1, 1]} : vector<8x32xf32> to vector<8x8xf32>
    %cst_19 = arith.constant dense<0.000000e+00> : vector<8x8xf32>
    %24 = tpu.matmul %22, %23, %cst_19 {dimension_numbers = #tpu.dot_dimension_numbers<[1], [1], [0], [0], [0, 0, 1, 0], [], []>} : vector<8x8xf32>, vector<8x8xf32>, vector<8x8xf32> -> vector<8x8xf32>
    %25 = vector.extract_strided_slice %20 {offsets = [0, 8], sizes = [8, 8], strides = [1, 1]} : vector<8x32xf32> to vector<8x8xf32>
    %26 = vector.extract_strided_slice %21 {offsets = [0, 8], sizes = [8, 8], strides = [1, 1]} : vector<8x32xf32> to vector<8x8xf32>
    %cst_20 = arith.constant dense<0.000000e+00> : vector<8x8xf32>
    %27 = tpu.matmul %25, %26, %cst_20 {dimension_numbers = #tpu.dot_dimension_numbers<[1], [1], [0], [0], [0, 0, 1, 0], [], []>} : vector<8x8xf32>, vector<8x8xf32>, vector<8x8xf32> -> vector<8x8xf32>
    %28 = vector.extract_strided_slice %20 {offsets = [0, 16], sizes = [8, 8], strides = [1, 1]} : vector<8x32xf32> to vector<8x8xf32>
    %29 = vector.extract_strided_slice %21 {offsets = [0, 16], sizes = [8, 8], strides = [1, 1]} : vector<8x32xf32> to vector<8x8xf32>
    %cst_21 = arith.constant dense<0.000000e+00> : vector<8x8xf32>
    %30 = tpu.matmul %28, %29, %cst_21 {dimension_numbers = #tpu.dot_dimension_numbers<[1], [1], [0], [0], [0, 0, 1, 0], [], []>} : vector<8x8xf32>, vector<8x8xf32>, vector<8x8xf32> -> vector<8x8xf32>
    %31 = vector.extract_strided_slice %20 {offsets = [0, 24], sizes = [8, 8], strides = [1, 1]} : vector<8x32xf32> to vector<8x8xf32>
    %32 = vector.extract_strided_slice %21 {offsets = [0, 24], sizes = [8, 8], strides = [1, 1]} : vector<8x32xf32> to vector<8x8xf32>
    %cst_22 = arith.constant dense<0.000000e+00> : vector<8x8xf32>
    %33 = tpu.matmul %31, %32, %cst_22 {dimension_numbers = #tpu.dot_dimension_numbers<[1], [1], [0], [0], [0, 0, 1, 0], [], []>} : vector<8x8xf32>, vector<8x8xf32>, vector<8x8xf32> -> vector<8x8xf32>
    %34 = vector.extract_strided_slice %17 {offsets = [8, 0], sizes = [8, 32], strides = [1, 1]} : vector<16x32xf32> to vector<8x32xf32>
    %35 = vector.extract_strided_slice %18 {offsets = [8, 0], sizes = [8, 32], strides = [1, 1]} : vector<16x32xf32> to vector<8x32xf32>
    %36 = vector.extract_strided_slice %34 {offsets = [0, 0], sizes = [8, 8], strides = [1, 1]} : vector<8x32xf32> to vector<8x8xf32>
    %37 = vector.extract_strided_slice %35 {offsets = [0, 0], sizes = [8, 8], strides = [1, 1]} : vector<8x32xf32> to vector<8x8xf32>
    %cst_23 = arith.constant dense<0.000000e+00> : vector<8x8xf32>
    %38 = tpu.matmul %36, %37, %cst_23 {dimension_numbers = #tpu.dot_dimension_numbers<[1], [1], [0], [0], [0, 0, 1, 0], [], []>} : vector<8x8xf32>, vector<8x8xf32>, vector<8x8xf32> -> vector<8x8xf32>
    %39 = vector.extract_strided_slice %34 {offsets = [0, 8], sizes = [8, 8], strides = [1, 1]} : vector<8x32xf32> to vector<8x8xf32>
    %40 = vector.extract_strided_slice %35 {offsets = [0, 8], sizes = [8, 8], strides = [1, 1]} : vector<8x32xf32> to vector<8x8xf32>
    %cst_24 = arith.constant dense<0.000000e+00> : vector<8x8xf32>
    %41 = tpu.matmul %39, %40, %cst_24 {dimension_numbers = #tpu.dot_dimension_numbers<[1], [1], [0], [0], [0, 0, 1, 0], [], []>} : vector<8x8xf32>, vector<8x8xf32>, vector<8x8xf32> -> vector<8x8xf32>
    %42 = vector.extract_strided_slice %34 {offsets = [0, 16], sizes = [8, 8], strides = [1, 1]} : vector<8x32xf32> to vector<8x8xf32>
    %43 = vector.extract_strided_slice %35 {offsets = [0, 16], sizes = [8, 8], strides = [1, 1]} : vector<8x32xf32> to vector<8x8xf32>
    %cst_25 = arith.constant dense<0.000000e+00> : vector<8x8xf32>
    %44 = tpu.matmul %42, %43, %cst_25 {dimension_numbers = #tpu.dot_dimension_numbers<[1], [1], [0], [0], [0, 0, 1, 0], [], []>} : vector<8x8xf32>, vector<8x8xf32>, vector<8x8xf32> -> vector<8x8xf32>
    %45 = vector.extract_strided_slice %34 {offsets = [0, 24], sizes = [8, 8], strides = [1, 1]} : vector<8x32xf32> to vector<8x8xf32>
    %46 = vector.extract_strided_slice %35 {offsets = [0, 24], sizes = [8, 8], strides = [1, 1]} : vector<8x32xf32> to vector<8x8xf32>
    %cst_26 = arith.constant dense<0.000000e+00> : vector<8x8xf32>
    %47 = tpu.matmul %45, %46, %cst_26 {dimension_numbers = #tpu.dot_dimension_numbers<[1], [1], [0], [0], [0, 0, 1, 0], [], []>} : vector<8x8xf32>, vector<8x8xf32>, vector<8x8xf32> -> vector<8x8xf32>
    %48 = tpu.concatenate %24, %27, %30, %33, %38, %41, %44, %47 in 0 : vector<8x8xf32>, vector<8x8xf32>, vector<8x8xf32>, vector<8x8xf32>, vector<8x8xf32>, vector<8x8xf32>, vector<8x8xf32>, vector<8x8xf32> -> vector<64x8xf32>
    %49 = arith.addf %48, %5 : vector<64x8xf32>
    %cst_27 = arith.constant dense<0xFF800000> : vector<64xf32>
    %50 = vector.multi_reduction <maximumf>, %49, %cst_27 [1] : vector<64x8xf32> to vector<64xf32>
    %51 = vector.shape_cast %50 : vector<64xf32> to vector<64x1xf32>
    %52 = vector.broadcast %51 : vector<64x1xf32> to vector<64x8xf32>
    %53 = arith.subf %49, %52 : vector<64x8xf32>
    %54 = math.exp %53 : vector<64x8xf32>
    %cst_28 = arith.constant dense<0.000000e+00> : vector<64xf32>
    %55 = vector.multi_reduction <add>, %54, %cst_28 [1] : vector<64x8xf32> to vector<64xf32>
    %56 = vector.shape_cast %55 : vector<64xf32> to vector<64x1xf32>
    %57 = vector.broadcast %56 : vector<64x1xf32> to vector<64x8xf32>
    %58 = arith.divf %54, %57 : vector<64x8xf32>
    %59 = vector.extract_strided_slice %19 {offsets = [0, 0], sizes = [8, 32], strides = [1, 1]} : vector<16x32xf32> to vector<8x32xf32>
    %60 = vector.extract_strided_slice %58 {offsets = [0, 0], sizes = [8, 8], strides = [1, 1]} : vector<64x8xf32> to vector<8x8xf32>
    %61 = vector.extract_strided_slice %59 {offsets = [0, 0], sizes = [8, 8], strides = [1, 1]} : vector<8x32xf32> to vector<8x8xf32>
    %cst_29 = arith.constant dense<0.000000e+00> : vector<8x8xf32>
    %62 = tpu.matmul %60, %61, %cst_29 {dimension_numbers = #tpu.dot_dimension_numbers<[1], [0], [0], [1], [0, 0, 1, 1], [], []>} : vector<8x8xf32>, vector<8x8xf32>, vector<8x8xf32> -> vector<8x8xf32>
    %63 = vector.extract_strided_slice %58 {offsets = [8, 0], sizes = [8, 8], strides = [1, 1]} : vector<64x8xf32> to vector<8x8xf32>
    %64 = arith.addf %60, %63 : vector<8x8xf32>
    %65 = vector.extract_strided_slice %59 {offsets = [0, 8], sizes = [8, 8], strides = [1, 1]} : vector<8x32xf32> to vector<8x8xf32>
    %cst_30 = arith.constant dense<0.000000e+00> : vector<8x8xf32>
    %66 = tpu.matmul %63, %65, %cst_30 {dimension_numbers = #tpu.dot_dimension_numbers<[1], [0], [0], [1], [0, 0, 1, 1], [], []>} : vector<8x8xf32>, vector<8x8xf32>, vector<8x8xf32> -> vector<8x8xf32>
    %67 = vector.extract_strided_slice %58 {offsets = [16, 0], sizes = [8, 8], strides = [1, 1]} : vector<64x8xf32> to vector<8x8xf32>
    %68 = arith.addf %64, %67 : vector<8x8xf32>
    %69 = vector.extract_strided_slice %59 {offsets = [0, 16], sizes = [8, 8], strides = [1, 1]} : vector<8x32xf32> to vector<8x8xf32>
    %cst_31 = arith.constant dense<0.000000e+00> : vector<8x8xf32>
    %70 = tpu.matmul %67, %69, %cst_31 {dimension_numbers = #tpu.dot_dimension_numbers<[1], [0], [0], [1], [0, 0, 1, 1], [], []>} : vector<8x8xf32>, vector<8x8xf32>, vector<8x8xf32> -> vector<8x8xf32>
    %71 = vector.extract_strided_slice %58 {offsets = [24, 0], sizes = [8, 8], strides = [1, 1]} : vector<64x8xf32> to vector<8x8xf32>
    %72 = arith.addf %68, %71 : vector<8x8xf32>
    %73 = vector.extract_strided_slice %59 {offsets = [0, 24], sizes = [8, 8], strides = [1, 1]} : vector<8x32xf32> to vector<8x8xf32>
    %cst_32 = arith.constant dense<0.000000e+00> : vector<8x8xf32>
    %74 = tpu.matmul %71, %73, %cst_32 {dimension_numbers = #tpu.dot_dimension_numbers<[1], [0], [0], [1], [0, 0, 1, 1], [], []>} : vector<8x8xf32>, vector<8x8xf32>, vector<8x8xf32> -> vector<8x8xf32>
    %75 = tpu.concatenate %62, %66, %70, %74 in 1 : vector<8x8xf32>, vector<8x8xf32>, vector<8x8xf32>, vector<8x8xf32> -> vector<8x32xf32>
    %cst_33 = arith.constant 2.500000e-01 : f32
    %76 = vector.broadcast %cst_33 : f32 to vector<8x8xf32>
    %77 = arith.mulf %72, %76 : vector<8x8xf32>
    %78 = vector.extract_strided_slice %19 {offsets = [8, 0], sizes = [8, 32], strides = [1, 1]} : vector<16x32xf32> to vector<8x32xf32>
    %79 = vector.extract_strided_slice %58 {offsets = [32, 0], sizes = [8, 8], strides = [1, 1]} : vector<64x8xf32> to vector<8x8xf32>
    %80 = vector.extract_strided_slice %78 {offsets = [0, 0], sizes = [8, 8], strides = [1, 1]} : vector<8x32xf32> to vector<8x8xf32>
    %cst_34 = arith.constant dense<0.000000e+00> : vector<8x8xf32>
    %81 = tpu.matmul %79, %80, %cst_34 {dimension_numbers = #tpu.dot_dimension_numbers<[1], [0], [0], [1], [0, 0, 1, 1], [], []>} : vector<8x8xf32>, vector<8x8xf32>, vector<8x8xf32> -> vector<8x8xf32>
    %82 = vector.extract_strided_slice %58 {offsets = [40, 0], sizes = [8, 8], strides = [1, 1]} : vector<64x8xf32> to vector<8x8xf32>
    %83 = arith.addf %79, %82 : vector<8x8xf32>
    %84 = vector.extract_strided_slice %78 {offsets = [0, 8], sizes = [8, 8], strides = [1, 1]} : vector<8x32xf32> to vector<8x8xf32>
    %cst_35 = arith.constant dense<0.000000e+00> : vector<8x8xf32>
    %85 = tpu.matmul %82, %84, %cst_35 {dimension_numbers = #tpu.dot_dimension_numbers<[1], [0], [0], [1], [0, 0, 1, 1], [], []>} : vector<8x8xf32>, vector<8x8xf32>, vector<8x8xf32> -> vector<8x8xf32>
    %86 = vector.extract_strided_slice %58 {offsets = [48, 0], sizes = [8, 8], strides = [1, 1]} : vector<64x8xf32> to vector<8x8xf32>
    %87 = arith.addf %83, %86 : vector<8x8xf32>
    %88 = vector.extract_strided_slice %78 {offsets = [0, 16], sizes = [8, 8], strides = [1, 1]} : vector<8x32xf32> to vector<8x8xf32>
    %cst_36 = arith.constant dense<0.000000e+00> : vector<8x8xf32>
    %89 = tpu.matmul %86, %88, %cst_36 {dimension_numbers = #tpu.dot_dimension_numbers<[1], [0], [0], [1], [0, 0, 1, 1], [], []>} : vector<8x8xf32>, vector<8x8xf32>, vector<8x8xf32> -> vector<8x8xf32>
    %90 = vector.extract_strided_slice %58 {offsets = [56, 0], sizes = [8, 8], strides = [1, 1]} : vector<64x8xf32> to vector<8x8xf32>
    %91 = arith.addf %87, %90 : vector<8x8xf32>
    %92 = vector.extract_strided_slice %78 {offsets = [0, 24], sizes = [8, 8], strides = [1, 1]} : vector<8x32xf32> to vector<8x8xf32>
    %cst_37 = arith.constant dense<0.000000e+00> : vector<8x8xf32>
    %93 = tpu.matmul %90, %92, %cst_37 {dimension_numbers = #tpu.dot_dimension_numbers<[1], [0], [0], [1], [0, 0, 1, 1], [], []>} : vector<8x8xf32>, vector<8x8xf32>, vector<8x8xf32> -> vector<8x8xf32>
    %94 = tpu.concatenate %81, %85, %89, %93 in 1 : vector<8x8xf32>, vector<8x8xf32>, vector<8x8xf32>, vector<8x8xf32> -> vector<8x32xf32>
    %cst_38 = arith.constant 2.500000e-01 : f32
    %95 = vector.broadcast %cst_38 : f32 to vector<8x8xf32>
    %96 = arith.mulf %91, %95 : vector<8x8xf32>
    %97 = tpu.concatenate %75, %94 in 0 : vector<8x32xf32>, vector<8x32xf32> -> vector<16x32xf32>
    %cst_39 = arith.constant dense<0.000000e+00> : vector<16x32xf32>
    %98 = tpu.matmul %97, %11, %cst_39 {dimension_numbers = #tpu.dot_dimension_numbers<[1], [0], [0], [1], [0, 0, 1, 1], [], []>} : vector<16x32xf32>, vector<32x32xf32>, vector<16x32xf32> -> vector<16x32xf32>
    %99 = vector.broadcast %13 : vector<1x32xf32> to vector<16x32xf32>
    %100 = arith.addf %98, %99 : vector<16x32xf32>
    %101 = arith.addf %1, %100 : vector<16x32xf32>
    %c0_40 = arith.constant 0 : index
    %c0_41 = arith.constant 0 : index
    %c0_42 = arith.constant 0 : index
    %102 = vector.load %arg12[%c0_40, %c0_41, %c0_42] : memref<6x1x32xf32, #tpu.memory_space<vmem>>, vector<1x1x32xf32>
    %103 = vector.shape_cast %102 : vector<1x1x32xf32> to vector<1x32xf32>
    %c0_43 = arith.constant 0 : index
    %c0_44 = arith.constant 0 : index
    %c0_45 = arith.constant 0 : index
    %104 = vector.load %arg13[%c0_43, %c0_44, %c0_45] : memref<6x1x32xf32, #tpu.memory_space<vmem>>, vector<1x1x32xf32>
    %105 = vector.shape_cast %104 : vector<1x1x32xf32> to vector<1x32xf32>
    %cst_46 = arith.constant dense<0.000000e+00> : vector<16xf32>
    %106 = vector.multi_reduction <add>, %101, %cst_46 [1] : vector<16x32xf32> to vector<16xf32>
    %107 = vector.shape_cast %106 : vector<16xf32> to vector<16x1xf32>
    %cst_47 = arith.constant 3.200000e+01 : f32
    %108 = vector.broadcast %cst_47 : f32 to vector<16x1xf32>
    %109 = arith.divf %107, %108 : vector<16x1xf32>
    %110 = vector.broadcast %109 : vector<16x1xf32> to vector<16x32xf32>
    %111 = arith.subf %101, %110 : vector<16x32xf32>
    %112 = arith.mulf %111, %111 : vector<16x32xf32>
    %cst_48 = arith.constant dense<0.000000e+00> : vector<16xf32>
    %113 = vector.multi_reduction <add>, %112, %cst_48 [1] : vector<16x32xf32> to vector<16xf32>
    %114 = vector.shape_cast %113 : vector<16xf32> to vector<16x1xf32>
    %cst_49 = arith.constant 3.200000e+01 : f32
    %115 = vector.broadcast %cst_49 : f32 to vector<16x1xf32>
    %116 = arith.divf %114, %115 : vector<16x1xf32>
    %cst_50 = arith.constant 9.99999997E-7 : f32
    %117 = vector.broadcast %cst_50 : f32 to vector<16x1xf32>
    %118 = arith.addf %116, %117 : vector<16x1xf32>
    %119 = math.rsqrt %118 : vector<16x1xf32>
    %120 = vector.broadcast %119 : vector<16x1xf32> to vector<16x32xf32>
    %121 = arith.mulf %111, %120 : vector<16x32xf32>
    %122 = vector.broadcast %103 : vector<1x32xf32> to vector<16x32xf32>
    %123 = arith.mulf %121, %122 : vector<16x32xf32>
    %124 = vector.broadcast %105 : vector<1x32xf32> to vector<16x32xf32>
    %125 = arith.addf %123, %124 : vector<16x32xf32>
    %c0_51 = arith.constant 0 : index
    %c0_52 = arith.constant 0 : index
    %c0_53 = arith.constant 0 : index
    %126 = vector.load %arg8[%c0_51, %c0_52, %c0_53] : memref<2x32x96xf32, #tpu.memory_space<vmem>>, vector<1x32x96xf32>
    %127 = vector.shape_cast %126 : vector<1x32x96xf32> to vector<32x96xf32>
    %c0_54 = arith.constant 0 : index
    %c0_55 = arith.constant 0 : index
    %c0_56 = arith.constant 0 : index
    %128 = vector.load %arg9[%c0_54, %c0_55, %c0_56] : memref<2x1x96xf32, #tpu.memory_space<vmem>>, vector<1x1x96xf32>
    %129 = vector.shape_cast %128 : vector<1x1x96xf32> to vector<1x96xf32>
    %c0_57 = arith.constant 0 : index
    %c0_58 = arith.constant 0 : index
    %c0_59 = arith.constant 0 : index
    %130 = vector.load %arg10[%c0_57, %c0_58, %c0_59] : memref<2x32x32xf32, #tpu.memory_space<vmem>>, vector<1x32x32xf32>
    %131 = vector.shape_cast %130 : vector<1x32x32xf32> to vector<32x32xf32>
    %c0_60 = arith.constant 0 : index
    %c0_61 = arith.constant 0 : index
    %c0_62 = arith.constant 0 : index
    %132 = vector.load %arg11[%c0_60, %c0_61, %c0_62] : memref<2x1x32xf32, #tpu.memory_space<vmem>>, vector<1x1x32xf32>
    %133 = vector.shape_cast %132 : vector<1x1x32xf32> to vector<1x32xf32>
    %134 = vector.extract_strided_slice %127 {offsets = [0, 0], sizes = [32, 32], strides = [1, 1]} : vector<32x96xf32> to vector<32x32xf32>
    %cst_63 = arith.constant dense<0.000000e+00> : vector<16x32xf32>
    %135 = tpu.matmul %125, %134, %cst_63 {dimension_numbers = #tpu.dot_dimension_numbers<[1], [0], [0], [1], [0, 0, 1, 1], [], []>} : vector<16x32xf32>, vector<32x32xf32>, vector<16x32xf32> -> vector<16x32xf32>
    %136 = vector.extract_strided_slice %129 {offsets = [0, 0], sizes = [1, 32], strides = [1, 1]} : vector<1x96xf32> to vector<1x32xf32>
    %137 = vector.broadcast %136 : vector<1x32xf32> to vector<16x32xf32>
    %138 = arith.addf %135, %137 : vector<16x32xf32>
    %139 = vector.extract_strided_slice %127 {offsets = [0, 32], sizes = [32, 64], strides = [1, 1]} : vector<32x96xf32> to vector<32x64xf32>
    %cst_64 = arith.constant dense<0.000000e+00> : vector<16x64xf32>
    %140 = tpu.matmul %3, %139, %cst_64 {dimension_numbers = #tpu.dot_dimension_numbers<[1], [0], [0], [1], [0, 0, 1, 1], [], []>} : vector<16x32xf32>, vector<32x64xf32>, vector<16x64xf32> -> vector<16x64xf32>
    %141 = vector.extract_strided_slice %129 {offsets = [0, 32], sizes = [1, 64], strides = [1, 1]} : vector<1x96xf32> to vector<1x64xf32>
    %142 = vector.broadcast %141 : vector<1x64xf32> to vector<16x64xf32>
    %143 = arith.addf %140, %142 : vector<16x64xf32>
    %144 = vector.extract_strided_slice %143 {offsets = [0, 0], sizes = [16, 32], strides = [1, 1]} : vector<16x64xf32> to vector<16x32xf32>
    %145 = vector.extract_strided_slice %143 {offsets = [0, 32], sizes = [16, 32], strides = [1, 1]} : vector<16x64xf32> to vector<16x32xf32>
    %146 = vector.extract_strided_slice %138 {offsets = [0, 0], sizes = [8, 32], strides = [1, 1]} : vector<16x32xf32> to vector<8x32xf32>
    %147 = vector.extract_strided_slice %144 {offsets = [0, 0], sizes = [8, 32], strides = [1, 1]} : vector<16x32xf32> to vector<8x32xf32>
    %148 = vector.extract_strided_slice %146 {offsets = [0, 0], sizes = [8, 8], strides = [1, 1]} : vector<8x32xf32> to vector<8x8xf32>
    %149 = vector.extract_strided_slice %147 {offsets = [0, 0], sizes = [8, 8], strides = [1, 1]} : vector<8x32xf32> to vector<8x8xf32>
    %cst_65 = arith.constant dense<0.000000e+00> : vector<8x8xf32>
    %150 = tpu.matmul %148, %149, %cst_65 {dimension_numbers = #tpu.dot_dimension_numbers<[1], [1], [0], [0], [0, 0, 1, 0], [], []>} : vector<8x8xf32>, vector<8x8xf32>, vector<8x8xf32> -> vector<8x8xf32>
    %151 = vector.extract_strided_slice %146 {offsets = [0, 8], sizes = [8, 8], strides = [1, 1]} : vector<8x32xf32> to vector<8x8xf32>
    %152 = vector.extract_strided_slice %147 {offsets = [0, 8], sizes = [8, 8], strides = [1, 1]} : vector<8x32xf32> to vector<8x8xf32>
    %cst_66 = arith.constant dense<0.000000e+00> : vector<8x8xf32>
    %153 = tpu.matmul %151, %152, %cst_66 {dimension_numbers = #tpu.dot_dimension_numbers<[1], [1], [0], [0], [0, 0, 1, 0], [], []>} : vector<8x8xf32>, vector<8x8xf32>, vector<8x8xf32> -> vector<8x8xf32>
    %154 = vector.extract_strided_slice %146 {offsets = [0, 16], sizes = [8, 8], strides = [1, 1]} : vector<8x32xf32> to vector<8x8xf32>
    %155 = vector.extract_strided_slice %147 {offsets = [0, 16], sizes = [8, 8], strides = [1, 1]} : vector<8x32xf32> to vector<8x8xf32>
    %cst_67 = arith.constant dense<0.000000e+00> : vector<8x8xf32>
    %156 = tpu.matmul %154, %155, %cst_67 {dimension_numbers = #tpu.dot_dimension_numbers<[1], [1], [0], [0], [0, 0, 1, 0], [], []>} : vector<8x8xf32>, vector<8x8xf32>, vector<8x8xf32> -> vector<8x8xf32>
    %157 = vector.extract_strided_slice %146 {offsets = [0, 24], sizes = [8, 8], strides = [1, 1]} : vector<8x32xf32> to vector<8x8xf32>
    %158 = vector.extract_strided_slice %147 {offsets = [0, 24], sizes = [8, 8], strides = [1, 1]} : vector<8x32xf32> to vector<8x8xf32>
    %cst_68 = arith.constant dense<0.000000e+00> : vector<8x8xf32>
    %159 = tpu.matmul %157, %158, %cst_68 {dimension_numbers = #tpu.dot_dimension_numbers<[1], [1], [0], [0], [0, 0, 1, 0], [], []>} : vector<8x8xf32>, vector<8x8xf32>, vector<8x8xf32> -> vector<8x8xf32>
    %160 = vector.extract_strided_slice %138 {offsets = [8, 0], sizes = [8, 32], strides = [1, 1]} : vector<16x32xf32> to vector<8x32xf32>
    %161 = vector.extract_strided_slice %144 {offsets = [8, 0], sizes = [8, 32], strides = [1, 1]} : vector<16x32xf32> to vector<8x32xf32>
    %162 = vector.extract_strided_slice %160 {offsets = [0, 0], sizes = [8, 8], strides = [1, 1]} : vector<8x32xf32> to vector<8x8xf32>
    %163 = vector.extract_strided_slice %161 {offsets = [0, 0], sizes = [8, 8], strides = [1, 1]} : vector<8x32xf32> to vector<8x8xf32>
    %cst_69 = arith.constant dense<0.000000e+00> : vector<8x8xf32>
    %164 = tpu.matmul %162, %163, %cst_69 {dimension_numbers = #tpu.dot_dimension_numbers<[1], [1], [0], [0], [0, 0, 1, 0], [], []>} : vector<8x8xf32>, vector<8x8xf32>, vector<8x8xf32> -> vector<8x8xf32>
    %165 = vector.extract_strided_slice %160 {offsets = [0, 8], sizes = [8, 8], strides = [1, 1]} : vector<8x32xf32> to vector<8x8xf32>
    %166 = vector.extract_strided_slice %161 {offsets = [0, 8], sizes = [8, 8], strides = [1, 1]} : vector<8x32xf32> to vector<8x8xf32>
    %cst_70 = arith.constant dense<0.000000e+00> : vector<8x8xf32>
    %167 = tpu.matmul %165, %166, %cst_70 {dimension_numbers = #tpu.dot_dimension_numbers<[1], [1], [0], [0], [0, 0, 1, 0], [], []>} : vector<8x8xf32>, vector<8x8xf32>, vector<8x8xf32> -> vector<8x8xf32>
    %168 = vector.extract_strided_slice %160 {offsets = [0, 16], sizes = [8, 8], strides = [1, 1]} : vector<8x32xf32> to vector<8x8xf32>
    %169 = vector.extract_strided_slice %161 {offsets = [0, 16], sizes = [8, 8], strides = [1, 1]} : vector<8x32xf32> to vector<8x8xf32>
    %cst_71 = arith.constant dense<0.000000e+00> : vector<8x8xf32>
    %170 = tpu.matmul %168, %169, %cst_71 {dimension_numbers = #tpu.dot_dimension_numbers<[1], [1], [0], [0], [0, 0, 1, 0], [], []>} : vector<8x8xf32>, vector<8x8xf32>, vector<8x8xf32> -> vector<8x8xf32>
    %171 = vector.extract_strided_slice %160 {offsets = [0, 24], sizes = [8, 8], strides = [1, 1]} : vector<8x32xf32> to vector<8x8xf32>
    %172 = vector.extract_strided_slice %161 {offsets = [0, 24], sizes = [8, 8], strides = [1, 1]} : vector<8x32xf32> to vector<8x8xf32>
    %cst_72 = arith.constant dense<0.000000e+00> : vector<8x8xf32>
    %173 = tpu.matmul %171, %172, %cst_72 {dimension_numbers = #tpu.dot_dimension_numbers<[1], [1], [0], [0], [0, 0, 1, 0], [], []>} : vector<8x8xf32>, vector<8x8xf32>, vector<8x8xf32> -> vector<8x8xf32>
    %174 = tpu.concatenate %150, %153, %156, %159, %164, %167, %170, %173 in 0 : vector<8x8xf32>, vector<8x8xf32>, vector<8x8xf32>, vector<8x8xf32>, vector<8x8xf32>, vector<8x8xf32>, vector<8x8xf32>, vector<8x8xf32> -> vector<64x8xf32>
    %175 = arith.addf %174, %5 : vector<64x8xf32>
    %cst_73 = arith.constant dense<0xFF800000> : vector<64xf32>
    %176 = vector.multi_reduction <maximumf>, %175, %cst_73 [1] : vector<64x8xf32> to vector<64xf32>
    %177 = vector.shape_cast %176 : vector<64xf32> to vector<64x1xf32>
    %178 = vector.broadcast %177 : vector<64x1xf32> to vector<64x8xf32>
    %179 = arith.subf %175, %178 : vector<64x8xf32>
    %180 = math.exp %179 : vector<64x8xf32>
    %cst_74 = arith.constant dense<0.000000e+00> : vector<64xf32>
    %181 = vector.multi_reduction <add>, %180, %cst_74 [1] : vector<64x8xf32> to vector<64xf32>
    %182 = vector.shape_cast %181 : vector<64xf32> to vector<64x1xf32>
    %183 = vector.broadcast %182 : vector<64x1xf32> to vector<64x8xf32>
    %184 = arith.divf %180, %183 : vector<64x8xf32>
    %185 = vector.extract_strided_slice %145 {offsets = [0, 0], sizes = [8, 32], strides = [1, 1]} : vector<16x32xf32> to vector<8x32xf32>
    %186 = vector.extract_strided_slice %184 {offsets = [0, 0], sizes = [8, 8], strides = [1, 1]} : vector<64x8xf32> to vector<8x8xf32>
    %187 = vector.extract_strided_slice %185 {offsets = [0, 0], sizes = [8, 8], strides = [1, 1]} : vector<8x32xf32> to vector<8x8xf32>
    %cst_75 = arith.constant dense<0.000000e+00> : vector<8x8xf32>
    %188 = tpu.matmul %186, %187, %cst_75 {dimension_numbers = #tpu.dot_dimension_numbers<[1], [0], [0], [1], [0, 0, 1, 1], [], []>} : vector<8x8xf32>, vector<8x8xf32>, vector<8x8xf32> -> vector<8x8xf32>
    %189 = vector.extract_strided_slice %184 {offsets = [8, 0], sizes = [8, 8], strides = [1, 1]} : vector<64x8xf32> to vector<8x8xf32>
    %190 = arith.addf %186, %189 : vector<8x8xf32>
    %191 = vector.extract_strided_slice %185 {offsets = [0, 8], sizes = [8, 8], strides = [1, 1]} : vector<8x32xf32> to vector<8x8xf32>
    %cst_76 = arith.constant dense<0.000000e+00> : vector<8x8xf32>
    %192 = tpu.matmul %189, %191, %cst_76 {dimension_numbers = #tpu.dot_dimension_numbers<[1], [0], [0], [1], [0, 0, 1, 1], [], []>} : vector<8x8xf32>, vector<8x8xf32>, vector<8x8xf32> -> vector<8x8xf32>
    %193 = vector.extract_strided_slice %184 {offsets = [16, 0], sizes = [8, 8], strides = [1, 1]} : vector<64x8xf32> to vector<8x8xf32>
    %194 = arith.addf %190, %193 : vector<8x8xf32>
    %195 = vector.extract_strided_slice %185 {offsets = [0, 16], sizes = [8, 8], strides = [1, 1]} : vector<8x32xf32> to vector<8x8xf32>
    %cst_77 = arith.constant dense<0.000000e+00> : vector<8x8xf32>
    %196 = tpu.matmul %193, %195, %cst_77 {dimension_numbers = #tpu.dot_dimension_numbers<[1], [0], [0], [1], [0, 0, 1, 1], [], []>} : vector<8x8xf32>, vector<8x8xf32>, vector<8x8xf32> -> vector<8x8xf32>
    %197 = vector.extract_strided_slice %184 {offsets = [24, 0], sizes = [8, 8], strides = [1, 1]} : vector<64x8xf32> to vector<8x8xf32>
    %198 = arith.addf %194, %197 : vector<8x8xf32>
    %199 = vector.extract_strided_slice %185 {offsets = [0, 24], sizes = [8, 8], strides = [1, 1]} : vector<8x32xf32> to vector<8x8xf32>
    %cst_78 = arith.constant dense<0.000000e+00> : vector<8x8xf32>
    %200 = tpu.matmul %197, %199, %cst_78 {dimension_numbers = #tpu.dot_dimension_numbers<[1], [0], [0], [1], [0, 0, 1, 1], [], []>} : vector<8x8xf32>, vector<8x8xf32>, vector<8x8xf32> -> vector<8x8xf32>
    %201 = tpu.concatenate %188, %192, %196, %200 in 1 : vector<8x8xf32>, vector<8x8xf32>, vector<8x8xf32>, vector<8x8xf32> -> vector<8x32xf32>
    %cst_79 = arith.constant 2.500000e-01 : f32
    %202 = vector.broadcast %cst_79 : f32 to vector<8x8xf32>
    %203 = arith.mulf %198, %202 : vector<8x8xf32>
    %204 = vector.extract_strided_slice %145 {offsets = [8, 0], sizes = [8, 32], strides = [1, 1]} : vector<16x32xf32> to vector<8x32xf32>
    %205 = vector.extract_strided_slice %184 {offsets = [32, 0], sizes = [8, 8], strides = [1, 1]} : vector<64x8xf32> to vector<8x8xf32>
    %206 = vector.extract_strided_slice %204 {offsets = [0, 0], sizes = [8, 8], strides = [1, 1]} : vector<8x32xf32> to vector<8x8xf32>
    %cst_80 = arith.constant dense<0.000000e+00> : vector<8x8xf32>
    %207 = tpu.matmul %205, %206, %cst_80 {dimension_numbers = #tpu.dot_dimension_numbers<[1], [0], [0], [1], [0, 0, 1, 1], [], []>} : vector<8x8xf32>, vector<8x8xf32>, vector<8x8xf32> -> vector<8x8xf32>
    %208 = vector.extract_strided_slice %184 {offsets = [40, 0], sizes = [8, 8], strides = [1, 1]} : vector<64x8xf32> to vector<8x8xf32>
    %209 = arith.addf %205, %208 : vector<8x8xf32>
    %210 = vector.extract_strided_slice %204 {offsets = [0, 8], sizes = [8, 8], strides = [1, 1]} : vector<8x32xf32> to vector<8x8xf32>
    %cst_81 = arith.constant dense<0.000000e+00> : vector<8x8xf32>
    %211 = tpu.matmul %208, %210, %cst_81 {dimension_numbers = #tpu.dot_dimension_numbers<[1], [0], [0], [1], [0, 0, 1, 1], [], []>} : vector<8x8xf32>, vector<8x8xf32>, vector<8x8xf32> -> vector<8x8xf32>
    %212 = vector.extract_strided_slice %184 {offsets = [48, 0], sizes = [8, 8], strides = [1, 1]} : vector<64x8xf32> to vector<8x8xf32>
    %213 = arith.addf %209, %212 : vector<8x8xf32>
    %214 = vector.extract_strided_slice %204 {offsets = [0, 16], sizes = [8, 8], strides = [1, 1]} : vector<8x32xf32> to vector<8x8xf32>
    %cst_82 = arith.constant dense<0.000000e+00> : vector<8x8xf32>
    %215 = tpu.matmul %212, %214, %cst_82 {dimension_numbers = #tpu.dot_dimension_numbers<[1], [0], [0], [1], [0, 0, 1, 1], [], []>} : vector<8x8xf32>, vector<8x8xf32>, vector<8x8xf32> -> vector<8x8xf32>
    %216 = vector.extract_strided_slice %184 {offsets = [56, 0], sizes = [8, 8], strides = [1, 1]} : vector<64x8xf32> to vector<8x8xf32>
    %217 = arith.addf %213, %216 : vector<8x8xf32>
    %218 = vector.extract_strided_slice %204 {offsets = [0, 24], sizes = [8, 8], strides = [1, 1]} : vector<8x32xf32> to vector<8x8xf32>
    %cst_83 = arith.constant dense<0.000000e+00> : vector<8x8xf32>
    %219 = tpu.matmul %216, %218, %cst_83 {dimension_numbers = #tpu.dot_dimension_numbers<[1], [0], [0], [1], [0, 0, 1, 1], [], []>} : vector<8x8xf32>, vector<8x8xf32>, vector<8x8xf32> -> vector<8x8xf32>
    %220 = tpu.concatenate %207, %211, %215, %219 in 1 : vector<8x8xf32>, vector<8x8xf32>, vector<8x8xf32>, vector<8x8xf32> -> vector<8x32xf32>
    %cst_84 = arith.constant 2.500000e-01 : f32
    %221 = vector.broadcast %cst_84 : f32 to vector<8x8xf32>
    %222 = arith.mulf %217, %221 : vector<8x8xf32>
    %223 = tpu.concatenate %201, %220 in 0 : vector<8x32xf32>, vector<8x32xf32> -> vector<16x32xf32>
    %cst_85 = arith.constant dense<0.000000e+00> : vector<16x32xf32>
    %224 = tpu.matmul %223, %131, %cst_85 {dimension_numbers = #tpu.dot_dimension_numbers<[1], [0], [0], [1], [0, 0, 1, 1], [], []>} : vector<16x32xf32>, vector<32x32xf32>, vector<16x32xf32> -> vector<16x32xf32>
    %225 = vector.broadcast %133 : vector<1x32xf32> to vector<16x32xf32>
    %226 = arith.addf %224, %225 : vector<16x32xf32>
    %227 = arith.addf %125, %226 : vector<16x32xf32>
    %c1 = arith.constant 1 : index
    %c0_86 = arith.constant 0 : index
    %c0_87 = arith.constant 0 : index
    %228 = vector.load %arg12[%c1, %c0_86, %c0_87] : memref<6x1x32xf32, #tpu.memory_space<vmem>>, vector<1x1x32xf32>
    %229 = vector.shape_cast %228 : vector<1x1x32xf32> to vector<1x32xf32>
    %c1_88 = arith.constant 1 : index
    %c0_89 = arith.constant 0 : index
    %c0_90 = arith.constant 0 : index
    %230 = vector.load %arg13[%c1_88, %c0_89, %c0_90] : memref<6x1x32xf32, #tpu.memory_space<vmem>>, vector<1x1x32xf32>
    %231 = vector.shape_cast %230 : vector<1x1x32xf32> to vector<1x32xf32>
    %cst_91 = arith.constant dense<0.000000e+00> : vector<16xf32>
    %232 = vector.multi_reduction <add>, %227, %cst_91 [1] : vector<16x32xf32> to vector<16xf32>
    %233 = vector.shape_cast %232 : vector<16xf32> to vector<16x1xf32>
    %cst_92 = arith.constant 3.200000e+01 : f32
    %234 = vector.broadcast %cst_92 : f32 to vector<16x1xf32>
    %235 = arith.divf %233, %234 : vector<16x1xf32>
    %236 = vector.broadcast %235 : vector<16x1xf32> to vector<16x32xf32>
    %237 = arith.subf %227, %236 : vector<16x32xf32>
    %238 = arith.mulf %237, %237 : vector<16x32xf32>
    %cst_93 = arith.constant dense<0.000000e+00> : vector<16xf32>
    %239 = vector.multi_reduction <add>, %238, %cst_93 [1] : vector<16x32xf32> to vector<16xf32>
    %240 = vector.shape_cast %239 : vector<16xf32> to vector<16x1xf32>
    %cst_94 = arith.constant 3.200000e+01 : f32
    %241 = vector.broadcast %cst_94 : f32 to vector<16x1xf32>
    %242 = arith.divf %240, %241 : vector<16x1xf32>
    %cst_95 = arith.constant 9.99999997E-7 : f32
    %243 = vector.broadcast %cst_95 : f32 to vector<16x1xf32>
    %244 = arith.addf %242, %243 : vector<16x1xf32>
    %245 = math.rsqrt %244 : vector<16x1xf32>
    %246 = vector.broadcast %245 : vector<16x1xf32> to vector<16x32xf32>
    %247 = arith.mulf %237, %246 : vector<16x32xf32>
    %248 = vector.broadcast %229 : vector<1x32xf32> to vector<16x32xf32>
    %249 = arith.mulf %247, %248 : vector<16x32xf32>
    %250 = vector.broadcast %231 : vector<1x32xf32> to vector<16x32xf32>
    %251 = arith.addf %249, %250 : vector<16x32xf32>
    %c0_96 = arith.constant 0 : index
    %c0_97 = arith.constant 0 : index
    %c0_98 = arith.constant 0 : index
    %252 = vector.load %arg14[%c0_96, %c0_97, %c0_98] : memref<2x32x64xf32, #tpu.memory_space<vmem>>, vector<1x32x64xf32>
    %253 = vector.shape_cast %252 : vector<1x32x64xf32> to vector<32x64xf32>
    %cst_99 = arith.constant dense<0.000000e+00> : vector<16x64xf32>
    %254 = tpu.matmul %251, %253, %cst_99 {dimension_numbers = #tpu.dot_dimension_numbers<[1], [0], [0], [1], [0, 0, 1, 1], [], []>} : vector<16x32xf32>, vector<32x64xf32>, vector<16x64xf32> -> vector<16x64xf32>
    %c0_100 = arith.constant 0 : index
    %c0_101 = arith.constant 0 : index
    %c0_102 = arith.constant 0 : index
    %255 = vector.load %arg15[%c0_100, %c0_101, %c0_102] : memref<2x1x64xf32, #tpu.memory_space<vmem>>, vector<1x1x64xf32>
    %256 = vector.shape_cast %255 : vector<1x1x64xf32> to vector<1x64xf32>
    %257 = vector.broadcast %256 : vector<1x64xf32> to vector<16x64xf32>
    %258 = arith.addf %254, %257 : vector<16x64xf32>
    %cst_103 = arith.constant 0.000000e+00 : f32
    %259 = vector.broadcast %cst_103 : f32 to vector<16x64xf32>
    %260 = arith.maximumf %258, %259 : vector<16x64xf32>
    %c0_104 = arith.constant 0 : index
    %c0_105 = arith.constant 0 : index
    %c0_106 = arith.constant 0 : index
    %261 = vector.load %arg16[%c0_104, %c0_105, %c0_106] : memref<2x64x32xf32, #tpu.memory_space<vmem>>, vector<1x64x32xf32>
    %262 = vector.shape_cast %261 : vector<1x64x32xf32> to vector<64x32xf32>
    %cst_107 = arith.constant dense<0.000000e+00> : vector<16x32xf32>
    %263 = tpu.matmul %260, %262, %cst_107 {dimension_numbers = #tpu.dot_dimension_numbers<[1], [0], [0], [1], [0, 0, 1, 1], [], []>} : vector<16x64xf32>, vector<64x32xf32>, vector<16x32xf32> -> vector<16x32xf32>
    %c0_108 = arith.constant 0 : index
    %c0_109 = arith.constant 0 : index
    %c0_110 = arith.constant 0 : index
    %264 = vector.load %arg17[%c0_108, %c0_109, %c0_110] : memref<2x1x32xf32, #tpu.memory_space<vmem>>, vector<1x1x32xf32>
    %265 = vector.shape_cast %264 : vector<1x1x32xf32> to vector<1x32xf32>
    %266 = vector.broadcast %265 : vector<1x32xf32> to vector<16x32xf32>
    %267 = arith.addf %263, %266 : vector<16x32xf32>
    %268 = arith.addf %251, %267 : vector<16x32xf32>
    %c2 = arith.constant 2 : index
    %c0_111 = arith.constant 0 : index
    %c0_112 = arith.constant 0 : index
    %269 = vector.load %arg12[%c2, %c0_111, %c0_112] : memref<6x1x32xf32, #tpu.memory_space<vmem>>, vector<1x1x32xf32>
    %270 = vector.shape_cast %269 : vector<1x1x32xf32> to vector<1x32xf32>
    %c2_113 = arith.constant 2 : index
    %c0_114 = arith.constant 0 : index
    %c0_115 = arith.constant 0 : index
    %271 = vector.load %arg13[%c2_113, %c0_114, %c0_115] : memref<6x1x32xf32, #tpu.memory_space<vmem>>, vector<1x1x32xf32>
    %272 = vector.shape_cast %271 : vector<1x1x32xf32> to vector<1x32xf32>
    %cst_116 = arith.constant dense<0.000000e+00> : vector<16xf32>
    %273 = vector.multi_reduction <add>, %268, %cst_116 [1] : vector<16x32xf32> to vector<16xf32>
    %274 = vector.shape_cast %273 : vector<16xf32> to vector<16x1xf32>
    %cst_117 = arith.constant 3.200000e+01 : f32
    %275 = vector.broadcast %cst_117 : f32 to vector<16x1xf32>
    %276 = arith.divf %274, %275 : vector<16x1xf32>
    %277 = vector.broadcast %276 : vector<16x1xf32> to vector<16x32xf32>
    %278 = arith.subf %268, %277 : vector<16x32xf32>
    %279 = arith.mulf %278, %278 : vector<16x32xf32>
    %cst_118 = arith.constant dense<0.000000e+00> : vector<16xf32>
    %280 = vector.multi_reduction <add>, %279, %cst_118 [1] : vector<16x32xf32> to vector<16xf32>
    %281 = vector.shape_cast %280 : vector<16xf32> to vector<16x1xf32>
    %cst_119 = arith.constant 3.200000e+01 : f32
    %282 = vector.broadcast %cst_119 : f32 to vector<16x1xf32>
    %283 = arith.divf %281, %282 : vector<16x1xf32>
    %cst_120 = arith.constant 9.99999997E-7 : f32
    %284 = vector.broadcast %cst_120 : f32 to vector<16x1xf32>
    %285 = arith.addf %283, %284 : vector<16x1xf32>
    %286 = math.rsqrt %285 : vector<16x1xf32>
    %287 = vector.broadcast %286 : vector<16x1xf32> to vector<16x32xf32>
    %288 = arith.mulf %278, %287 : vector<16x32xf32>
    %289 = vector.broadcast %270 : vector<1x32xf32> to vector<16x32xf32>
    %290 = arith.mulf %288, %289 : vector<16x32xf32>
    %291 = vector.broadcast %272 : vector<1x32xf32> to vector<16x32xf32>
    %292 = arith.addf %290, %291 : vector<16x32xf32>
    %c1_121 = arith.constant 1 : index
    %c0_122 = arith.constant 0 : index
    %c0_123 = arith.constant 0 : index
    %293 = vector.load %arg4[%c1_121, %c0_122, %c0_123] : memref<2x32x96xf32, #tpu.memory_space<vmem>>, vector<1x32x96xf32>
    %294 = vector.shape_cast %293 : vector<1x32x96xf32> to vector<32x96xf32>
    %c1_124 = arith.constant 1 : index
    %c0_125 = arith.constant 0 : index
    %c0_126 = arith.constant 0 : index
    %295 = vector.load %arg5[%c1_124, %c0_125, %c0_126] : memref<2x1x96xf32, #tpu.memory_space<vmem>>, vector<1x1x96xf32>
    %296 = vector.shape_cast %295 : vector<1x1x96xf32> to vector<1x96xf32>
    %c1_127 = arith.constant 1 : index
    %c0_128 = arith.constant 0 : index
    %c0_129 = arith.constant 0 : index
    %297 = vector.load %arg6[%c1_127, %c0_128, %c0_129] : memref<2x32x32xf32, #tpu.memory_space<vmem>>, vector<1x32x32xf32>
    %298 = vector.shape_cast %297 : vector<1x32x32xf32> to vector<32x32xf32>
    %c1_130 = arith.constant 1 : index
    %c0_131 = arith.constant 0 : index
    %c0_132 = arith.constant 0 : index
    %299 = vector.load %arg7[%c1_130, %c0_131, %c0_132] : memref<2x1x32xf32, #tpu.memory_space<vmem>>, vector<1x1x32xf32>
    %300 = vector.shape_cast %299 : vector<1x1x32xf32> to vector<1x32xf32>
    %cst_133 = arith.constant dense<0.000000e+00> : vector<16x96xf32>
    %301 = tpu.matmul %292, %294, %cst_133 {dimension_numbers = #tpu.dot_dimension_numbers<[1], [0], [0], [1], [0, 0, 1, 1], [], []>} : vector<16x32xf32>, vector<32x96xf32>, vector<16x96xf32> -> vector<16x96xf32>
    %302 = vector.broadcast %296 : vector<1x96xf32> to vector<16x96xf32>
    %303 = arith.addf %301, %302 : vector<16x96xf32>
    %304 = vector.extract_strided_slice %303 {offsets = [0, 0], sizes = [16, 32], strides = [1, 1]} : vector<16x96xf32> to vector<16x32xf32>
    %305 = vector.extract_strided_slice %303 {offsets = [0, 32], sizes = [16, 32], strides = [1, 1]} : vector<16x96xf32> to vector<16x32xf32>
    %306 = vector.extract_strided_slice %303 {offsets = [0, 64], sizes = [16, 32], strides = [1, 1]} : vector<16x96xf32> to vector<16x32xf32>
    %307 = vector.extract_strided_slice %304 {offsets = [0, 0], sizes = [8, 32], strides = [1, 1]} : vector<16x32xf32> to vector<8x32xf32>
    %308 = vector.extract_strided_slice %305 {offsets = [0, 0], sizes = [8, 32], strides = [1, 1]} : vector<16x32xf32> to vector<8x32xf32>
    %309 = vector.extract_strided_slice %307 {offsets = [0, 0], sizes = [8, 8], strides = [1, 1]} : vector<8x32xf32> to vector<8x8xf32>
    %310 = vector.extract_strided_slice %308 {offsets = [0, 0], sizes = [8, 8], strides = [1, 1]} : vector<8x32xf32> to vector<8x8xf32>
    %cst_134 = arith.constant dense<0.000000e+00> : vector<8x8xf32>
    %311 = tpu.matmul %309, %310, %cst_134 {dimension_numbers = #tpu.dot_dimension_numbers<[1], [1], [0], [0], [0, 0, 1, 0], [], []>} : vector<8x8xf32>, vector<8x8xf32>, vector<8x8xf32> -> vector<8x8xf32>
    %312 = vector.extract_strided_slice %307 {offsets = [0, 8], sizes = [8, 8], strides = [1, 1]} : vector<8x32xf32> to vector<8x8xf32>
    %313 = vector.extract_strided_slice %308 {offsets = [0, 8], sizes = [8, 8], strides = [1, 1]} : vector<8x32xf32> to vector<8x8xf32>
    %cst_135 = arith.constant dense<0.000000e+00> : vector<8x8xf32>
    %314 = tpu.matmul %312, %313, %cst_135 {dimension_numbers = #tpu.dot_dimension_numbers<[1], [1], [0], [0], [0, 0, 1, 0], [], []>} : vector<8x8xf32>, vector<8x8xf32>, vector<8x8xf32> -> vector<8x8xf32>
    %315 = vector.extract_strided_slice %307 {offsets = [0, 16], sizes = [8, 8], strides = [1, 1]} : vector<8x32xf32> to vector<8x8xf32>
    %316 = vector.extract_strided_slice %308 {offsets = [0, 16], sizes = [8, 8], strides = [1, 1]} : vector<8x32xf32> to vector<8x8xf32>
    %cst_136 = arith.constant dense<0.000000e+00> : vector<8x8xf32>
    %317 = tpu.matmul %315, %316, %cst_136 {dimension_numbers = #tpu.dot_dimension_numbers<[1], [1], [0], [0], [0, 0, 1, 0], [], []>} : vector<8x8xf32>, vector<8x8xf32>, vector<8x8xf32> -> vector<8x8xf32>
    %318 = vector.extract_strided_slice %307 {offsets = [0, 24], sizes = [8, 8], strides = [1, 1]} : vector<8x32xf32> to vector<8x8xf32>
    %319 = vector.extract_strided_slice %308 {offsets = [0, 24], sizes = [8, 8], strides = [1, 1]} : vector<8x32xf32> to vector<8x8xf32>
    %cst_137 = arith.constant dense<0.000000e+00> : vector<8x8xf32>
    %320 = tpu.matmul %318, %319, %cst_137 {dimension_numbers = #tpu.dot_dimension_numbers<[1], [1], [0], [0], [0, 0, 1, 0], [], []>} : vector<8x8xf32>, vector<8x8xf32>, vector<8x8xf32> -> vector<8x8xf32>
    %321 = vector.extract_strided_slice %304 {offsets = [8, 0], sizes = [8, 32], strides = [1, 1]} : vector<16x32xf32> to vector<8x32xf32>
    %322 = vector.extract_strided_slice %305 {offsets = [8, 0], sizes = [8, 32], strides = [1, 1]} : vector<16x32xf32> to vector<8x32xf32>
    %323 = vector.extract_strided_slice %321 {offsets = [0, 0], sizes = [8, 8], strides = [1, 1]} : vector<8x32xf32> to vector<8x8xf32>
    %324 = vector.extract_strided_slice %322 {offsets = [0, 0], sizes = [8, 8], strides = [1, 1]} : vector<8x32xf32> to vector<8x8xf32>
    %cst_138 = arith.constant dense<0.000000e+00> : vector<8x8xf32>
    %325 = tpu.matmul %323, %324, %cst_138 {dimension_numbers = #tpu.dot_dimension_numbers<[1], [1], [0], [0], [0, 0, 1, 0], [], []>} : vector<8x8xf32>, vector<8x8xf32>, vector<8x8xf32> -> vector<8x8xf32>
    %326 = vector.extract_strided_slice %321 {offsets = [0, 8], sizes = [8, 8], strides = [1, 1]} : vector<8x32xf32> to vector<8x8xf32>
    %327 = vector.extract_strided_slice %322 {offsets = [0, 8], sizes = [8, 8], strides = [1, 1]} : vector<8x32xf32> to vector<8x8xf32>
    %cst_139 = arith.constant dense<0.000000e+00> : vector<8x8xf32>
    %328 = tpu.matmul %326, %327, %cst_139 {dimension_numbers = #tpu.dot_dimension_numbers<[1], [1], [0], [0], [0, 0, 1, 0], [], []>} : vector<8x8xf32>, vector<8x8xf32>, vector<8x8xf32> -> vector<8x8xf32>
    %329 = vector.extract_strided_slice %321 {offsets = [0, 16], sizes = [8, 8], strides = [1, 1]} : vector<8x32xf32> to vector<8x8xf32>
    %330 = vector.extract_strided_slice %322 {offsets = [0, 16], sizes = [8, 8], strides = [1, 1]} : vector<8x32xf32> to vector<8x8xf32>
    %cst_140 = arith.constant dense<0.000000e+00> : vector<8x8xf32>
    %331 = tpu.matmul %329, %330, %cst_140 {dimension_numbers = #tpu.dot_dimension_numbers<[1], [1], [0], [0], [0, 0, 1, 0], [], []>} : vector<8x8xf32>, vector<8x8xf32>, vector<8x8xf32> -> vector<8x8xf32>
    %332 = vector.extract_strided_slice %321 {offsets = [0, 24], sizes = [8, 8], strides = [1, 1]} : vector<8x32xf32> to vector<8x8xf32>
    %333 = vector.extract_strided_slice %322 {offsets = [0, 24], sizes = [8, 8], strides = [1, 1]} : vector<8x32xf32> to vector<8x8xf32>
    %cst_141 = arith.constant dense<0.000000e+00> : vector<8x8xf32>
    %334 = tpu.matmul %332, %333, %cst_141 {dimension_numbers = #tpu.dot_dimension_numbers<[1], [1], [0], [0], [0, 0, 1, 0], [], []>} : vector<8x8xf32>, vector<8x8xf32>, vector<8x8xf32> -> vector<8x8xf32>
    %335 = tpu.concatenate %311, %314, %317, %320, %325, %328, %331, %334 in 0 : vector<8x8xf32>, vector<8x8xf32>, vector<8x8xf32>, vector<8x8xf32>, vector<8x8xf32>, vector<8x8xf32>, vector<8x8xf32>, vector<8x8xf32> -> vector<64x8xf32>
    %336 = arith.addf %335, %5 : vector<64x8xf32>
    %cst_142 = arith.constant dense<0xFF800000> : vector<64xf32>
    %337 = vector.multi_reduction <maximumf>, %336, %cst_142 [1] : vector<64x8xf32> to vector<64xf32>
    %338 = vector.shape_cast %337 : vector<64xf32> to vector<64x1xf32>
    %339 = vector.broadcast %338 : vector<64x1xf32> to vector<64x8xf32>
    %340 = arith.subf %336, %339 : vector<64x8xf32>
    %341 = math.exp %340 : vector<64x8xf32>
    %cst_143 = arith.constant dense<0.000000e+00> : vector<64xf32>
    %342 = vector.multi_reduction <add>, %341, %cst_143 [1] : vector<64x8xf32> to vector<64xf32>
    %343 = vector.shape_cast %342 : vector<64xf32> to vector<64x1xf32>
    %344 = vector.broadcast %343 : vector<64x1xf32> to vector<64x8xf32>
    %345 = arith.divf %341, %344 : vector<64x8xf32>
    %346 = vector.extract_strided_slice %306 {offsets = [0, 0], sizes = [8, 32], strides = [1, 1]} : vector<16x32xf32> to vector<8x32xf32>
    %347 = vector.extract_strided_slice %345 {offsets = [0, 0], sizes = [8, 8], strides = [1, 1]} : vector<64x8xf32> to vector<8x8xf32>
    %348 = vector.extract_strided_slice %346 {offsets = [0, 0], sizes = [8, 8], strides = [1, 1]} : vector<8x32xf32> to vector<8x8xf32>
    %cst_144 = arith.constant dense<0.000000e+00> : vector<8x8xf32>
    %349 = tpu.matmul %347, %348, %cst_144 {dimension_numbers = #tpu.dot_dimension_numbers<[1], [0], [0], [1], [0, 0, 1, 1], [], []>} : vector<8x8xf32>, vector<8x8xf32>, vector<8x8xf32> -> vector<8x8xf32>
    %350 = vector.extract_strided_slice %345 {offsets = [8, 0], sizes = [8, 8], strides = [1, 1]} : vector<64x8xf32> to vector<8x8xf32>
    %351 = arith.addf %347, %350 : vector<8x8xf32>
    %352 = vector.extract_strided_slice %346 {offsets = [0, 8], sizes = [8, 8], strides = [1, 1]} : vector<8x32xf32> to vector<8x8xf32>
    %cst_145 = arith.constant dense<0.000000e+00> : vector<8x8xf32>
    %353 = tpu.matmul %350, %352, %cst_145 {dimension_numbers = #tpu.dot_dimension_numbers<[1], [0], [0], [1], [0, 0, 1, 1], [], []>} : vector<8x8xf32>, vector<8x8xf32>, vector<8x8xf32> -> vector<8x8xf32>
    %354 = vector.extract_strided_slice %345 {offsets = [16, 0], sizes = [8, 8], strides = [1, 1]} : vector<64x8xf32> to vector<8x8xf32>
    %355 = arith.addf %351, %354 : vector<8x8xf32>
    %356 = vector.extract_strided_slice %346 {offsets = [0, 16], sizes = [8, 8], strides = [1, 1]} : vector<8x32xf32> to vector<8x8xf32>
    %cst_146 = arith.constant dense<0.000000e+00> : vector<8x8xf32>
    %357 = tpu.matmul %354, %356, %cst_146 {dimension_numbers = #tpu.dot_dimension_numbers<[1], [0], [0], [1], [0, 0, 1, 1], [], []>} : vector<8x8xf32>, vector<8x8xf32>, vector<8x8xf32> -> vector<8x8xf32>
    %358 = vector.extract_strided_slice %345 {offsets = [24, 0], sizes = [8, 8], strides = [1, 1]} : vector<64x8xf32> to vector<8x8xf32>
    %359 = arith.addf %355, %358 : vector<8x8xf32>
    %360 = vector.extract_strided_slice %346 {offsets = [0, 24], sizes = [8, 8], strides = [1, 1]} : vector<8x32xf32> to vector<8x8xf32>
    %cst_147 = arith.constant dense<0.000000e+00> : vector<8x8xf32>
    %361 = tpu.matmul %358, %360, %cst_147 {dimension_numbers = #tpu.dot_dimension_numbers<[1], [0], [0], [1], [0, 0, 1, 1], [], []>} : vector<8x8xf32>, vector<8x8xf32>, vector<8x8xf32> -> vector<8x8xf32>
    %362 = tpu.concatenate %349, %353, %357, %361 in 1 : vector<8x8xf32>, vector<8x8xf32>, vector<8x8xf32>, vector<8x8xf32> -> vector<8x32xf32>
    %cst_148 = arith.constant 2.500000e-01 : f32
    %363 = vector.broadcast %cst_148 : f32 to vector<8x8xf32>
    %364 = arith.mulf %359, %363 : vector<8x8xf32>
    %365 = vector.extract_strided_slice %306 {offsets = [8, 0], sizes = [8, 32], strides = [1, 1]} : vector<16x32xf32> to vector<8x32xf32>
    %366 = vector.extract_strided_slice %345 {offsets = [32, 0], sizes = [8, 8], strides = [1, 1]} : vector<64x8xf32> to vector<8x8xf32>
    %367 = vector.extract_strided_slice %365 {offsets = [0, 0], sizes = [8, 8], strides = [1, 1]} : vector<8x32xf32> to vector<8x8xf32>
    %cst_149 = arith.constant dense<0.000000e+00> : vector<8x8xf32>
    %368 = tpu.matmul %366, %367, %cst_149 {dimension_numbers = #tpu.dot_dimension_numbers<[1], [0], [0], [1], [0, 0, 1, 1], [], []>} : vector<8x8xf32>, vector<8x8xf32>, vector<8x8xf32> -> vector<8x8xf32>
    %369 = vector.extract_strided_slice %345 {offsets = [40, 0], sizes = [8, 8], strides = [1, 1]} : vector<64x8xf32> to vector<8x8xf32>
    %370 = arith.addf %366, %369 : vector<8x8xf32>
    %371 = vector.extract_strided_slice %365 {offsets = [0, 8], sizes = [8, 8], strides = [1, 1]} : vector<8x32xf32> to vector<8x8xf32>
    %cst_150 = arith.constant dense<0.000000e+00> : vector<8x8xf32>
    %372 = tpu.matmul %369, %371, %cst_150 {dimension_numbers = #tpu.dot_dimension_numbers<[1], [0], [0], [1], [0, 0, 1, 1], [], []>} : vector<8x8xf32>, vector<8x8xf32>, vector<8x8xf32> -> vector<8x8xf32>
    %373 = vector.extract_strided_slice %345 {offsets = [48, 0], sizes = [8, 8], strides = [1, 1]} : vector<64x8xf32> to vector<8x8xf32>
    %374 = arith.addf %370, %373 : vector<8x8xf32>
    %375 = vector.extract_strided_slice %365 {offsets = [0, 16], sizes = [8, 8], strides = [1, 1]} : vector<8x32xf32> to vector<8x8xf32>
    %cst_151 = arith.constant dense<0.000000e+00> : vector<8x8xf32>
    %376 = tpu.matmul %373, %375, %cst_151 {dimension_numbers = #tpu.dot_dimension_numbers<[1], [0], [0], [1], [0, 0, 1, 1], [], []>} : vector<8x8xf32>, vector<8x8xf32>, vector<8x8xf32> -> vector<8x8xf32>
    %377 = vector.extract_strided_slice %345 {offsets = [56, 0], sizes = [8, 8], strides = [1, 1]} : vector<64x8xf32> to vector<8x8xf32>
    %378 = arith.addf %374, %377 : vector<8x8xf32>
    %379 = vector.extract_strided_slice %365 {offsets = [0, 24], sizes = [8, 8], strides = [1, 1]} : vector<8x32xf32> to vector<8x8xf32>
    %cst_152 = arith.constant dense<0.000000e+00> : vector<8x8xf32>
    %380 = tpu.matmul %377, %379, %cst_152 {dimension_numbers = #tpu.dot_dimension_numbers<[1], [0], [0], [1], [0, 0, 1, 1], [], []>} : vector<8x8xf32>, vector<8x8xf32>, vector<8x8xf32> -> vector<8x8xf32>
    %381 = tpu.concatenate %368, %372, %376, %380 in 1 : vector<8x8xf32>, vector<8x8xf32>, vector<8x8xf32>, vector<8x8xf32> -> vector<8x32xf32>
    %cst_153 = arith.constant 2.500000e-01 : f32
    %382 = vector.broadcast %cst_153 : f32 to vector<8x8xf32>
    %383 = arith.mulf %378, %382 : vector<8x8xf32>
    %384 = tpu.concatenate %362, %381 in 0 : vector<8x32xf32>, vector<8x32xf32> -> vector<16x32xf32>
    %cst_154 = arith.constant dense<0.000000e+00> : vector<16x32xf32>
    %385 = tpu.matmul %384, %298, %cst_154 {dimension_numbers = #tpu.dot_dimension_numbers<[1], [0], [0], [1], [0, 0, 1, 1], [], []>} : vector<16x32xf32>, vector<32x32xf32>, vector<16x32xf32> -> vector<16x32xf32>
    %386 = vector.broadcast %300 : vector<1x32xf32> to vector<16x32xf32>
    %387 = arith.addf %385, %386 : vector<16x32xf32>
    %388 = arith.addf %292, %387 : vector<16x32xf32>
    %c3 = arith.constant 3 : index
    %c0_155 = arith.constant 0 : index
    %c0_156 = arith.constant 0 : index
    %389 = vector.load %arg12[%c3, %c0_155, %c0_156] : memref<6x1x32xf32, #tpu.memory_space<vmem>>, vector<1x1x32xf32>
    %390 = vector.shape_cast %389 : vector<1x1x32xf32> to vector<1x32xf32>
    %c3_157 = arith.constant 3 : index
    %c0_158 = arith.constant 0 : index
    %c0_159 = arith.constant 0 : index
    %391 = vector.load %arg13[%c3_157, %c0_158, %c0_159] : memref<6x1x32xf32, #tpu.memory_space<vmem>>, vector<1x1x32xf32>
    %392 = vector.shape_cast %391 : vector<1x1x32xf32> to vector<1x32xf32>
    %cst_160 = arith.constant dense<0.000000e+00> : vector<16xf32>
    %393 = vector.multi_reduction <add>, %388, %cst_160 [1] : vector<16x32xf32> to vector<16xf32>
    %394 = vector.shape_cast %393 : vector<16xf32> to vector<16x1xf32>
    %cst_161 = arith.constant 3.200000e+01 : f32
    %395 = vector.broadcast %cst_161 : f32 to vector<16x1xf32>
    %396 = arith.divf %394, %395 : vector<16x1xf32>
    %397 = vector.broadcast %396 : vector<16x1xf32> to vector<16x32xf32>
    %398 = arith.subf %388, %397 : vector<16x32xf32>
    %399 = arith.mulf %398, %398 : vector<16x32xf32>
    %cst_162 = arith.constant dense<0.000000e+00> : vector<16xf32>
    %400 = vector.multi_reduction <add>, %399, %cst_162 [1] : vector<16x32xf32> to vector<16xf32>
    %401 = vector.shape_cast %400 : vector<16xf32> to vector<16x1xf32>
    %cst_163 = arith.constant 3.200000e+01 : f32
    %402 = vector.broadcast %cst_163 : f32 to vector<16x1xf32>
    %403 = arith.divf %401, %402 : vector<16x1xf32>
    %cst_164 = arith.constant 9.99999997E-7 : f32
    %404 = vector.broadcast %cst_164 : f32 to vector<16x1xf32>
    %405 = arith.addf %403, %404 : vector<16x1xf32>
    %406 = math.rsqrt %405 : vector<16x1xf32>
    %407 = vector.broadcast %406 : vector<16x1xf32> to vector<16x32xf32>
    %408 = arith.mulf %398, %407 : vector<16x32xf32>
    %409 = vector.broadcast %390 : vector<1x32xf32> to vector<16x32xf32>
    %410 = arith.mulf %408, %409 : vector<16x32xf32>
    %411 = vector.broadcast %392 : vector<1x32xf32> to vector<16x32xf32>
    %412 = arith.addf %410, %411 : vector<16x32xf32>
    %c1_165 = arith.constant 1 : index
    %c0_166 = arith.constant 0 : index
    %c0_167 = arith.constant 0 : index
    %413 = vector.load %arg8[%c1_165, %c0_166, %c0_167] : memref<2x32x96xf32, #tpu.memory_space<vmem>>, vector<1x32x96xf32>
    %414 = vector.shape_cast %413 : vector<1x32x96xf32> to vector<32x96xf32>
    %c1_168 = arith.constant 1 : index
    %c0_169 = arith.constant 0 : index
    %c0_170 = arith.constant 0 : index
    %415 = vector.load %arg9[%c1_168, %c0_169, %c0_170] : memref<2x1x96xf32, #tpu.memory_space<vmem>>, vector<1x1x96xf32>
    %416 = vector.shape_cast %415 : vector<1x1x96xf32> to vector<1x96xf32>
    %c1_171 = arith.constant 1 : index
    %c0_172 = arith.constant 0 : index
    %c0_173 = arith.constant 0 : index
    %417 = vector.load %arg10[%c1_171, %c0_172, %c0_173] : memref<2x32x32xf32, #tpu.memory_space<vmem>>, vector<1x32x32xf32>
    %418 = vector.shape_cast %417 : vector<1x32x32xf32> to vector<32x32xf32>
    %c1_174 = arith.constant 1 : index
    %c0_175 = arith.constant 0 : index
    %c0_176 = arith.constant 0 : index
    %419 = vector.load %arg11[%c1_174, %c0_175, %c0_176] : memref<2x1x32xf32, #tpu.memory_space<vmem>>, vector<1x1x32xf32>
    %420 = vector.shape_cast %419 : vector<1x1x32xf32> to vector<1x32xf32>
    %421 = vector.extract_strided_slice %414 {offsets = [0, 0], sizes = [32, 32], strides = [1, 1]} : vector<32x96xf32> to vector<32x32xf32>
    %cst_177 = arith.constant dense<0.000000e+00> : vector<16x32xf32>
    %422 = tpu.matmul %412, %421, %cst_177 {dimension_numbers = #tpu.dot_dimension_numbers<[1], [0], [0], [1], [0, 0, 1, 1], [], []>} : vector<16x32xf32>, vector<32x32xf32>, vector<16x32xf32> -> vector<16x32xf32>
    %423 = vector.extract_strided_slice %416 {offsets = [0, 0], sizes = [1, 32], strides = [1, 1]} : vector<1x96xf32> to vector<1x32xf32>
    %424 = vector.broadcast %423 : vector<1x32xf32> to vector<16x32xf32>
    %425 = arith.addf %422, %424 : vector<16x32xf32>
    %426 = vector.extract_strided_slice %414 {offsets = [0, 32], sizes = [32, 64], strides = [1, 1]} : vector<32x96xf32> to vector<32x64xf32>
    %cst_178 = arith.constant dense<0.000000e+00> : vector<16x64xf32>
    %427 = tpu.matmul %3, %426, %cst_178 {dimension_numbers = #tpu.dot_dimension_numbers<[1], [0], [0], [1], [0, 0, 1, 1], [], []>} : vector<16x32xf32>, vector<32x64xf32>, vector<16x64xf32> -> vector<16x64xf32>
    %428 = vector.extract_strided_slice %416 {offsets = [0, 32], sizes = [1, 64], strides = [1, 1]} : vector<1x96xf32> to vector<1x64xf32>
    %429 = vector.broadcast %428 : vector<1x64xf32> to vector<16x64xf32>
    %430 = arith.addf %427, %429 : vector<16x64xf32>
    %431 = vector.extract_strided_slice %430 {offsets = [0, 0], sizes = [16, 32], strides = [1, 1]} : vector<16x64xf32> to vector<16x32xf32>
    %432 = vector.extract_strided_slice %430 {offsets = [0, 32], sizes = [16, 32], strides = [1, 1]} : vector<16x64xf32> to vector<16x32xf32>
    %433 = vector.extract_strided_slice %425 {offsets = [0, 0], sizes = [8, 32], strides = [1, 1]} : vector<16x32xf32> to vector<8x32xf32>
    %434 = vector.extract_strided_slice %431 {offsets = [0, 0], sizes = [8, 32], strides = [1, 1]} : vector<16x32xf32> to vector<8x32xf32>
    %435 = vector.extract_strided_slice %433 {offsets = [0, 0], sizes = [8, 8], strides = [1, 1]} : vector<8x32xf32> to vector<8x8xf32>
    %436 = vector.extract_strided_slice %434 {offsets = [0, 0], sizes = [8, 8], strides = [1, 1]} : vector<8x32xf32> to vector<8x8xf32>
    %cst_179 = arith.constant dense<0.000000e+00> : vector<8x8xf32>
    %437 = tpu.matmul %435, %436, %cst_179 {dimension_numbers = #tpu.dot_dimension_numbers<[1], [1], [0], [0], [0, 0, 1, 0], [], []>} : vector<8x8xf32>, vector<8x8xf32>, vector<8x8xf32> -> vector<8x8xf32>
    %438 = vector.extract_strided_slice %433 {offsets = [0, 8], sizes = [8, 8], strides = [1, 1]} : vector<8x32xf32> to vector<8x8xf32>
    %439 = vector.extract_strided_slice %434 {offsets = [0, 8], sizes = [8, 8], strides = [1, 1]} : vector<8x32xf32> to vector<8x8xf32>
    %cst_180 = arith.constant dense<0.000000e+00> : vector<8x8xf32>
    %440 = tpu.matmul %438, %439, %cst_180 {dimension_numbers = #tpu.dot_dimension_numbers<[1], [1], [0], [0], [0, 0, 1, 0], [], []>} : vector<8x8xf32>, vector<8x8xf32>, vector<8x8xf32> -> vector<8x8xf32>
    %441 = vector.extract_strided_slice %433 {offsets = [0, 16], sizes = [8, 8], strides = [1, 1]} : vector<8x32xf32> to vector<8x8xf32>
    %442 = vector.extract_strided_slice %434 {offsets = [0, 16], sizes = [8, 8], strides = [1, 1]} : vector<8x32xf32> to vector<8x8xf32>
    %cst_181 = arith.constant dense<0.000000e+00> : vector<8x8xf32>
    %443 = tpu.matmul %441, %442, %cst_181 {dimension_numbers = #tpu.dot_dimension_numbers<[1], [1], [0], [0], [0, 0, 1, 0], [], []>} : vector<8x8xf32>, vector<8x8xf32>, vector<8x8xf32> -> vector<8x8xf32>
    %444 = vector.extract_strided_slice %433 {offsets = [0, 24], sizes = [8, 8], strides = [1, 1]} : vector<8x32xf32> to vector<8x8xf32>
    %445 = vector.extract_strided_slice %434 {offsets = [0, 24], sizes = [8, 8], strides = [1, 1]} : vector<8x32xf32> to vector<8x8xf32>
    %cst_182 = arith.constant dense<0.000000e+00> : vector<8x8xf32>
    %446 = tpu.matmul %444, %445, %cst_182 {dimension_numbers = #tpu.dot_dimension_numbers<[1], [1], [0], [0], [0, 0, 1, 0], [], []>} : vector<8x8xf32>, vector<8x8xf32>, vector<8x8xf32> -> vector<8x8xf32>
    %447 = vector.extract_strided_slice %425 {offsets = [8, 0], sizes = [8, 32], strides = [1, 1]} : vector<16x32xf32> to vector<8x32xf32>
    %448 = vector.extract_strided_slice %431 {offsets = [8, 0], sizes = [8, 32], strides = [1, 1]} : vector<16x32xf32> to vector<8x32xf32>
    %449 = vector.extract_strided_slice %447 {offsets = [0, 0], sizes = [8, 8], strides = [1, 1]} : vector<8x32xf32> to vector<8x8xf32>
    %450 = vector.extract_strided_slice %448 {offsets = [0, 0], sizes = [8, 8], strides = [1, 1]} : vector<8x32xf32> to vector<8x8xf32>
    %cst_183 = arith.constant dense<0.000000e+00> : vector<8x8xf32>
    %451 = tpu.matmul %449, %450, %cst_183 {dimension_numbers = #tpu.dot_dimension_numbers<[1], [1], [0], [0], [0, 0, 1, 0], [], []>} : vector<8x8xf32>, vector<8x8xf32>, vector<8x8xf32> -> vector<8x8xf32>
    %452 = vector.extract_strided_slice %447 {offsets = [0, 8], sizes = [8, 8], strides = [1, 1]} : vector<8x32xf32> to vector<8x8xf32>
    %453 = vector.extract_strided_slice %448 {offsets = [0, 8], sizes = [8, 8], strides = [1, 1]} : vector<8x32xf32> to vector<8x8xf32>
    %cst_184 = arith.constant dense<0.000000e+00> : vector<8x8xf32>
    %454 = tpu.matmul %452, %453, %cst_184 {dimension_numbers = #tpu.dot_dimension_numbers<[1], [1], [0], [0], [0, 0, 1, 0], [], []>} : vector<8x8xf32>, vector<8x8xf32>, vector<8x8xf32> -> vector<8x8xf32>
    %455 = vector.extract_strided_slice %447 {offsets = [0, 16], sizes = [8, 8], strides = [1, 1]} : vector<8x32xf32> to vector<8x8xf32>
    %456 = vector.extract_strided_slice %448 {offsets = [0, 16], sizes = [8, 8], strides = [1, 1]} : vector<8x32xf32> to vector<8x8xf32>
    %cst_185 = arith.constant dense<0.000000e+00> : vector<8x8xf32>
    %457 = tpu.matmul %455, %456, %cst_185 {dimension_numbers = #tpu.dot_dimension_numbers<[1], [1], [0], [0], [0, 0, 1, 0], [], []>} : vector<8x8xf32>, vector<8x8xf32>, vector<8x8xf32> -> vector<8x8xf32>
    %458 = vector.extract_strided_slice %447 {offsets = [0, 24], sizes = [8, 8], strides = [1, 1]} : vector<8x32xf32> to vector<8x8xf32>
    %459 = vector.extract_strided_slice %448 {offsets = [0, 24], sizes = [8, 8], strides = [1, 1]} : vector<8x32xf32> to vector<8x8xf32>
    %cst_186 = arith.constant dense<0.000000e+00> : vector<8x8xf32>
    %460 = tpu.matmul %458, %459, %cst_186 {dimension_numbers = #tpu.dot_dimension_numbers<[1], [1], [0], [0], [0, 0, 1, 0], [], []>} : vector<8x8xf32>, vector<8x8xf32>, vector<8x8xf32> -> vector<8x8xf32>
    %461 = tpu.concatenate %437, %440, %443, %446, %451, %454, %457, %460 in 0 : vector<8x8xf32>, vector<8x8xf32>, vector<8x8xf32>, vector<8x8xf32>, vector<8x8xf32>, vector<8x8xf32>, vector<8x8xf32>, vector<8x8xf32> -> vector<64x8xf32>
    %462 = arith.addf %461, %5 : vector<64x8xf32>
    %cst_187 = arith.constant dense<0xFF800000> : vector<64xf32>
    %463 = vector.multi_reduction <maximumf>, %462, %cst_187 [1] : vector<64x8xf32> to vector<64xf32>
    %464 = vector.shape_cast %463 : vector<64xf32> to vector<64x1xf32>
    %465 = vector.broadcast %464 : vector<64x1xf32> to vector<64x8xf32>
    %466 = arith.subf %462, %465 : vector<64x8xf32>
    %467 = math.exp %466 : vector<64x8xf32>
    %cst_188 = arith.constant dense<0.000000e+00> : vector<64xf32>
    %468 = vector.multi_reduction <add>, %467, %cst_188 [1] : vector<64x8xf32> to vector<64xf32>
    %469 = vector.shape_cast %468 : vector<64xf32> to vector<64x1xf32>
    %470 = vector.broadcast %469 : vector<64x1xf32> to vector<64x8xf32>
    %471 = arith.divf %467, %470 : vector<64x8xf32>
    %472 = vector.extract_strided_slice %432 {offsets = [0, 0], sizes = [8, 32], strides = [1, 1]} : vector<16x32xf32> to vector<8x32xf32>
    %473 = vector.extract_strided_slice %471 {offsets = [0, 0], sizes = [8, 8], strides = [1, 1]} : vector<64x8xf32> to vector<8x8xf32>
    %474 = vector.extract_strided_slice %472 {offsets = [0, 0], sizes = [8, 8], strides = [1, 1]} : vector<8x32xf32> to vector<8x8xf32>
    %cst_189 = arith.constant dense<0.000000e+00> : vector<8x8xf32>
    %475 = tpu.matmul %473, %474, %cst_189 {dimension_numbers = #tpu.dot_dimension_numbers<[1], [0], [0], [1], [0, 0, 1, 1], [], []>} : vector<8x8xf32>, vector<8x8xf32>, vector<8x8xf32> -> vector<8x8xf32>
    %476 = vector.extract_strided_slice %471 {offsets = [8, 0], sizes = [8, 8], strides = [1, 1]} : vector<64x8xf32> to vector<8x8xf32>
    %477 = arith.addf %473, %476 : vector<8x8xf32>
    %478 = vector.extract_strided_slice %472 {offsets = [0, 8], sizes = [8, 8], strides = [1, 1]} : vector<8x32xf32> to vector<8x8xf32>
    %cst_190 = arith.constant dense<0.000000e+00> : vector<8x8xf32>
    %479 = tpu.matmul %476, %478, %cst_190 {dimension_numbers = #tpu.dot_dimension_numbers<[1], [0], [0], [1], [0, 0, 1, 1], [], []>} : vector<8x8xf32>, vector<8x8xf32>, vector<8x8xf32> -> vector<8x8xf32>
    %480 = vector.extract_strided_slice %471 {offsets = [16, 0], sizes = [8, 8], strides = [1, 1]} : vector<64x8xf32> to vector<8x8xf32>
    %481 = arith.addf %477, %480 : vector<8x8xf32>
    %482 = vector.extract_strided_slice %472 {offsets = [0, 16], sizes = [8, 8], strides = [1, 1]} : vector<8x32xf32> to vector<8x8xf32>
    %cst_191 = arith.constant dense<0.000000e+00> : vector<8x8xf32>
    %483 = tpu.matmul %480, %482, %cst_191 {dimension_numbers = #tpu.dot_dimension_numbers<[1], [0], [0], [1], [0, 0, 1, 1], [], []>} : vector<8x8xf32>, vector<8x8xf32>, vector<8x8xf32> -> vector<8x8xf32>
    %484 = vector.extract_strided_slice %471 {offsets = [24, 0], sizes = [8, 8], strides = [1, 1]} : vector<64x8xf32> to vector<8x8xf32>
    %485 = arith.addf %481, %484 : vector<8x8xf32>
    %486 = vector.extract_strided_slice %472 {offsets = [0, 24], sizes = [8, 8], strides = [1, 1]} : vector<8x32xf32> to vector<8x8xf32>
    %cst_192 = arith.constant dense<0.000000e+00> : vector<8x8xf32>
    %487 = tpu.matmul %484, %486, %cst_192 {dimension_numbers = #tpu.dot_dimension_numbers<[1], [0], [0], [1], [0, 0, 1, 1], [], []>} : vector<8x8xf32>, vector<8x8xf32>, vector<8x8xf32> -> vector<8x8xf32>
    %488 = tpu.concatenate %475, %479, %483, %487 in 1 : vector<8x8xf32>, vector<8x8xf32>, vector<8x8xf32>, vector<8x8xf32> -> vector<8x32xf32>
    %cst_193 = arith.constant 2.500000e-01 : f32
    %489 = vector.broadcast %cst_193 : f32 to vector<8x8xf32>
    %490 = arith.mulf %485, %489 : vector<8x8xf32>
    %491 = vector.extract_strided_slice %432 {offsets = [8, 0], sizes = [8, 32], strides = [1, 1]} : vector<16x32xf32> to vector<8x32xf32>
    %492 = vector.extract_strided_slice %471 {offsets = [32, 0], sizes = [8, 8], strides = [1, 1]} : vector<64x8xf32> to vector<8x8xf32>
    %493 = vector.extract_strided_slice %491 {offsets = [0, 0], sizes = [8, 8], strides = [1, 1]} : vector<8x32xf32> to vector<8x8xf32>
    %cst_194 = arith.constant dense<0.000000e+00> : vector<8x8xf32>
    %494 = tpu.matmul %492, %493, %cst_194 {dimension_numbers = #tpu.dot_dimension_numbers<[1], [0], [0], [1], [0, 0, 1, 1], [], []>} : vector<8x8xf32>, vector<8x8xf32>, vector<8x8xf32> -> vector<8x8xf32>
    %495 = vector.extract_strided_slice %471 {offsets = [40, 0], sizes = [8, 8], strides = [1, 1]} : vector<64x8xf32> to vector<8x8xf32>
    %496 = arith.addf %492, %495 : vector<8x8xf32>
    %497 = vector.extract_strided_slice %491 {offsets = [0, 8], sizes = [8, 8], strides = [1, 1]} : vector<8x32xf32> to vector<8x8xf32>
    %cst_195 = arith.constant dense<0.000000e+00> : vector<8x8xf32>
    %498 = tpu.matmul %495, %497, %cst_195 {dimension_numbers = #tpu.dot_dimension_numbers<[1], [0], [0], [1], [0, 0, 1, 1], [], []>} : vector<8x8xf32>, vector<8x8xf32>, vector<8x8xf32> -> vector<8x8xf32>
    %499 = vector.extract_strided_slice %471 {offsets = [48, 0], sizes = [8, 8], strides = [1, 1]} : vector<64x8xf32> to vector<8x8xf32>
    %500 = arith.addf %496, %499 : vector<8x8xf32>
    %501 = vector.extract_strided_slice %491 {offsets = [0, 16], sizes = [8, 8], strides = [1, 1]} : vector<8x32xf32> to vector<8x8xf32>
    %cst_196 = arith.constant dense<0.000000e+00> : vector<8x8xf32>
    %502 = tpu.matmul %499, %501, %cst_196 {dimension_numbers = #tpu.dot_dimension_numbers<[1], [0], [0], [1], [0, 0, 1, 1], [], []>} : vector<8x8xf32>, vector<8x8xf32>, vector<8x8xf32> -> vector<8x8xf32>
    %503 = vector.extract_strided_slice %471 {offsets = [56, 0], sizes = [8, 8], strides = [1, 1]} : vector<64x8xf32> to vector<8x8xf32>
    %504 = arith.addf %500, %503 : vector<8x8xf32>
    %505 = vector.extract_strided_slice %491 {offsets = [0, 24], sizes = [8, 8], strides = [1, 1]} : vector<8x32xf32> to vector<8x8xf32>
    %cst_197 = arith.constant dense<0.000000e+00> : vector<8x8xf32>
    %506 = tpu.matmul %503, %505, %cst_197 {dimension_numbers = #tpu.dot_dimension_numbers<[1], [0], [0], [1], [0, 0, 1, 1], [], []>} : vector<8x8xf32>, vector<8x8xf32>, vector<8x8xf32> -> vector<8x8xf32>
    %507 = tpu.concatenate %494, %498, %502, %506 in 1 : vector<8x8xf32>, vector<8x8xf32>, vector<8x8xf32>, vector<8x8xf32> -> vector<8x32xf32>
    %cst_198 = arith.constant 2.500000e-01 : f32
    %508 = vector.broadcast %cst_198 : f32 to vector<8x8xf32>
    %509 = arith.mulf %504, %508 : vector<8x8xf32>
    %510 = tpu.concatenate %488, %507 in 0 : vector<8x32xf32>, vector<8x32xf32> -> vector<16x32xf32>
    %cst_199 = arith.constant dense<0.000000e+00> : vector<16x32xf32>
    %511 = tpu.matmul %510, %418, %cst_199 {dimension_numbers = #tpu.dot_dimension_numbers<[1], [0], [0], [1], [0, 0, 1, 1], [], []>} : vector<16x32xf32>, vector<32x32xf32>, vector<16x32xf32> -> vector<16x32xf32>
    %512 = vector.broadcast %420 : vector<1x32xf32> to vector<16x32xf32>
    %513 = arith.addf %511, %512 : vector<16x32xf32>
    %514 = arith.addf %412, %513 : vector<16x32xf32>
    %c4 = arith.constant 4 : index
    %c0_200 = arith.constant 0 : index
    %c0_201 = arith.constant 0 : index
    %515 = vector.load %arg12[%c4, %c0_200, %c0_201] : memref<6x1x32xf32, #tpu.memory_space<vmem>>, vector<1x1x32xf32>
    %516 = vector.shape_cast %515 : vector<1x1x32xf32> to vector<1x32xf32>
    %c4_202 = arith.constant 4 : index
    %c0_203 = arith.constant 0 : index
    %c0_204 = arith.constant 0 : index
    %517 = vector.load %arg13[%c4_202, %c0_203, %c0_204] : memref<6x1x32xf32, #tpu.memory_space<vmem>>, vector<1x1x32xf32>
    %518 = vector.shape_cast %517 : vector<1x1x32xf32> to vector<1x32xf32>
    %cst_205 = arith.constant dense<0.000000e+00> : vector<16xf32>
    %519 = vector.multi_reduction <add>, %514, %cst_205 [1] : vector<16x32xf32> to vector<16xf32>
    %520 = vector.shape_cast %519 : vector<16xf32> to vector<16x1xf32>
    %cst_206 = arith.constant 3.200000e+01 : f32
    %521 = vector.broadcast %cst_206 : f32 to vector<16x1xf32>
    %522 = arith.divf %520, %521 : vector<16x1xf32>
    %523 = vector.broadcast %522 : vector<16x1xf32> to vector<16x32xf32>
    %524 = arith.subf %514, %523 : vector<16x32xf32>
    %525 = arith.mulf %524, %524 : vector<16x32xf32>
    %cst_207 = arith.constant dense<0.000000e+00> : vector<16xf32>
    %526 = vector.multi_reduction <add>, %525, %cst_207 [1] : vector<16x32xf32> to vector<16xf32>
    %527 = vector.shape_cast %526 : vector<16xf32> to vector<16x1xf32>
    %cst_208 = arith.constant 3.200000e+01 : f32
    %528 = vector.broadcast %cst_208 : f32 to vector<16x1xf32>
    %529 = arith.divf %527, %528 : vector<16x1xf32>
    %cst_209 = arith.constant 9.99999997E-7 : f32
    %530 = vector.broadcast %cst_209 : f32 to vector<16x1xf32>
    %531 = arith.addf %529, %530 : vector<16x1xf32>
    %532 = math.rsqrt %531 : vector<16x1xf32>
    %533 = vector.broadcast %532 : vector<16x1xf32> to vector<16x32xf32>
    %534 = arith.mulf %524, %533 : vector<16x32xf32>
    %535 = vector.broadcast %516 : vector<1x32xf32> to vector<16x32xf32>
    %536 = arith.mulf %534, %535 : vector<16x32xf32>
    %537 = vector.broadcast %518 : vector<1x32xf32> to vector<16x32xf32>
    %538 = arith.addf %536, %537 : vector<16x32xf32>
    %c1_210 = arith.constant 1 : index
    %c0_211 = arith.constant 0 : index
    %c0_212 = arith.constant 0 : index
    %539 = vector.load %arg14[%c1_210, %c0_211, %c0_212] : memref<2x32x64xf32, #tpu.memory_space<vmem>>, vector<1x32x64xf32>
    %540 = vector.shape_cast %539 : vector<1x32x64xf32> to vector<32x64xf32>
    %cst_213 = arith.constant dense<0.000000e+00> : vector<16x64xf32>
    %541 = tpu.matmul %538, %540, %cst_213 {dimension_numbers = #tpu.dot_dimension_numbers<[1], [0], [0], [1], [0, 0, 1, 1], [], []>} : vector<16x32xf32>, vector<32x64xf32>, vector<16x64xf32> -> vector<16x64xf32>
    %c1_214 = arith.constant 1 : index
    %c0_215 = arith.constant 0 : index
    %c0_216 = arith.constant 0 : index
    %542 = vector.load %arg15[%c1_214, %c0_215, %c0_216] : memref<2x1x64xf32, #tpu.memory_space<vmem>>, vector<1x1x64xf32>
    %543 = vector.shape_cast %542 : vector<1x1x64xf32> to vector<1x64xf32>
    %544 = vector.broadcast %543 : vector<1x64xf32> to vector<16x64xf32>
    %545 = arith.addf %541, %544 : vector<16x64xf32>
    %cst_217 = arith.constant 0.000000e+00 : f32
    %546 = vector.broadcast %cst_217 : f32 to vector<16x64xf32>
    %547 = arith.maximumf %545, %546 : vector<16x64xf32>
    %c1_218 = arith.constant 1 : index
    %c0_219 = arith.constant 0 : index
    %c0_220 = arith.constant 0 : index
    %548 = vector.load %arg16[%c1_218, %c0_219, %c0_220] : memref<2x64x32xf32, #tpu.memory_space<vmem>>, vector<1x64x32xf32>
    %549 = vector.shape_cast %548 : vector<1x64x32xf32> to vector<64x32xf32>
    %cst_221 = arith.constant dense<0.000000e+00> : vector<16x32xf32>
    %550 = tpu.matmul %547, %549, %cst_221 {dimension_numbers = #tpu.dot_dimension_numbers<[1], [0], [0], [1], [0, 0, 1, 1], [], []>} : vector<16x64xf32>, vector<64x32xf32>, vector<16x32xf32> -> vector<16x32xf32>
    %c1_222 = arith.constant 1 : index
    %c0_223 = arith.constant 0 : index
    %c0_224 = arith.constant 0 : index
    %551 = vector.load %arg17[%c1_222, %c0_223, %c0_224] : memref<2x1x32xf32, #tpu.memory_space<vmem>>, vector<1x1x32xf32>
    %552 = vector.shape_cast %551 : vector<1x1x32xf32> to vector<1x32xf32>
    %553 = vector.broadcast %552 : vector<1x32xf32> to vector<16x32xf32>
    %554 = arith.addf %550, %553 : vector<16x32xf32>
    %555 = arith.addf %538, %554 : vector<16x32xf32>
    %c5 = arith.constant 5 : index
    %c0_225 = arith.constant 0 : index
    %c0_226 = arith.constant 0 : index
    %556 = vector.load %arg12[%c5, %c0_225, %c0_226] : memref<6x1x32xf32, #tpu.memory_space<vmem>>, vector<1x1x32xf32>
    %557 = vector.shape_cast %556 : vector<1x1x32xf32> to vector<1x32xf32>
    %c5_227 = arith.constant 5 : index
    %c0_228 = arith.constant 0 : index
    %c0_229 = arith.constant 0 : index
    %558 = vector.load %arg13[%c5_227, %c0_228, %c0_229] : memref<6x1x32xf32, #tpu.memory_space<vmem>>, vector<1x1x32xf32>
    %559 = vector.shape_cast %558 : vector<1x1x32xf32> to vector<1x32xf32>
    %cst_230 = arith.constant dense<0.000000e+00> : vector<16xf32>
    %560 = vector.multi_reduction <add>, %555, %cst_230 [1] : vector<16x32xf32> to vector<16xf32>
    %561 = vector.shape_cast %560 : vector<16xf32> to vector<16x1xf32>
    %cst_231 = arith.constant 3.200000e+01 : f32
    %562 = vector.broadcast %cst_231 : f32 to vector<16x1xf32>
    %563 = arith.divf %561, %562 : vector<16x1xf32>
    %564 = vector.broadcast %563 : vector<16x1xf32> to vector<16x32xf32>
    %565 = arith.subf %555, %564 : vector<16x32xf32>
    %566 = arith.mulf %565, %565 : vector<16x32xf32>
    %cst_232 = arith.constant dense<0.000000e+00> : vector<16xf32>
    %567 = vector.multi_reduction <add>, %566, %cst_232 [1] : vector<16x32xf32> to vector<16xf32>
    %568 = vector.shape_cast %567 : vector<16xf32> to vector<16x1xf32>
    %cst_233 = arith.constant 3.200000e+01 : f32
    %569 = vector.broadcast %cst_233 : f32 to vector<16x1xf32>
    %570 = arith.divf %568, %569 : vector<16x1xf32>
    %cst_234 = arith.constant 9.99999997E-7 : f32
    %571 = vector.broadcast %cst_234 : f32 to vector<16x1xf32>
    %572 = arith.addf %570, %571 : vector<16x1xf32>
    %573 = math.rsqrt %572 : vector<16x1xf32>
    %574 = vector.broadcast %573 : vector<16x1xf32> to vector<16x32xf32>
    %575 = arith.mulf %565, %574 : vector<16x32xf32>
    %576 = vector.broadcast %557 : vector<1x32xf32> to vector<16x32xf32>
    %577 = arith.mulf %575, %576 : vector<16x32xf32>
    %578 = vector.broadcast %559 : vector<1x32xf32> to vector<16x32xf32>
    %579 = arith.addf %577, %578 : vector<16x32xf32>
    %580 = vector.extract_strided_slice %579 {offsets = [0, 0], sizes = [8, 32], strides = [1, 1]} : vector<16x32xf32> to vector<8x32xf32>
    %581 = vector.extract_strided_slice %579 {offsets = [8, 0], sizes = [8, 32], strides = [1, 1]} : vector<16x32xf32> to vector<8x32xf32>
    %582 = tpu.concatenate %580, %581 in 1 : vector<8x32xf32>, vector<8x32xf32> -> vector<8x64xf32>
    %c0_235 = arith.constant 0 : index
    %c0_236 = arith.constant 0 : index
    %c0_237 = arith.constant 0 : index
    %583 = vector.load %arg18[%c0_235, %c0_236, %c0_237] : memref<1x8x64xf32, #tpu.memory_space<vmem>>, vector<1x8x64xf32>
    %584 = vector.shape_cast %583 : vector<1x8x64xf32> to vector<8x64xf32>
    %585 = vector.shape_cast %582 : vector<8x64xf32> to vector<1x8x64xf32>
    tpu.vector_store %arg18[%c0_235, %c0_236, %c0_237], %585 {strides = array<i32>} : memref<1x8x64xf32, #tpu.memory_space<vmem>>, vector<1x8x64xf32>,
    %586 = tpu.concatenate %77, %203, %364, %490, %96, %222, %383, %509 in 1 : vector<8x8xf32>, vector<8x8xf32>, vector<8x8xf32>, vector<8x8xf32>, vector<8x8xf32>, vector<8x8xf32>, vector<8x8xf32>, vector<8x8xf32> -> vector<8x64xf32>
    %c0_238 = arith.constant 0 : index
    %c0_239 = arith.constant 0 : index
    %c0_240 = arith.constant 0 : index
    %587 = vector.load %arg19[%c0_238, %c0_239, %c0_240] : memref<1x8x64xf32, #tpu.memory_space<vmem>>, vector<1x8x64xf32>
    %588 = vector.shape_cast %587 : vector<1x8x64xf32> to vector<8x64xf32>
    %589 = vector.shape_cast %586 : vector<8x64xf32> to vector<1x8x64xf32>
    tpu.vector_store %arg19[%c0_238, %c0_239, %c0_240], %589 {strides = array<i32>} : memref<1x8x64xf32, #tpu.memory_space<vmem>>, vector<1x8x64xf32>,
    return
  }
  func.func @transform_0(%arg0: i32) -> (i32, i32, i32) {
    %c0_i32 = arith.constant 0 : i32
    %c0_i32_0 = arith.constant 0 : i32
    %c0_i32_1 = arith.constant 0 : i32
    return %arg0, %c0_i32, %c0_i32_0 : i32, i32, i32
  }
  func.func @transform_1(%arg0: i32) -> (i32, i32, i32) {
    %c0_i32 = arith.constant 0 : i32
    %c0_i32_0 = arith.constant 0 : i32
    %c0_i32_1 = arith.constant 0 : i32
    return %arg0, %c0_i32, %c0_i32_0 : i32, i32, i32
  }
  func.func @transform_2(%arg0: i32) -> (i32, i32) {
    %c0_i32 = arith.constant 0 : i32
    %c0_i32_0 = arith.constant 0 : i32
    %c0_i32_1 = arith.constant 0 : i32
    return %c0_i32, %c0_i32_0 : i32, i32
  }
  func.func @transform_3(%arg0: i32) -> (i32, i32, i32) {
    %c0_i32 = arith.constant 0 : i32
    %c0_i32_0 = arith.constant 0 : i32
    %c0_i32_1 = arith.constant 0 : i32
    %c0_i32_2 = arith.constant 0 : i32
    return %c0_i32, %c0_i32_0, %c0_i32_1 : i32, i32, i32
  }
  func.func @transform_4(%arg0: i32) -> (i32, i32, i32) {
    %c0_i32 = arith.constant 0 : i32
    %c0_i32_0 = arith.constant 0 : i32
    %c0_i32_1 = arith.constant 0 : i32
    %c0_i32_2 = arith.constant 0 : i32
    return %c0_i32, %c0_i32_0, %c0_i32_1 : i32, i32, i32
  }
  func.func @transform_5(%arg0: i32) -> (i32, i32, i32) {
    %c0_i32 = arith.constant 0 : i32
    %c0_i32_0 = arith.constant 0 : i32
    %c0_i32_1 = arith.constant 0 : i32
    %c0_i32_2 = arith.constant 0 : i32
    return %c0_i32, %c0_i32_0, %c0_i32_1 : i32, i32, i32
  }
  func.func @transform_6(%arg0: i32) -> (i32, i32, i32) {
    %c0_i32 = arith.constant 0 : i32
    %c0_i32_0 = arith.constant 0 : i32
    %c0_i32_1 = arith.constant 0 : i32
    %c0_i32_2 = arith.constant 0 : i32
    return %c0_i32, %c0_i32_0, %c0_i32_1 : i32, i32, i32
  }
  func.func @transform_7(%arg0: i32) -> (i32, i32, i32) {
    %c0_i32 = arith.constant 0 : i32
    %c0_i32_0 = arith.constant 0 : i32
    %c0_i32_1 = arith.constant 0 : i32
    %c0_i32_2 = arith.constant 0 : i32
    return %c0_i32, %c0_i32_0, %c0_i32_1 : i32, i32, i32
  }
  func.func @transform_8(%arg0: i32) -> (i32, i32, i32) {
    %c0_i32 = arith.constant 0 : i32
    %c0_i32_0 = arith.constant 0 : i32
    %c0_i32_1 = arith.constant 0 : i32
    %c0_i32_2 = arith.constant 0 : i32
    return %c0_i32, %c0_i32_0, %c0_i32_1 : i32, i32, i32
  }
  func.func @transform_9(%arg0: i32) -> (i32, i32, i32) {
    %c0_i32 = arith.constant 0 : i32
    %c0_i32_0 = arith.constant 0 : i32
    %c0_i32_1 = arith.constant 0 : i32
    %c0_i32_2 = arith.constant 0 : i32
    return %c0_i32, %c0_i32_0, %c0_i32_1 : i32, i32, i32
  }
  func.func @transform_10(%arg0: i32) -> (i32, i32, i32) {
    %c0_i32 = arith.constant 0 : i32
    %c0_i32_0 = arith.constant 0 : i32
    %c0_i32_1 = arith.constant 0 : i32
    %c0_i32_2 = arith.constant 0 : i32
    return %c0_i32, %c0_i32_0, %c0_i32_1 : i32, i32, i32
  }
  func.func @transform_11(%arg0: i32) -> (i32, i32, i32) {
    %c0_i32 = arith.constant 0 : i32
    %c0_i32_0 = arith.constant 0 : i32
    %c0_i32_1 = arith.constant 0 : i32
    %c0_i32_2 = arith.constant 0 : i32
    return %c0_i32, %c0_i32_0, %c0_i32_1 : i32, i32, i32
  }
  func.func @transform_12(%arg0: i32) -> (i32, i32, i32) {
    %c0_i32 = arith.constant 0 : i32
    %c0_i32_0 = arith.constant 0 : i32
    %c0_i32_1 = arith.constant 0 : i32
    %c0_i32_2 = arith.constant 0 : i32
    return %c0_i32, %c0_i32_0, %c0_i32_1 : i32, i32, i32
  }
  func.func @transform_13(%arg0: i32) -> (i32, i32, i32) {
    %c0_i32 = arith.constant 0 : i32
    %c0_i32_0 = arith.constant 0 : i32
    %c0_i32_1 = arith.constant 0 : i32
    %c0_i32_2 = arith.constant 0 : i32
    return %c0_i32, %c0_i32_0, %c0_i32_1 : i32, i32, i32
  }
  func.func @transform_14(%arg0: i32) -> (i32, i32, i32) {
    %c0_i32 = arith.constant 0 : i32
    %c0_i32_0 = arith.constant 0 : i32
    %c0_i32_1 = arith.constant 0 : i32
    %c0_i32_2 = arith.constant 0 : i32
    return %c0_i32, %c0_i32_0, %c0_i32_1 : i32, i32, i32
  }
  func.func @transform_15(%arg0: i32) -> (i32, i32, i32) {
    %c0_i32 = arith.constant 0 : i32
    %c0_i32_0 = arith.constant 0 : i32
    %c0_i32_1 = arith.constant 0 : i32
    %c0_i32_2 = arith.constant 0 : i32
    return %c0_i32, %c0_i32_0, %c0_i32_1 : i32, i32, i32
  }
  func.func @transform_16(%arg0: i32) -> (i32, i32, i32) {
    %c0_i32 = arith.constant 0 : i32
    %c0_i32_0 = arith.constant 0 : i32
    %c0_i32_1 = arith.constant 0 : i32
    %c0_i32_2 = arith.constant 0 : i32
    return %c0_i32, %c0_i32_0, %c0_i32_1 : i32, i32, i32
  }
  func.func @transform_17(%arg0: i32) -> (i32, i32, i32) {
    %c0_i32 = arith.constant 0 : i32
    %c0_i32_0 = arith.constant 0 : i32
    %c0_i32_1 = arith.constant 0 : i32
    return %arg0, %c0_i32, %c0_i32_0 : i32, i32, i32
  }
  func.func @transform_18(%arg0: i32) -> (i32, i32, i32) {
    %c0_i32 = arith.constant 0 : i32
    %c0_i32_0 = arith.constant 0 : i32
    %c0_i32_1 = arith.constant 0 : i32
    return %arg0, %c0_i32, %c0_i32_0 : i32, i32, i32
  }
}

</mosaic_0001>

<bundles_post_ra>
// kernel: decoder_forward.1
= control target key start
LH: loop header
LB: loop body
LE: loop exit
PB: predicated region body
PF: predicated region fallthrough
CT: control target
= control target key end

     0   :  { %s4906_s27 = smov 0   ;;  %s6164_s0 = inlined_call_operand.vmem [shape: f32[4,8,32], index: 0, kind: input, shape index: {}]   ;;  %s6165_s1 = inlined_call_operand.vmem [shape: f32[4,8,32], index: 1, kind: input, shape index: {}]   ;;  %s6166_s2 = inlined_call_operand.vmem [shape: f32[8,8], index: 2, kind: input, shape index: {}]   ;;  %s6167_s3 = inlined_call_operand.vmem [shape: f32[2,32,96], index: 3, kind: input, shape index: {}]   ;;  %s6168_s4 = inlined_call_operand.vmem [shape: f32[2,1,96], index: 4, kind: input, shape index: {}]   ;;  %s6169_s5 = inlined_call_operand.vmem [shape: f32[2,32,32], index: 5, kind: input, shape index: {}]   ;;  %s6170_s6 = inlined_call_operand.vmem [shape: f32[2,1,32], index: 6, kind: input, shape index: {}]   ;;  %s6171_s7 = inlined_call_operand.vmem [shape: f32[2,32,96], index: 7, kind: input, shape index: {}]   ;;  %s6172_s8 = inlined_call_operand.vmem [shape: f32[2,1,96], index: 8, kind: input, shape index: {}]   ;;  %s6173_s9 = inlined_call_operand.vmem [shape: f32[2,32,32], index: 9, kind: input, shape index: {}]   ;;  %s6174_s10 = inlined_call_operand.vmem [shape: f32[2,1,32], index: 10, kind: input, shape index: {}]   ;;  %s6175_s11 = inlined_call_operand.vmem [shape: f32[6,1,32], index: 11, kind: input, shape index: {}]   ;;  %s6176_s12 = inlined_call_operand.vmem [shape: f32[6,1,32], index: 12, kind: input, shape index: {}]   ;;  %s6177_s13 = inlined_call_operand.vmem [shape: f32[2,32,64], index: 13, kind: input, shape index: {}]   ;;  %s6178_s14 = inlined_call_operand.vmem [shape: f32[2,1,64], index: 14, kind: input, shape index: {}]   ;;  %s6179_s15 = inlined_call_operand.vmem [shape: f32[2,64,32], index: 15, kind: input, shape index: {}]   ;;  %s6180_s16 = inlined_call_operand.vmem [shape: f32[2,1,32], index: 16, kind: input, shape index: {}]   ;;  %s6181_s17 = inlined_call_operand.vmem [shape: f32[2,8,64], index: 17, kind: output, shape index: {0}]   ;;  %s6182_s18 = inlined_call_operand.vmem [shape: f32[2,8,64], index: 18, kind: output, shape index: {1}]  }
   0x1   :  { %6218 = sst [smem:[#allocation5_spill]] %s6164_s0 }
   0x2   :  { %6219 = sst [smem:[#allocation6_spill]] %s6165_s1 }
   0x3   :  { %6220 = sst [smem:[#allocation7_spill]] %s6166_s2 }
   0x4   :  { %6221 = sst [smem:[#allocation8_spill]] %s6167_s3 }
   0x5   :  { %6222 = sst [smem:[#allocation9_spill]] %s6168_s4 }
   0x6   :  { %6223 = sst [smem:[#allocation10_spill]] %s6172_s8 }
   0x7   :  { %6224 = sst [smem:[#allocation11_spill]] %s6181_s17 }
   0x8   :  { %6225 = sst [smem:[#allocation12_spill]] %s6182_s18 }
   0x9 LB: > { %6226 = sst [smem:[#allocation2_spill]] %s4793_s27  ;;  %s4912_s28 = sadd.s32 4294967295, %s4793_s27   ;;  %s4793_s27 = sphi %s4906_s27, %s29_s27  }
   0xa   : > { %6227 = sst [smem:[#allocation3_spill]] %s4912_s28  ;;  %p4355_p0 = scmp.ge.s32.totalorder %s4793_s27, 1 }
   0xb   : > { %p527_p1 = scmp.lt.s32.totalorder %s4793_s27, 3 }
   0xd   : > { %p528_p2 = pnand %p4355_p0, %p527_p1 }
   0xf   : > { %531 = sbr.rel (%p528_p2) target bundleno = 6490 (0x195a), region = 88 }
  0x14   : > { %s6228_s3 = sld [smem:[#allocation8_spill]]  ;;  %s4356_s1 = sshll.u32 %s4912_s28, 1  ;;  %vm627_vm0 = vcmask 261120   ;;  %vm660_vm1 = vcmask 64512  }
  0x15   : > { %p590_p3 = scmp.lt.s32.totalorder %s4356_s1, 3  ;;  %s6229_s26 = sld [smem:[#allocation5_spill]] }
  0x16   : > { %s6230_s4 = sld [smem:[#allocation9_spill]]  ;;  %s6194_s19 = smov 80  }
  0x17   : > { %s6269_s1 = smov (!%p590_p3, %s4356_s1), 3  ;;  %s6208_s20 = smov 96  }
  0x18   : > { %s4357_s23 = sshll.u32 %s6269_s1, 3  ;;  %s6196_s21 = smov 88  }
  0x19   : > { %s6184_s22 = smov 72   ;;  %s6202_s2 = smov 120  }
  0x1a   : > { %v617_v0 = vld [vmem:[%s6228_s3 + $0x18] sm:$0xff]  ;;  %v616_v1 = vld [vmem:[%s6228_s3 + $0x10] sm:$0xff]  ;;  %v615_v2 = vld [vmem:[%s6228_s3 + $0x8] sm:$0xff]  ;;  %s6198_s24 = smov 104   ;;  %s6200_s25 = smov 112  }
  0x1b   : > { %646 = vmatpush.msra.mxu0 %v617_v0  ;;  %v614_v3 = vld [vmem:[%s6228_s3] sm:$0xff]  ;;  %s593_s29 = scalar_lea.vmem %s6229_s26, %s4357_s23  ;;  %s6231_s30 = sld [smem:[#allocation7_spill]] }
  0x1c   : > { %v4937_v4 = vld [vmem:[%s593_s29] sm:$0xff]  ;;  %v4941_v5 = vld [vmem:[%s593_s29 + $0x8] sm:$0xff]  ;;  %s6192_s0 = smov 40   ;;  %s6190_s26 = smov 48  }
  0x1d   : > { %647 = vmatpush.msra.mxu0 %v616_v1  ;;  %v4606_v6 = vld [vmem:[%s6230_s4] ss:$0 sm:$0xff]  ;;  %s6188_s29 = smov 56   ;;  %s6236_s8 = sld [smem:[#allocation10_spill]] }
  0x1e   : > { %s6244_s1 = smov 72   ;;  %s6251_s28 = smov 96  }
  0x1f   : > { %648 = vmatpush.msra.mxu0 %v615_v2  ;;  %s6255_s17 = smov 64   ;;  %s6260_s18 = smov 24  }
  0x20   : > { %s6261_s27 = sld [smem:[#allocation10_spill]] }
  0x21   : > { %649 = vmatpush.msra.mxu0 %v614_v3  ;;  %v5001_v26 = vld [vmem:[%s6231_s30] sm:$0xff] }
  0x22   : > { %4362 = vmatmul.msk.f32.vlgmr.msra.gmra.mxu0 %vm627_vm0, %v4937_v4 }
  0x2a   : > { %4363 = vmatmul.msk.f32.gmra.mxu0 %vm627_vm0, %v4941_v5 }
  0x9f   : > { %v651_v7 = vpop.f32.mrf.mxu0 }
  0xa0   : > { %v4948_v8 = vadd.f32 %v4606_v6, %v651_v7 }
  0xa2   : > { %715 = vrot.lane.b32.xlu2 %v4948_v8, %s6194_s19  ;;  %658 = vrot.lane.b32.xlu1 %v4948_v8, %s6208_s20 }
  0xa3   : > { %687 = vrot.lane.b32.xlu0 %v4948_v8, %s6196_s21 }
  0xa7   : > { %v654_v9 = vpop.f32.mrf.mxu0 }
  0xa8   : > { %v4956_v10 = vadd.f32 %v4606_v6, %v654_v9 }
  0xaa   : > { %743 = vrot.lane.b32.xlu2 %v4948_v8, %s6184_s22  ;;  %770 = vrot.lane.b32.xlu1 %v4956_v10, %s6208_s20 }
  0xab   : > { %685 = vrot.lane.b32.xlu0 %v4948_v8, %s6202_s2 }
  0xb2   : > { %741 = vrot.lane.b32.xlu2 %v4948_v8, %s6198_s24  ;;  %854 = vrot.lane.b32.xlu1 %v4956_v10, %s6184_s22  ;;  %s6186_s22 = smov 64  }
  0xb3   : > { %713 = vrot.lane.b32.xlu0 %v4948_v8, %s6200_s25 }
  0xba   : > { %796 = vrot.lane.b32.xlu2 %v4956_v10, %s6202_s2  ;;  %798 = vrot.lane.b32.xlu1 %v4956_v10, %s6196_s21  ;;  %s6240_s2 = smov 112   ;;  %s6253_s21 = smov 48  }
  0xbb   : > { %852 = vrot.lane.b32.xlu0 %v4956_v10, %s6198_s24  ;;  %s6241_s24 = smov 104  }
  0xc2   : > { %824 = vrot.lane.b32.xlu1 %v4956_v10, %s6200_s25  ;;  %s6242_s25 = smov 88  }
  0xc3   : > { %826 = vrot.lane.b32.xlu0 %v4956_v10, %s6194_s19  ;;  %s6249_s19 = smov 8  }
  0xfc   : > { %v716_v11 = vpop.permute.xlu2 %715 }
  0xfd   : > { %4368 = vmatpush.xpose.msk.msra.mxu3 %vm660_vm1, %v716_v11 }
 0x104   : > { %v744_v13 = vpop.permute.xlu2 %743 }
 0x10c   : > { %v742_v17 = vpop.permute.xlu2 %741 }
 0x114   : > { %v659_v12 = vpop.permute.xlu1 %658  ;;  %v797_v22 = vpop.permute.xlu2 %796 }
 0x115   : > { %v688_v14 = vpop.permute.xlu0 %687  ;;  %4364 = vmatpush.xpose.msk.msra.mxu1 %vm660_vm1, %v659_v12 }
 0x116   : > { %4366 = vmatpush.xpose.msk.msra.mxu2 %vm660_vm1, %v688_v14 }
 0x118   : > { %4365 = vmatmul.msk.f32.vlgmr.msra.gmra.mxu1 %vm660_vm1, %v4948_v8 }
 0x119   : > { %4370 = vmatpush.xpose.msk.msrb.mxu1 %vm660_vm1, %v744_v13 }
 0x11c   : > { %v771_v15 = vpop.permute.xlu1 %770 }
 0x11d   : > { %v686_v16 = vpop.permute.xlu0 %685  ;;  %4372 = vmatpush.xpose.msk.msrb.mxu2 %vm660_vm1, %v771_v15 }
 0x11e   : > { %4367 = vmatmul.msk.f32.vlgmr.msra.gmra.mxu2 %vm660_vm1, %v686_v16 }
 0x120   : > { %4371 = vmatmul.msk.f32.vlgmr.msrb.gmra.mxu1 %vm660_vm1, %v742_v17 }
 0x124   : > { %v855_v18 = vpop.permute.xlu1 %854 }
 0x125   : > { %v714_v19 = vpop.permute.xlu0 %713  ;;  %4378 = vmatpush.xpose.msk.msra.mxu2 %vm660_vm1, %v855_v18 }
 0x126   : > { %4369 = vmatmul.msk.f32.vlgmr.msra.gmra.mxu3 %vm660_vm1, %v714_v19  ;;  %4373 = vmatmul.msk.f32.vlgmr.msrb.gmra.mxu2 %vm660_vm1, %v4956_v10 }
 0x12c   : > { %v799_v20 = vpop.permute.xlu1 %798 }
 0x12d   : > { %v853_v21 = vpop.permute.xlu0 %852  ;;  %4374 = vmatpush.xpose.msk.msrb.mxu3 %vm660_vm1, %v799_v20  ;;  %v4556_v20 = vpack.i.bf16 %v4956_v10, %v4948_v8 }
 0x12e   : > { %4379 = vmatmul.msk.f32.vlgmr.msra.gmra.mxu2 %vm660_vm1, %v853_v21 }
 0x130   : > { %4375 = vmatmul.msk.f32.vlgmr.msrb.gmra.mxu3 %vm660_vm1, %v797_v22 }
 0x134   : > { %v825_v24 = vpop.permute.xlu1 %824 }
 0x135   : > { %v827_v23 = vpop.permute.xlu0 %826 }
 0x136   : > { %4376 = vmatpush.xpose.msk.msra.mxu1 %vm660_vm1, %v827_v23 }
 0x139   : > { %4377 = vmatmul.msk.f32.vlgmr.msra.gmra.mxu1 %vm660_vm1, %v825_v24 }
 0x195   : > { %v682_v25 = vpop.f32.mrf.mxu1 }
 0x196   : > { %v5010_v37 = vadd.f32 %v682_v25, %v5001_v26 }
 0x198   : > { %v888_v40 = vsel %vm660_vm1, %v5010_v37, -inf }
 0x19d   : > { %v766_v27 = vpop.f32.mrf.mxu1 }
 0x19e   : > { %v883_v28 = vadd.f32 %v766_v27, %v5001_v26 }
 0x1a0   : > { %v897_v29 = vsel %vm660_vm1, %v883_v28, -inf }
 0x1a1   : > { %v710_v30 = vpop.f32.mrf.mxu2  ;;  %898 = vmax.xlane.f32.xlu2 %v897_v29 }
 0x1a2   : > { %v881_v31 = vadd.f32 %v710_v30, %v5001_v26 }
 0x1a4   : > { %v891_v32 = vsel %vm660_vm1, %v881_v31, -inf }
 0x1a5   : > { %892 = vmax.xlane.f32.xlu0 %v891_v32 }
 0x1a9   : > { %v738_v33 = vpop.f32.mrf.mxu3  ;;  %v793_v34 = vpop.f32.mrf.mxu2 }
 0x1aa   : > { %v882_v35 = vadd.f32 %v738_v33, %v5001_v26  ;;  %v884_v48 = vadd.f32 %v793_v34, %v5001_v26 }
 0x1ac   : > { %v894_v36 = vsel %vm660_vm1, %v882_v35, -inf  ;;  %v900_v49 = vsel %vm660_vm1, %v884_v48, -inf }
 0x1ad   : > { %895 = vmax.xlane.f32.xlu1 %v894_v36 }
 0x1b1   : > { %v877_v38 = vpop.f32.mrf.mxu2 }
 0x1b2   : > { %v887_v39 = vadd.f32 %v877_v38, %v5001_v26 }
 0x1b3   : > { %v821_v42 = vpop.f32.mrf.mxu3 }
 0x1b4   : > { %v909_v41 = vsel %vm660_vm1, %v887_v39, -inf  ;;  %v885_v45 = vadd.f32 %v821_v42, %v5001_v26 }
 0x1b5   : > { %889 = vmax.xlane.f32.xlu1 %v888_v40  ;;  %910 = vmax.xlane.f32.xlu2 %v909_v41 }
 0x1b6   : > { %v849_v43 = vpop.f32.mrf.mxu1  ;;  %v903_v47 = vsel %vm660_vm1, %v885_v45, -inf }
 0x1b7   : > { %v886_v44 = vadd.f32 %v849_v43, %v5001_v26 }
 0x1b9   : > { %v906_v46 = vsel %vm660_vm1, %v886_v44, -inf }
 0x1ba   : > { %907 = vmax.xlane.f32.xlu0 %v906_v46 }
 0x1bd   : > { %904 = vmax.xlane.f32.xlu2 %v903_v47 }
 0x1c5   : > { %901 = vmax.xlane.f32.xlu2 %v900_v49 }
 0x214   : > { %v899_v50 = vpop.xlane.xlu2 %898 }
 0x215   : > { %v915_v51 = vsub.f32 %v883_v28, %v899_v50 }
 0x217   : > { %v926_v52 = vmul.f32 1.442695, %v915_v51 }
 0x218   : > { %v893_v53 = vpop.xlane.xlu0 %892 }
 0x219   : > { %4630 = vpow2.f32 %v926_v52  ;;  %v913_v54 = vsub.f32 %v881_v31, %v893_v53 }
 0x21b   : > { %v922_v55 = vmul.f32 1.442695, %v913_v54 }
 0x21d   : > { %4632 = vpow2.f32 %v922_v55 }
 0x21f   : > { %v5022_v56 = vpop.eup %4630 }
 0x220   : > { %v896_v57 = vpop.xlane.xlu1 %895  ;;  %v945_v58 = vsel %vm660_vm1, %v5022_v56, 0.0 }
 0x221   : > { %v914_v59 = vsub.f32 %v882_v35, %v896_v57  ;;  %946 = vadd.xlane.f32.xlu0 %v945_v58 }
 0x223   : > { %v5026_v60 = vpop.eup %4632  ;;  %v924_v61 = vmul.f32 1.442695, %v914_v59 }
 0x224   : > { %v939_v62 = vsel %vm660_vm1, %v5026_v60, 0.0 }
 0x225   : > { %4634 = vpow2.f32 %v924_v61  ;;  %940 = vadd.xlane.f32.xlu1 %v939_v62 }
 0x228   : > { %v911_v63 = vpop.xlane.xlu2 %910  ;;  %v890_v21 = vpop.xlane.xlu1 %889 }
 0x229   : > { %v919_v0 = vsub.f32 %v887_v39, %v911_v63  ;;  %v912_v22 = vsub.f32 %v5010_v37, %v890_v21 }
 0x22b   : > { %v5030_v1 = vpop.eup %4634  ;;  %v934_v2 = vmul.f32 1.442695, %v919_v0  ;;  %v920_v23 = vmul.f32 1.442695, %v912_v22 }
 0x22c   : > { %v942_v3 = vsel %vm660_vm1, %v5030_v1, 0.0 }
 0x22d   : > { %943 = vadd.xlane.f32.xlu2 %v942_v3  ;;  %v908_v6 = vpop.xlane.xlu0 %907  ;;  %4636 = vpow2.f32 %v934_v2 }
 0x22e   : > { %v918_v7 = vsub.f32 %v886_v44, %v908_v6 }
 0x230   : > { %v932_v9 = vmul.f32 1.442695, %v918_v7  ;;  %v905_v11 = vpop.xlane.xlu2 %904 }
 0x231   : > { %v917_v12 = vsub.f32 %v885_v45, %v905_v11 }
 0x232   : > { %4638 = vpow2.f32 %v932_v9 }
 0x233   : > { %v930_v13 = vmul.f32 1.442695, %v917_v12  ;;  %v5034_v14 = vpop.eup %4636 }
 0x234   : > { %v957_v15 = vsel %vm660_vm1, %v5034_v14, 0.0 }
 0x235   : > { %4640 = vpow2.f32 %v930_v13  ;;  %958 = vadd.xlane.f32.xlu0 %v957_v15 }
 0x236   : > { %4642 = vpow2.f32 %v920_v23 }
 0x238   : > { %v5038_v16 = vpop.eup %4638  ;;  %v902_v24 = vpop.xlane.xlu2 %901 }
 0x239   : > { %v954_v17 = vsel %vm660_vm1, %v5038_v16, 0.0  ;;  %v916_v25 = vsub.f32 %v884_v48, %v902_v24 }
 0x23a   : > { %955 = vadd.xlane.f32.xlu2 %v954_v17 }
 0x23b   : > { %v5042_v18 = vpop.eup %4640  ;;  %v928_v28 = vmul.f32 1.442695, %v916_v25 }
 0x23c   : > { %v951_v19 = vsel %vm660_vm1, %v5042_v18, 0.0  ;;  %v5056_v27 = vpop.eup %4642 }
 0x23d   : > { %952 = vadd.xlane.f32.xlu1 %v951_v19  ;;  %v936_v29 = vsel %vm660_vm1, %v5056_v27, 0.0  ;;  %4644 = vpow2.f32 %v928_v28 }
 0x243   : > { %v5060_v30 = vpop.eup %4644 }
 0x249   : > { %4557 = vrot.lane.b32.xlu0 %v4556_v20, %s6192_s0  ;;  %s6237_s0 = sld [smem:[#allocation6_spill]] }
 0x252   : > { %4567 = vrot.lane.b32.xlu2 %v4556_v20, %s6190_s26  ;;  %s6206_s26 = smov 8  }
 0x256   : > { %4562 = vrot.lane.b32.xlu1 %v4556_v20, %s6188_s29  ;;  %s6215_s29 = smov 24  }
 0x25a   : > { %1080 = vrot.lane.b32.xlu2 %v4948_v8, %s6186_s22  ;;  %v948_v8 = vsel %vm660_vm1, %v5060_v30, 0.0 }
 0x262   : > { %1205 = vrot.lane.b32.xlu2 %v4956_v10, %s6186_s22  ;;  %s6204_s22 = smov 16  }
 0x273   : > { %937 = vadd.xlane.f32.xlu0 %v936_v29 }
 0x280   : > { %949 = vadd.xlane.f32.xlu1 %v948_v8 }
 0x294   : > { %v947_v31 = vpop.xlane.xlu0 %946 }
 0x295   : > { %4646 = vrcp.f32 %v947_v31  ;;  %vm1010_vm7 = vweird.f32 %v947_v31  ;;  %v1016_v58 = vand.u32 2147483648, %v947_v31  ;;  %v1014_v62 = vand.u32 2147483647, %v947_v31 }
 0x297   : > { %v1017_v15 = vor.u32 1.1754944e-38, %v1016_v58  ;;  %vm1015_vm10 = vcmp.eq.f32.partialorder %v1014_v62, 8.507059e+37 }
 0x298   : > { %v5066_v33 = vpop.xlane.xlu1 %940 }
 0x29b   : > { %v5064_v32 = vpop.eup %4646 }
 0x29c   : > { %v1006_v35 = vmul.f32 %v5064_v32, %v947_v31  ;;  %vm1011_vm6 = vweird.f32 %v5064_v32 }
 0x29d   : > { %vm5087_vm8 = vmor %vm1010_vm7, %vm1011_vm6 }
 0x29e   : > { %v1007_v39 = vsub.f32 1.0, %v1006_v35 }
 0x2a0   : > { %v944_v10 = vpop.xlane.xlu2 %943  ;;  %v1008_v47 = vmul.f32 %v5064_v32, %v1007_v39 }
 0x2a1   : > { %4648 = vrcp.f32 %v944_v10  ;;  %v1001_v43 = vand.u32 2147483648, %v944_v10  ;;  %vm995_vm3 = vweird.f32 %v944_v10  ;;  %v999_v45 = vand.u32 2147483647, %v944_v10 }
 0x2a2   : > { %4650 = vrcp.f32 %v5066_v33  ;;  %v1009_v54 = vadd.f32 %v5064_v32, %v1008_v47 }
 0x2a3   : > { %v1002_v52 = vor.u32 1.1754944e-38, %v1001_v43  ;;  %vm1000_vm5 = vcmp.eq.f32.partialorder %v999_v45, 8.507059e+37 }
 0x2a4   : > { %v1013_v9 = vsel %vm5087_vm8, %v5064_v32, %v1009_v54 }
 0x2a5   : > { %v1018_v22 = vsel %vm1015_vm10, %v1017_v15, %v1013_v9 }
 0x2a7   : > { %v4649_v34 = vpop.eup %4648 }
 0x2a8   : > { %v991_v36 = vmul.f32 %v4649_v34, %v944_v10  ;;  %v5070_v37 = vpop.xlane.xlu0 %958  ;;  %vm996_vm2 = vweird.f32 %v4649_v34  ;;  %v5073_v44 = vpop.eup %4650 }
 0x2a9   : > { %4652 = vrcp.f32 %v5070_v37  ;;  %vm997_vm4 = vmor %vm995_vm3, %vm996_vm2  ;;  %v976_v51 = vmul.f32 %v5073_v44, %v5066_v33  ;;  %v1076_v20 = vand.u32 2147483648, %v5070_v37  ;;  %vm1070_vm15 = vweird.f32 %v5070_v37 }
 0x2aa   : > { %v992_v38 = vsub.f32 1.0, %v991_v36  ;;  %v1074_v32 = vand.u32 2147483647, %v5070_v37  ;;  %vm981_vm3 = vweird.f32 %v5073_v44  ;;  %v621_v36 = vld [vmem:[%s6169_s5 + $0x10] sm:$0xff] }
 0x2ab   : > { %v977_v63 = vsub.f32 1.0, %v976_v51 }
 0x2ac   : > { %v993_v40 = vmul.f32 %v4649_v34, %v992_v38 }
 0x2ad   : > { %v956_v41 = vpop.xlane.xlu2 %955 }
 0x2ae   : > { %v994_v42 = vadd.f32 %v4649_v34, %v993_v40  ;;  %4654 = vrcp.f32 %v956_v41  ;;  %v1061_v12 = vand.u32 2147483648, %v956_v41  ;;  %v1059_v19 = vand.u32 2147483647, %v956_v41 }
 0x2af   : > { %v5075_v46 = vpop.eup %4652  ;;  %vm1055_vm11 = vweird.f32 %v956_v41  ;;  %v986_v40 = vand.u32 2147483648, %v5066_v33 }
 0x2b0   : > { %v5078_v48 = vpop.xlane.xlu1 %952  ;;  %v998_v49 = vsel %vm997_vm4, %v4649_v34, %v994_v42  ;;  %v1066_v50 = vmul.f32 %v5075_v46, %v5070_v37  ;;  %vm1071_vm12 = vweird.f32 %v5075_v46  ;;  %v1062_v24 = vor.u32 1.1754944e-38, %v1061_v12 }
 0x2b1   : > { %4656 = vrcp.f32 %v5078_v48  ;;  %v1003_v57 = vsel %vm1000_vm5, %v1002_v52, %v998_v49  ;;  %vm1060_vm14 = vcmp.eq.f32.partialorder %v1059_v19, 8.507059e+37  ;;  %v5111_v34 = vmul.f32 %v5022_v56, %v1018_v22  ;;  %vm5115_vm2 = vmor %vm1070_vm15, %vm1071_vm12 }
 0x2b2   : > { %v1067_v55 = vsub.f32 1.0, %v1066_v50  ;;  %v5092_v7 = vmul.f32 %v5030_v1, %v1003_v57  ;;  %v978_v1 = vmul.f32 %v5073_v44, %v977_v63  ;;  %vm980_vm4 = vweird.f32 %v5066_v33 }
 0x2b3   : > { %vm1075_vm5 = vcmp.eq.f32.partialorder %v1074_v32, 8.507059e+37  ;;  %vm982_vm6 = vmor %vm980_vm4, %vm981_vm3  ;;  %v1046_v52 = vand.u32 2147483648, %v5078_v48  ;;  %v1044_v54 = vand.u32 2147483647, %v5078_v48 }
 0x2b4   : > { %v4655_v53 = vpop.eup %4654  ;;  %v1068_v11 = vmul.f32 %v5075_v46, %v1067_v55  ;;  %v979_v39 = vadd.f32 %v5073_v44, %v978_v1 }
 0x2b5   : > { %v1051_v59 = vmul.f32 %v4655_v53, %v956_v41  ;;  %v4568_v61 = vpop.permute.xlu2 %4567  ;;  %vm1056_vm9 = vweird.f32 %v4655_v53  ;;  %v1077_v41 = vor.u32 1.1754944e-38, %v1076_v20  ;;  %v1047_v57 = vor.u32 1.1754944e-38, %v1046_v52 }
 0x2b6   : > { %v4570_v0 = vunpack.i.h.bf16 %v4568_v61  ;;  %v4569_v2 = vunpack.i.l.bf16 %v4568_v61  ;;  %v1069_v23 = vadd.f32 %v5075_v46, %v1068_v11  ;;  %vm1057_vm13 = vmor %vm1055_vm11, %vm1056_vm9  ;;  %v983_v45 = vsel %vm982_vm6, %v5073_v44, %v979_v39  ;;  %v620_v39 = vld [vmem:[%s6169_s5 + $0x8] sm:$0xff] }
 0x2b7   : > { %v1052_v6 = vsub.f32 1.0, %v1051_v59  ;;  %v5098_v13 = vpop.eup %4656  ;;  %vm1040_vm9 = vweird.f32 %v5078_v48  ;;  %vm1045_vm11 = vcmp.eq.f32.partialorder %v1044_v54, 8.507059e+37  ;;  %vm1200_vm6 = vcmask 130048  }
 0x2b8   : > { %1155 = vmatpush.msrb.mxu1 %v4569_v2  ;;  %v1036_v25 = vmul.f32 %v5098_v13, %v5078_v48  ;;  %v1073_v56 = vsel %vm5115_vm2, %v5075_v46, %v1069_v23  ;;  %v987_v46 = vor.u32 1.1754944e-38, %v986_v40  ;;  %vm1041_vm8 = vweird.f32 %v5098_v13 }
 0x2b9   : > { %v1053_v17 = vmul.f32 %v4655_v53, %v1052_v6  ;;  %4382 = vmatmul.msk.f32.vlgmr.msrb.gmra.mxu1 %vm660_vm1, %v5092_v7  ;;  %v1078_v42 = vsel %vm1075_vm5, %v1077_v41, %v1073_v56  ;;  %vm1042_vm10 = vmor %vm1040_vm9, %vm1041_vm8  ;;  %v619_v56 = vld [vmem:[%s6169_s5] sm:$0xff] }
 0x2ba   : > { %1280 = vmatpush.msra.mxu1 %v4570_v0  ;;  %v1037_v37 = vsub.f32 1.0, %v1036_v25  ;;  %v5137_v49 = vmul.f32 %v5034_v14, %v1078_v42 }
 0x2bb   : > { %v1054_v21 = vadd.f32 %v4655_v53, %v1053_v17  ;;  %v4558_v28 = vpop.permute.xlu0 %4557 }
 0x2bc   : > { %v4560_v8 = vunpack.i.h.bf16 %v4558_v28  ;;  %v4559_v31 = vunpack.i.l.bf16 %v4558_v28  ;;  %v1038_v43 = vmul.f32 %v5098_v13, %v1037_v37 }
 0x2bd   : > { %v1058_v29 = vsel %vm1057_vm13, %v4655_v53, %v1054_v21  ;;  %v1081_v10 = vpop.permute.xlu2 %1080 }
 0x2be   : > { %1101 = vmatpush.msra.mxu3 %v1081_v10  ;;  %v1063_v35 = vsel %vm1060_vm14, %v1062_v24, %v1058_v29  ;;  %1182 = vmatpush.msrb.mxu2 %v4559_v31  ;;  %v1039_v51 = vadd.f32 %v5098_v13, %v1038_v43 }
 0x2bf   : > { %v5120_v38 = vmul.f32 %v5038_v16, %v1063_v35  ;;  %4383 = vmatmul.msk.f32.vlgmr.msrb.gmra.mxu2 %vm660_vm1, %v5111_v34  ;;  %v984_v16 = vand.u32 2147483647, %v5066_v33  ;;  %v622_v35 = vld [vmem:[%s6169_s5 + $0x18] sm:$0xff] }
 0x2c0   : > { %1307 = vmatpush.msra.mxu2 %v4560_v8  ;;  %v1043_v55 = vsel %vm1042_vm10, %v5098_v13, %v1039_v51 }
 0x2c1   : > { %4386 = vmatmul.msk.f32.vlgmr.msra.gmra.mxu1 %vm660_vm1, %v5120_v38  ;;  %vm985_vm7 = vcmp.eq.f32.partialorder %v984_v16, 8.507059e+37  ;;  %v1048_v58 = vsel %vm1045_vm11, %v1047_v57, %v1043_v55 }
 0x2c2   : > { %v988_v50 = vsel %vm985_vm7, %v987_v46, %v983_v45  ;;  %v1049_v59 = vmul.f32 %v5042_v18, %v1048_v58  ;;  %vm1202_vm7 = vcmask 195584  }
 0x2c3   : > { %v989_v14 = vmul.f32 %v5026_v60, %v988_v50 }
 0x2c5   : > { %v1206_v47 = vpop.permute.xlu2 %1205 }
 0x2c6   : > { %1226 = vmatpush.msrb.mxu3 %v1206_v47 }
 0x2c7   : > { %4387 = vmatmul.msk.f32.vlgmr.msra.gmra.mxu2 %vm660_vm1, %v5137_v49 }
 0x2c8   : > { %v4563_v33 = vpop.permute.xlu1 %4562 }
 0x2c9   : > { %v4565_v53 = vunpack.i.h.bf16 %v4563_v33  ;;  %v4564_v44 = vunpack.i.l.bf16 %v4563_v33 }
 0x2cb   : > { %1128 = vmatpush.msrb.mxu0 %v4564_v44  ;;  %v4607_v44 = vld [vmem:[%s6170_s6] ss:$0 sm:$0xff] }
 0x2cc   : > { %4381 = vmatmul.msk.f32.vlgmr.msrb.gmra.mxu0 %vm660_vm1, %v989_v14 }
 0x2cd   : > { %1253 = vmatpush.msra.mxu0 %v4565_v53 }
 0x2d4   : > { %4385 = vmatmul.msk.f32.vlgmr.msra.gmra.mxu0 %vm660_vm1, %v1049_v59 }
 0x2e6   : > { %v938_v61 = vpop.xlane.xlu0 %937 }
 0x2e7   : > { %4658 = vrcp.f32 %v938_v61  ;;  %v971_v60 = vand.u32 2147483648, %v938_v61  ;;  %v969_v2 = vand.u32 2147483647, %v938_v61  ;;  %vm965_vm13 = vweird.f32 %v938_v61 }
 0x2e9   : > { %v972_v9 = vor.u32 1.1754944e-38, %v971_v60  ;;  %vm970_vm15 = vcmp.eq.f32.partialorder %v969_v2, 8.507059e+37 }
 0x2ed   : > { %v4659_v62 = vpop.eup %4658 }
 0x2ee   : > { %v961_v48 = vmul.f32 %v4659_v62, %v938_v61  ;;  %vm966_vm12 = vweird.f32 %v4659_v62 }
 0x2ef   : > { %vm967_vm14 = vmor %vm965_vm13, %vm966_vm12 }
 0x2f0   : > { %v962_v63 = vsub.f32 1.0, %v961_v48  ;;  %v4809_v48 = vmov 32.0  }
 0x2f2   : > { %v963_v0 = vmul.f32 %v4659_v62, %v962_v63 }
 0x2f3   : > { %v950_v3 = vpop.xlane.xlu1 %949 }
 0x2f4   : > { %4660 = vrcp.f32 %v950_v3  ;;  %v964_v6 = vadd.f32 %v4659_v62, %v963_v0  ;;  %v1031_v20 = vand.u32 2147483648, %v950_v3  ;;  %v1029_v22 = vand.u32 2147483647, %v950_v3  ;;  %v1427_v0 = vld [vmem:[%s6171_s7 + $0x10] sm:$0xff] }
 0x2f5   : > { %vm1025_vm3 = vweird.f32 %v950_v3  ;;  %4662 = vrcp.f32 %v4809_v48 }
 0x2f6   : > { %v968_v11 = vsel %vm967_vm14, %v4659_v62, %v964_v6  ;;  %v1032_v25 = vor.u32 1.1754944e-38, %v1031_v20  ;;  %vm1030_vm5 = vcmp.eq.f32.partialorder %v1029_v22, 8.507059e+37 }
 0x2f7   : > { %v973_v18 = vsel %vm970_vm15, %v972_v9, %v968_v11  ;;  %v1425_v9 = vld [vmem:[%s6171_s7] sm:$0xff] }
 0x2f8   : > { %v974_v12 = vmul.f32 %v5056_v27, %v973_v18 }
 0x2fa   : > { %v4661_v13 = vpop.eup %4660  ;;  %4380 = vmatmul.msk.f32.vlgmr.msra.gmra.mxu3 %vm660_vm1, %v974_v12  ;;  %v1106_v17 = vadd.f32 %v989_v14, %v974_v12 }
 0x2fb   : > { %v1021_v15 = vmul.f32 %v4661_v13, %v950_v3  ;;  %vm1026_vm2 = vweird.f32 %v4661_v13  ;;  %1349 = vmatpush.msra.mxu3 %v622_v35  ;;  %v4663_v63 = vpop.eup %4662 }
 0x2fc   : > { %v1133_v1 = vadd.f32 %v1106_v17, %v5092_v7  ;;  %vm1027_vm4 = vmor %vm1025_vm3, %vm1026_vm2  ;;  %v1371_v60 = vmul.f32 32.0, %v4663_v63  ;;  %vm1375_vm8 = vweird.f32 %v4663_v63 }
 0x2fd   : > { %v1022_v19 = vsub.f32 1.0, %v1021_v15  ;;  %1350 = vmatpush.msra.mxu3 %v621_v36 }
 0x2fe   : > { %v5155_v23 = vadd.f32 %v1133_v1, %v5111_v34  ;;  %v1372_v3 = vsub.f32 1.0, %v1371_v60 }
 0x2ff   : > { %v1023_v21 = vmul.f32 %v4661_v13, %v1022_v19  ;;  %1351 = vmatpush.msra.mxu3 %v620_v39 }
 0x300   : > { %v1373_v6 = vmul.f32 %v4663_v63, %v1372_v3 }
 0x301   : > { %v1024_v24 = vadd.f32 %v4661_v13, %v1023_v21  ;;  %1352 = vmatpush.msra.mxu3 %v619_v56 }
 0x302   : > { %v1374_v11 = vadd.f32 %v4663_v63, %v1373_v6 }
 0x303   : > { %v1028_v27 = vsel %vm1027_vm4, %v4661_v13, %v1024_v24 }
 0x304   : > { %v1033_v28 = vsel %vm1030_vm5, %v1032_v25, %v1028_v27  ;;  %v5207_v18 = vsel %vm1375_vm8, %v4663_v63, %v1374_v11 }
 0x305   : > { %v1034_v29 = vmul.f32 %v5060_v30, %v1033_v28 }
 0x307   : > { %4384 = vmatmul.msk.f32.vlgmr.msrb.gmra.mxu3 %vm660_vm1, %v1034_v29  ;;  %v5159_v8 = vadd.f32 %v1049_v59, %v1034_v29 }
 0x336   : > { %v1157_v7 = vpop.f32.mrf.mxu1 }
 0x33e   : > { %v1282_v31 = vpop.f32.mrf.mxu1 }
 0x33f   : > { %1317 = vrot.lane.b32.xlu1 %v1282_v31, %s6204_s22 }
 0x342   : > { %v1184_v10 = vpop.f32.mrf.mxu2 }
 0x343   : > { %1196 = vrot.lane.b32.xlu0 %v1184_v10, %s6215_s29 }
 0x349   : > { %v1130_v32 = vpop.f32.mrf.mxu0 }
 0x34a   : > { %1188 = vrot.lane.b32.xlu2 %v1130_v32, %s6206_s26  ;;  %v1309_v34 = vpop.f32.mrf.mxu2 }
 0x351   : > { %v1255_v30 = vpop.f32.mrf.mxu0 }
 0x352   : > { %1192 = vrot.lane.b32.xlu2 %v1157_v7, %s6204_s22  ;;  %v5217_v7 = vld [vmem:[%s6236_s8] ss:$0 sm:$0xff]  ;;  %s6239_s22 = smov 120   ;;  %s6254_s8 = smov 56  }
 0x35a   : > { %1313 = vrot.lane.b32.xlu2 %v1255_v30, %s6206_s26  ;;  %s5228_s26 = scalar_lea.vmem %s6237_s0, %s4357_s23  ;;  %s6243_s0 = smov 80  }
 0x35b   : > { %6238 = sst [smem:[#allocation4_spill]] %s5228_s26  ;;  %s6250_s23 = smov 16  }
 0x362   : > { %1321 = vrot.lane.b32.xlu2 %v1309_v34, %s6215_s29 }
 0x37d   : > { %v1103_v41 = vpop.f32.mrf.mxu3 }
 0x38a   : > { %v1228_v47 = vpop.f32.mrf.mxu3 }
 0x3a4   : > { %v1189_v37 = vpop.permute.xlu2 %1188 }
 0x3a5   : > { %v1199_v42 = vsel %vm660_vm1, %v1103_v41, %v1189_v37 }
 0x3ac   : > { %v1193_v40 = vpop.permute.xlu2 %1192 }
 0x3ad   : > { %v1201_v43 = vsel %vm1200_vm6, %v1199_v42, %v1193_v40 }
 0x3b1   : > { %v1318_v51 = vpop.permute.xlu1 %1317 }
 0x3b4   : > { %v1314_v16 = vpop.permute.xlu2 %1313 }
 0x3b5   : > { %v1197_v45 = vpop.permute.xlu0 %1196  ;;  %v1324_v50 = vsel %vm660_vm1, %v1228_v47, %v1314_v16 }
 0x3b6   : > { %v1203_v46 = vsel %vm1202_vm7, %v1201_v43, %v1197_v45  ;;  %v1325_v52 = vsel %vm1200_vm6, %v1324_v50, %v1318_v51  ;;  %v611_v45 = vld [vmem:[%s5228_s26] sm:$0xff] }
 0x3b7   : > { %4388 = vmatmul.msk.f32.vlgmr.msra.gmra.mxu3 %vm627_vm0, %v1203_v46  ;;  %v4608_v50 = vld [vmem:[%s6175_s11] ss:$0 sm:$0xff] }
 0x3bc   : > { %v1322_v33 = vpop.permute.xlu2 %1321 }
 0x3bd   : > { %v1326_v53 = vsel %vm1202_vm7, %v1325_v52, %v1322_v33 }
 0x3bf   : > { %4389 = vmatmul.msk.f32.gmra.mxu3 %vm627_vm0, %v1326_v53  ;;  %v4609_v53 = vld [vmem:[%s6176_s12] ss:$0 sm:$0xff] }
 0x43a   : > { %v1354_v54 = vpop.f32.mrf.mxu3 }
 0x43b   : > { %v1355_v14 = vadd.f32 %v4607_v44, %v1354_v54 }
 0x43d   : > { %v1360_v55 = vadd.f32 %v1355_v14, %v4937_v4  ;;  %v1428_v4 = vld [vmem:[%s6171_s7 + $0x18] sm:$0xff] }
 0x43e   : > { %v4571_v2 = vpack.i.bf16 %v1427_v0, %v1428_v4  ;;  %1456 = vmatpush.msrb.mxu0 %v1428_v4 }
 0x43f   : > { %v1364_v57 = vsel %vm627_vm0, %v1360_v55, 0.0 }
 0x440   : > { %1365 = vadd.xlane.f32.xlu2 %v1364_v57  ;;  %1457 = vmatpush.msrb.mxu0 %v1427_v0  ;;  %v612_v57 = vld [vmem:[%s5228_s26 + $0x8] sm:$0xff] }
 0x442   : > { %v1357_v58 = vpop.f32.mrf.mxu3 }
 0x443   : > { %v1358_v59 = vadd.f32 %v4607_v44, %v1357_v58 }
 0x445   : > { %v1361_v61 = vadd.f32 %v1358_v59, %v4941_v5  ;;  %v1426_v5 = vld [vmem:[%s6171_s7 + $0x8] sm:$0xff] }
 0x446   : > { %1458 = vmatpush.msrb.mxu0 %v1426_v5  ;;  %v4576_v25 = vpack.i.bf16 %v1425_v9, %v1426_v5 }
 0x447   : > { %v1367_v62 = vsel %vm627_vm0, %v1361_v61, 0.0 }
 0x448   : > { %1368 = vadd.xlane.f32.xlu0 %v1367_v62  ;;  %1459 = vmatpush.msrb.mxu0 %v1425_v9 }
 0x45c   : > { %4572 = vrot.lane.b32.xlu0 %v4571_v2, %s6208_s20 }
 0x4b3   : > { %v1366_v12 = vpop.xlane.xlu2 %1365 }
 0x4b4   : > { %v1377_v13 = vmul.f32 %v5207_v18, %v1366_v12 }
 0x4b6   : > { %v1379_v15 = vsub.f32 %v1360_v55, %v1377_v13 }
 0x4b8   : > { %v1381_v17 = vmul.f32 %v1379_v15, %v1379_v15 }
 0x4ba   : > { %v1383_v19 = vsel %vm627_vm0, %v1381_v17, 0.0 }
 0x4bb   : > { %v1369_v1 = vpop.xlane.xlu0 %1368  ;;  %1384 = vadd.xlane.f32.xlu1 %v1383_v19 }
 0x4bc   : > { %v1378_v20 = vmul.f32 %v5207_v18, %v1369_v1 }
 0x4be   : > { %v1380_v21 = vsub.f32 %v1361_v61, %v1378_v20 }
 0x4c0   : > { %v1382_v22 = vmul.f32 %v1380_v21, %v1380_v21 }
 0x4c2   : > { %v1386_v24 = vsel %vm627_vm0, %v1382_v22, 0.0 }
 0x4c3   : > { %1387 = vadd.xlane.f32.xlu2 %v1386_v24 }
 0x4ce   : > { %v4573_v27 = vpop.permute.xlu0 %4572 }
 0x4cf   : > { %v4574_v28 = vunpack.i.l.bf16 %v4573_v27  ;;  %v4575_v29 = vunpack.i.h.bf16 %v4573_v27 }
 0x4d1   : > { %1504 = vmatpush.msrb.mxu1 %v4574_v28 }
 0x4d3   : > { %1505 = vmatpush.msrb.mxu1 %v4575_v29 }
 0x4d4   : > { %1483 = vrot.lane.b32.xlu1 %v5217_v7, %s6208_s20 }
 0x4db   : > { %4577 = vrot.lane.b32.xlu2 %v4576_v25, %s6208_s20 }
 0x52e   : > { %v1385_v31 = vpop.xlane.xlu1 %1384 }
 0x52f   : > { %v1389_v10 = vmul.f32 %v1385_v31, %v5207_v18 }
 0x531   : > { %v1391_v32 = vadd.f32 1e-06, %v1389_v10 }
 0x533   : > { %4664 = vrsqrt.f32 %v1391_v32  ;;  %vm1399_vm10 = vweird.f32 %v1391_v32 }
 0x536   : > { %v1388_v30 = vpop.xlane.xlu2 %1387 }
 0x537   : > { %v1390_v34 = vmul.f32 %v1388_v30, %v5207_v18 }
 0x539   : > { %v4665_v35 = vpop.eup %4664  ;;  %v1392_v36 = vadd.f32 1e-06, %v1390_v34 }
 0x53a   : > { %v1394_v39 = vmul.f32 %v4665_v35, %v1391_v32  ;;  %vm1400_vm9 = vweird.f32 %v4665_v35 }
 0x53b   : > { %4666 = vrsqrt.f32 %v1392_v36  ;;  %vm1401_vm11 = vmor %vm1399_vm10, %vm1400_vm9  ;;  %vm1409_vm13 = vweird.f32 %v1392_v36 }
 0x53c   : > { %v1395_v56 = vmul.f32 %v4665_v35, %v1394_v39 }
 0x53e   : > { %v1396_v37 = vmul.f32 0.5, %v1395_v56  ;;  %v4578_v40 = vpop.permute.xlu2 %4577 }
 0x53f   : > { %v4580_v41 = vunpack.i.h.bf16 %v4578_v40  ;;  %v4579_v16 = vunpack.i.l.bf16 %v4578_v40 }
 0x540   : > { %v1397_v42 = vsub.f32 1.5, %v1396_v37 }
 0x541   : > { %v4667_v43 = vpop.eup %4666  ;;  %1506 = vmatpush.msrb.mxu1 %v4579_v16 }
 0x542   : > { %v1398_v46 = vmul.f32 %v4665_v35, %v1397_v42  ;;  %v1404_v47 = vmul.f32 %v4667_v43, %v1392_v36  ;;  %vm1410_vm12 = vweird.f32 %v4667_v43 }
 0x543   : > { %1507 = vmatpush.msrb.mxu1 %v4580_v41  ;;  %vm1411_vm14 = vmor %vm1409_vm13, %vm1410_vm12 }
 0x544   : > { %v1402_v51 = vsel %vm1401_vm11, %v4665_v35, %v1398_v46  ;;  %v1405_v33 = vmul.f32 %v4667_v43, %v1404_v47  ;;  %4392 = vmatmul.msk.f32.vlgmr.msrb.gmra.mxu1 %vm627_vm0, %v611_v45 }
 0x545   : > { %v1413_v52 = vmul.f32 %v1402_v51, %v1379_v15 }
 0x546   : > { %v1406_v44 = vmul.f32 0.5, %v1405_v33  ;;  %v1484_v63 = vpop.permute.xlu1 %1483 }
 0x547   : > { %v1418_v54 = vmul.f32 %v4608_v50, %v1413_v52 }
 0x548   : > { %v1407_v14 = vsub.f32 1.5, %v1406_v44 }
 0x549   : > { %v5238_v55 = vadd.f32 %v4609_v53, %v1418_v54 }
 0x54a   : > { %v1408_v58 = vmul.f32 %v4667_v43, %v1407_v14 }
 0x54b   : > { %4390 = vmatmul.msk.f32.vlgmr.msrb.gmra.mxu0 %vm627_vm0, %v5238_v55 }
 0x54c   : > { %4393 = vmatmul.msk.f32.gmra.mxu1 %vm627_vm0, %v612_v57  ;;  %v1412_v59 = vsel %vm1411_vm14, %v4667_v43, %v1408_v58 }
 0x54d   : > { %v1414_v61 = vmul.f32 %v1412_v59, %v1380_v21 }
 0x54f   : > { %v1419_v62 = vmul.f32 %v4608_v50, %v1414_v61 }
 0x551   : > { %v5244_v48 = vadd.f32 %v4609_v53, %v1419_v62 }
 0x553   : > { %4391 = vmatmul.msk.f32.gmra.mxu0 %vm627_vm0, %v5244_v48 }
 0x5c1   : > { %v1509_v60 = vpop.f32.mrf.mxu1 }
 0x5c2   : > { %v5248_v0 = vadd.f32 %v1509_v60, %v1484_v63 }
 0x5c4   : > { %1543 = vrot.lane.b32.xlu0 %v5248_v0, %s6239_s22  ;;  %4394 = vmatpush.xpose.msk.msrb.mxu2 %vm660_vm1, %v5248_v0 }
 0x5c8   : > { %v1461_v4 = vpop.f32.mrf.mxu0 }
 0x5c9   : > { %v1462_v2 = vadd.f32 %v5217_v7, %v1461_v4  ;;  %v1512_v3 = vpop.f32.mrf.mxu1 }
 0x5ca   : > { %v5255_v5 = vadd.f32 %v1512_v3, %v1484_v63 }
 0x5cb   : > { %1569 = vrot.lane.b32.xlu1 %v1462_v2, %s6240_s2  ;;  %1541 = vrot.lane.b32.xlu2 %v1462_v2, %s6239_s22 }
 0x5cc   : > { %4395 = vmatmul.msk.f32.vlgmr.msrb.gmra.mxu2 %vm660_vm1, %v1462_v2  ;;  %4402 = vmatpush.xpose.msk.msra.mxu1 %vm660_vm1, %v5255_v5 }
 0x5cd   : > { %1571 = vrot.lane.b32.xlu0 %v5248_v0, %s6240_s2 }
 0x5d0   : > { %v1464_v6 = vpop.f32.mrf.mxu0 }
 0x5d1   : > { %v1465_v9 = vadd.f32 %v5217_v7, %v1464_v6 }
 0x5d3   : > { %1651 = vrot.lane.b32.xlu1 %v1465_v9, %s6239_s22  ;;  %1681 = vrot.lane.b32.xlu2 %v5255_v5, %s6240_s2 }
 0x5d4   : > { %4403 = vmatmul.msk.f32.vlgmr.msra.gmra.mxu1 %vm660_vm1, %v1465_v9 }
 0x5d5   : > { %1653 = vrot.lane.b32.xlu0 %v5255_v5, %s6239_s22 }
 0x5db   : > { %1597 = vrot.lane.b32.xlu1 %v1462_v2, %s6241_s24  ;;  %1599 = vrot.lane.b32.xlu2 %v5248_v0, %s6241_s24 }
 0x5dd   : > { %1679 = vrot.lane.b32.xlu0 %v1465_v9, %s6240_s2 }
 0x5e3   : > { %1707 = vrot.lane.b32.xlu2 %v1465_v9, %s6241_s24 }
 0x5e5   : > { %1709 = vrot.lane.b32.xlu0 %v5255_v5, %s6241_s24 }
 0x625   : > { %v1542_v11 = vpop.permute.xlu2 %1541 }
 0x62d   : > { %v1682_v12 = vpop.permute.xlu2 %1681 }
 0x635   : > { %v1600_v13 = vpop.permute.xlu2 %1599 }
 0x636   : > { %4400 = vmatpush.xpose.msk.msra.mxu0 %vm660_vm1, %v1600_v13  ;;  %v1544_v15 = vpop.permute.xlu0 %1543 }
 0x637   : > { %4396 = vmatpush.xpose.msk.msra.mxu2 %vm660_vm1, %v1544_v15 }
 0x63a   : > { %4397 = vmatmul.msk.f32.vlgmr.msra.gmra.mxu2 %vm660_vm1, %v1542_v11 }
 0x63d   : > { %v1570_v17 = vpop.permute.xlu1 %1569  ;;  %v1708_v25 = vpop.permute.xlu2 %1707 }
 0x63f   : > { %v1572_v19 = vpop.permute.xlu0 %1571 }
 0x640   : > { %4398 = vmatpush.xpose.msk.msrb.mxu3 %vm660_vm1, %v1572_v19 }
 0x643   : > { %4399 = vmatmul.msk.f32.vlgmr.msrb.gmra.mxu3 %vm660_vm1, %v1570_v17 }
 0x644   : > { %4406 = vmatpush.xpose.msk.msra.mxu3 %vm660_vm1, %v1682_v12 }
 0x645   : > { %v1652_v1 = vpop.permute.xlu1 %1651 }
 0x647   : > { %v1654_v20 = vpop.permute.xlu0 %1653 }
 0x648   : > { %4404 = vmatpush.xpose.msk.msrb.mxu2 %vm660_vm1, %v1654_v20 }
 0x64b   : > { %4405 = vmatmul.msk.f32.vlgmr.msrb.gmra.mxu2 %vm660_vm1, %v1652_v1 }
 0x64d   : > { %v1598_v21 = vpop.permute.xlu1 %1597 }
 0x64e   : > { %4401 = vmatmul.msk.f32.vlgmr.msra.gmra.mxu0 %vm660_vm1, %v1598_v21 }
 0x64f   : > { %v1680_v22 = vpop.permute.xlu0 %1679  ;;  %v1538_v27 = vpop.f32.mrf.mxu2 }
 0x650   : > { %4407 = vmatmul.msk.f32.vlgmr.msra.gmra.mxu3 %vm660_vm1, %v1680_v22  ;;  %v5300_v41 = vadd.f32 %v1538_v27, %v5001_v26 }
 0x651   : > { %v1648_v47 = vpop.f32.mrf.mxu1 }
 0x652   : > { %v1743_v45 = vsel %vm660_vm1, %v5300_v41, -inf  ;;  %v1739_v50 = vadd.f32 %v1648_v47, %v5001_v26 }
 0x654   : > { %v1755_v51 = vsel %vm660_vm1, %v1739_v50, -inf }
 0x657   : > { %v1710_v24 = vpop.permute.xlu0 %1709 }
 0x658   : > { %4408 = vmatpush.xpose.msk.msrb.mxu0 %vm660_vm1, %v1710_v24 }
 0x65b   : > { %4409 = vmatmul.msk.f32.vlgmr.msrb.gmra.mxu0 %vm660_vm1, %v1708_v25 }
 0x6bd   : > { %v1566_v28 = vpop.f32.mrf.mxu2 }
 0x6be   : > { %v1736_v29 = vadd.f32 %v1566_v28, %v5001_v26 }
 0x6c0   : > { %v1746_v7 = vsel %vm660_vm1, %v1736_v29, -inf }
 0x6c1   : > { %1747 = vmax.xlane.f32.xlu1 %v1746_v7 }
 0x6c6   : > { %v1594_v31 = vpop.f32.mrf.mxu3 }
 0x6c7   : > { %v1737_v10 = vadd.f32 %v1594_v31, %v5001_v26 }
 0x6c9   : > { %v1749_v32 = vsel %vm660_vm1, %v1737_v10, -inf }
 0x6ca   : > { %1750 = vmax.xlane.f32.xlu0 %v1749_v32 }
 0x6cb   : > { %v1622_v30 = vpop.f32.mrf.mxu0 }
 0x6cc   : > { %v1738_v34 = vadd.f32 %v1622_v30, %v5001_v26 }
 0x6ce   : > { %v1676_v35 = vpop.f32.mrf.mxu2  ;;  %v1752_v36 = vsel %vm660_vm1, %v1738_v34, -inf }
 0x6cf   : > { %v1740_v39 = vadd.f32 %v1676_v35, %v5001_v26  ;;  %1753 = vmax.xlane.f32.xlu2 %v1752_v36 }
 0x6d1   : > { %v1758_v56 = vsel %vm660_vm1, %v1740_v39, -inf }
 0x6d2   : > { %1759 = vmax.xlane.f32.xlu1 %v1758_v56 }
 0x6d3   : > { %v1704_v37 = vpop.f32.mrf.mxu3 }
 0x6d4   : > { %v1741_v40 = vadd.f32 %v1704_v37, %v5001_v26 }
 0x6d6   : > { %v1761_v16 = vsel %vm660_vm1, %v1741_v40, -inf }
 0x6d7   : > { %1762 = vmax.xlane.f32.xlu2 %v1761_v16 }
 0x6d8   : > { %v1732_v42 = vpop.f32.mrf.mxu0 }
 0x6d9   : > { %v1742_v43 = vadd.f32 %v1732_v42, %v5001_v26 }
 0x6da   : > { %1744 = vmax.xlane.f32.xlu1 %v1743_v45 }
 0x6db   : > { %v1764_v46 = vsel %vm660_vm1, %v1742_v43, -inf }
 0x6dc   : > { %1765 = vmax.xlane.f32.xlu0 %v1764_v46 }
 0x6e4   : > { %1756 = vmax.xlane.f32.xlu0 %v1755_v51 }
 0x6f8   : > { %1962 = vrot.lane.b32.xlu0 %v5248_v0, %s6242_s25 }
 0x734   : > { %v1748_v33 = vpop.xlane.xlu1 %1747 }
 0x735   : > { %v1768_v57 = vsub.f32 %v1736_v29, %v1748_v33 }
 0x737   : > { %v1777_v63 = vmul.f32 1.442695, %v1768_v57 }
 0x73d   : > { %v1751_v52 = vpop.xlane.xlu0 %1750 }
 0x73e   : > { %v1769_v53 = vsub.f32 %v1737_v10, %v1751_v52 }
 0x740   : > { %v1779_v44 = vmul.f32 1.442695, %v1769_v53 }
 0x742   : > { %4668 = vpow2.f32 %v1779_v44  ;;  %v1754_v54 = vpop.xlane.xlu2 %1753 }
 0x743   : > { %v1770_v14 = vsub.f32 %v1738_v34, %v1754_v54 }
 0x745   : > { %v1781_v58 = vmul.f32 1.442695, %v1770_v14  ;;  %v1760_v59 = vpop.xlane.xlu1 %1759 }
 0x746   : > { %v1772_v61 = vsub.f32 %v1740_v39, %v1760_v59 }
 0x747   : > { %4670 = vpow2.f32 %v1781_v58 }
 0x748   : > { %v5311_v62 = vpop.eup %4668  ;;  %v1785_v26 = vmul.f32 1.442695, %v1772_v61 }
 0x749   : > { %v1797_v60 = vsel %vm660_vm1, %v5311_v62, 0.0 }
 0x74a   : > { %4672 = vpow2.f32 %v1785_v26  ;;  %1798 = vadd.xlane.f32.xlu1 %v1797_v60  ;;  %v1763_v4 = vpop.xlane.xlu2 %1762 }
 0x74b   : > { %v1773_v2 = vsub.f32 %v1741_v40, %v1763_v4  ;;  %4674 = vpow2.f32 %v1777_v63 }
 0x74d   : > { %v5315_v3 = vpop.eup %4670  ;;  %v1787_v6 = vmul.f32 1.442695, %v1773_v2  ;;  %v1745_v28 = vpop.xlane.xlu1 %1744 }
 0x74e   : > { %v1800_v9 = vsel %vm660_vm1, %v5315_v3, 0.0  ;;  %v1767_v7 = vsub.f32 %v5300_v41, %v1745_v28 }
 0x74f   : > { %4676 = vpow2.f32 %v1787_v6  ;;  %v1766_v11 = vpop.xlane.xlu0 %1765  ;;  %1801 = vadd.xlane.f32.xlu2 %v1800_v9 }
 0x750   : > { %v5319_v12 = vpop.eup %4672  ;;  %v1774_v13 = vsub.f32 %v1742_v43, %v1766_v11  ;;  %v1775_v10 = vmul.f32 1.442695, %v1767_v7 }
 0x751   : > { %v1806_v15 = vsel %vm660_vm1, %v5319_v12, 0.0  ;;  %v5323_v19 = vpop.eup %4674 }
 0x752   : > { %v1789_v17 = vmul.f32 1.442695, %v1774_v13  ;;  %1807 = vadd.xlane.f32.xlu0 %v1806_v15  ;;  %v1794_v20 = vsel %vm660_vm1, %v5323_v19, 0.0 }
 0x754   : > { %4678 = vpow2.f32 %v1789_v17 }
 0x755   : > { %v5325_v1 = vpop.eup %4676 }
 0x756   : > { %v1809_v21 = vsel %vm660_vm1, %v5325_v1, 0.0 }
 0x757   : > { %1795 = vadd.xlane.f32.xlu2 %v1794_v20  ;;  %1810 = vadd.xlane.f32.xlu1 %v1809_v21  ;;  %v1757_v25 = vpop.xlane.xlu0 %1756 }
 0x758   : > { %v1771_v29 = vsub.f32 %v1739_v50, %v1757_v25 }
 0x75a   : > { %v5331_v22 = vpop.eup %4678  ;;  %v1783_v31 = vmul.f32 1.442695, %v1771_v29 }
 0x75b   : > { %v1812_v24 = vsel %vm660_vm1, %v5331_v22, 0.0 }
 0x75c   : > { %4680 = vpow2.f32 %v1783_v31 }
 0x75d   : > { %4682 = vpow2.f32 %v1775_v10 }
 0x75f   : > { %1813 = vadd.xlane.f32.xlu2 %v1812_v24 }
 0x762   : > { %v5350_v32 = vpop.eup %4680 }
 0x763   : > { %v5352_v30 = vpop.eup %4682  ;;  %v1803_v34 = vsel %vm660_vm1, %v5350_v32, 0.0 }
 0x766   : > { %2085 = vrot.lane.b32.xlu0 %v5255_v5, %s6242_s25 }
 0x76a   : > { %v1963_v27 = vpop.permute.xlu0 %1962 }
 0x76b   : > { %1983 = vmatpush.msra.mxu2 %v1963_v27 }
 0x76e   : > { %2112 = vrot.lane.b32.xlu0 %v5255_v5, %s6243_s0 }
 0x770   : > { %1989 = vrot.lane.b32.xlu1 %v5248_v0, %s6243_s0 }
 0x777   : > { %2016 = vrot.lane.b32.xlu2 %v5248_v0, %s6244_s1 }
 0x77f   : > { %2139 = vrot.lane.b32.xlu2 %v5255_v5, %s6244_s1 }
 0x787   : > { %1935 = vrot.lane.b32.xlu2 %v5248_v0, %s6208_s20  ;;  %v1791_v0 = vsel %vm660_vm1, %v5352_v30, 0.0 }
 0x78f   : > { %2058 = vrot.lane.b32.xlu2 %v5255_v5, %s6208_s20 }
 0x798   : > { %1804 = vadd.xlane.f32.xlu0 %v1803_v34 }
 0x79a   : > { %1792 = vadd.xlane.f32.xlu1 %v1791_v0 }
 0x7bd   : > { %v5358_v35 = vpop.xlane.xlu1 %1798 }
 0x7be   : > { %4684 = vrcp.f32 %v5358_v35  ;;  %vm1850_vm8 = vweird.f32 %v5358_v35  ;;  %v1854_v9 = vand.u32 2147483647, %v5358_v35  ;;  %v1856_v24 = vand.u32 2147483648, %v5358_v35 }
 0x7c2   : > { %v1802_v36 = vpop.xlane.xlu2 %1801 }
 0x7c3   : > { %4686 = vrcp.f32 %v1802_v36  ;;  %v1871_v33 = vand.u32 2147483648, %v1802_v36  ;;  %vm1865_vm2 = vweird.f32 %v1802_v36  ;;  %v1869_v53 = vand.u32 2147483647, %v1802_v36 }
 0x7c4   : > { %v5364_v39 = vpop.eup %4684 }
 0x7c5   : > { %v5361_v5 = vpop.xlane.xlu0 %1807  ;;  %v1846_v42 = vmul.f32 %v5364_v39, %v5358_v35  ;;  %v1872_v63 = vor.u32 1.1754944e-38, %v1871_v33  ;;  %vm1870_vm4 = vcmp.eq.f32.partialorder %v1869_v53, 8.507059e+37  ;;  %vm1851_vm9 = vweird.f32 %v5364_v39 }
 0x7c6   : > { %4688 = vrcp.f32 %v5361_v5  ;;  %vm5405_vm14 = vmor %vm1850_vm8, %vm1851_vm9  ;;  %v1899_v34 = vand.u32 2147483647, %v5361_v5  ;;  %v1901_v0 = vand.u32 2147483648, %v5361_v5 }
 0x7c7   : > { %v1847_v47 = vsub.f32 1.0, %v1846_v42 }
 0x7c9   : > { %v4687_v56 = vpop.eup %4686  ;;  %v1848_v58 = vmul.f32 %v5364_v39, %v1847_v47 }
 0x7ca   : > { %v1861_v37 = vmul.f32 %v4687_v56, %v1802_v36  ;;  %v1796_v40 = vpop.xlane.xlu2 %1795  ;;  %v5366_v41 = vpop.xlane.xlu1 %1810  ;;  %vm1866_vm15 = vweird.f32 %v4687_v56 }
 0x7cb   : > { %4690 = vrcp.f32 %v1796_v40  ;;  %vm5379_vm3 = vmor %vm1865_vm2, %vm1866_vm15  ;;  %v1839_v60 = vand.u32 2147483647, %v1796_v40  ;;  %v1841_v4 = vand.u32 2147483648, %v1796_v40  ;;  %v1849_v13 = vadd.f32 %v5364_v39, %v1848_v58 }
 0x7cc   : > { %v5368_v16 = vpop.eup %4688  ;;  %v1862_v43 = vsub.f32 1.0, %v1861_v37  ;;  %4692 = vrcp.f32 %v5366_v41  ;;  %vm1835_vm10 = vweird.f32 %v1796_v40  ;;  %vm1895_vm15 = vweird.f32 %v5361_v5 }
 0x7cd   : > { %v1891_v46 = vmul.f32 %v5368_v16, %v5361_v5  ;;  %vm1896_vm11 = vweird.f32 %v5368_v16  ;;  %vm1840_vm13 = vcmp.eq.f32.partialorder %v1839_v60, 8.507059e+37  ;;  %v1842_v25 = vor.u32 1.1754944e-38, %v1841_v4 }
 0x7ce   : > { %v1863_v45 = vmul.f32 %v4687_v56, %v1862_v43  ;;  %vm1855_vm2 = vcmp.eq.f32.partialorder %v1854_v9, 8.507059e+37  ;;  %v1914_v33 = vand.u32 2147483647, %v5366_v41 }
 0x7cf   : > { %v1892_v44 = vsub.f32 1.0, %v1891_v46 }
 0x7d0   : > { %v1864_v50 = vadd.f32 %v4687_v56, %v1863_v45 }
 0x7d1   : > { %v4691_v51 = vpop.eup %4690  ;;  %v1893_v2 = vmul.f32 %v5368_v16, %v1892_v44 }
 0x7d2   : > { %v5375_v52 = vpop.eup %4692  ;;  %v1831_v54 = vmul.f32 %v4691_v51, %v1796_v40  ;;  %v5377_v14 = vpop.xlane.xlu2 %1813  ;;  %v1868_v59 = vsel %vm5379_vm3, %v4687_v56, %v1864_v50  ;;  %vm1836_vm5 = vweird.f32 %v4691_v51  ;;  %v1857_v40 = vor.u32 1.1754944e-38, %v1856_v24  ;;  %vm1897_vm3 = vmor %vm1895_vm15, %vm1896_vm11 }
 0x7d3   : > { %4694 = vrcp.f32 %v5377_v14  ;;  %v1906_v26 = vmul.f32 %v5375_v52, %v5366_v41  ;;  %v1873_v11 = vsel %vm1870_vm4, %v1872_v63, %v1868_v59  ;;  %vm1837_vm12 = vmor %vm1835_vm10, %vm1836_vm5  ;;  %v1894_v27 = vadd.f32 %v5368_v16, %v1893_v2 }
 0x7d4   : > { %v1832_v61 = vsub.f32 1.0, %v1831_v54  ;;  %v5399_v31 = vmul.f32 %v5315_v3, %v1873_v11  ;;  %v1853_v3 = vsel %vm5405_vm14, %v5364_v39, %v1849_v13  ;;  %v1931_v5 = vand.u32 2147483648, %v5377_v14 }
 0x7d5   : > { %v1907_v17 = vsub.f32 1.0, %v1906_v26  ;;  %v1898_v42 = vsel %vm1897_vm3, %v5368_v16, %v1894_v27  ;;  %v1929_v39 = vand.u32 2147483647, %v5377_v14  ;;  %v1858_v45 = vsel %vm1855_vm2, %v1857_v40, %v1853_v3 }
 0x7d6   : > { %v1833_v6 = vmul.f32 %v4691_v51, %v1832_v61  ;;  %vm1900_vm5 = vcmp.eq.f32.partialorder %v1899_v34, 8.507059e+37  ;;  %vm1911_vm8 = vweird.f32 %v5375_v52  ;;  %vm1925_vm9 = vweird.f32 %v5377_v14 }
 0x7d7   : > { %v1908_v56 = vmul.f32 %v5375_v52, %v1907_v17  ;;  %vm1910_vm10 = vweird.f32 %v5366_v41  ;;  %v1916_v16 = vand.u32 2147483648, %v5366_v41  ;;  %v1859_v57 = vmul.f32 %v5311_v62, %v1858_v45 }
 0x7d8   : > { %v1834_v15 = vadd.f32 %v4691_v51, %v1833_v6  ;;  %v2086_v20 = vpop.permute.xlu0 %2085  ;;  %vm1915_vm14 = vcmp.eq.f32.partialorder %v1914_v33, 8.507059e+37 }
 0x7d9   : > { %v4695_v21 = vpop.eup %4694  ;;  %2106 = vmatpush.msrb.mxu2 %v2086_v20  ;;  %v1909_v46 = vadd.f32 %v5375_v52, %v1908_v56  ;;  %v1917_v41 = vor.u32 1.1754944e-38, %v1916_v16 }
 0x7da   : > { %v1838_v28 = vsel %vm1837_vm12, %v4691_v51, %v1834_v15  ;;  %v1921_v29 = vmul.f32 %v4695_v21, %v5377_v14  ;;  %v2017_v7 = vpop.permute.xlu2 %2016  ;;  %vm1926_vm4 = vweird.f32 %v4695_v21  ;;  %v1932_v51 = vor.u32 1.1754944e-38, %v1931_v5 }
 0x7db   : > { %2037 = vmatpush.msra.mxu0 %v2017_v7  ;;  %v1843_v36 = vsel %vm1840_vm13, %v1842_v25, %v1838_v28  ;;  %vm1927_vm11 = vmor %vm1925_vm9, %vm1926_vm4  ;;  %vm1930_vm12 = vcmp.eq.f32.partialorder %v1929_v39, 8.507059e+37 }
 0x7dc   : > { %v1922_v37 = vsub.f32 1.0, %v1921_v29  ;;  %4413 = vmatmul.msk.f32.vlgmr.msra.gmra.mxu0 %vm660_vm1, %v5399_v31  ;;  %v5419_v35 = vmul.f32 %v5323_v19, %v1843_v36  ;;  %v1902_v19 = vor.u32 1.1754944e-38, %v1901_v0  ;;  %vm1912_vm13 = vmor %vm1910_vm10, %vm1911_vm8 }
 0x7dd   : > { %v1913_v14 = vsel %vm1912_vm13, %v5375_v52, %v1909_v46  ;;  %v1432_v46 = vld [vmem:[%s6173_s9 + $0x10] sm:$0xff] }
 0x7de   : > { %v1923_v43 = vmul.f32 %v4695_v21, %v1922_v37  ;;  %4411 = vmatmul.msk.f32.vlgmr.msra.gmra.mxu2 %vm660_vm1, %v5419_v35  ;;  %v1903_v50 = vsel %vm1900_vm5, %v1902_v19, %v1898_v42  ;;  %v1918_v62 = vsel %vm1915_vm14, %v1917_v41, %v1913_v14  ;;  %v1433_v19 = vld [vmem:[%s6173_s9 + $0x18] sm:$0xff] }
 0x7df   : > { %v1904_v61 = vmul.f32 %v5319_v12, %v1903_v50  ;;  %v1919_v60 = vmul.f32 %v5325_v1, %v1918_v62  ;;  %v1430_v50 = vld [vmem:[%s6173_s9] sm:$0xff] }
 0x7e0   : > { %v1924_v47 = vadd.f32 %v4695_v21, %v1923_v43  ;;  %v2113_v59 = vpop.permute.xlu0 %2112 }
 0x7e2   : > { %v1928_v53 = vsel %vm1927_vm11, %v4695_v21, %v1924_v47  ;;  %v2140_v44 = vpop.permute.xlu2 %2139  ;;  %v1990_v54 = vpop.permute.xlu1 %1989  ;;  %v1431_v47 = vld [vmem:[%s6173_s9 + $0x8] sm:$0xff] }
 0x7e3   : > { %2010 = vmatpush.msrb.mxu3 %v1990_v54  ;;  %2160 = vmatpush.msrb.mxu0 %v2140_v44  ;;  %v1933_v58 = vsel %vm1930_vm12, %v1932_v51, %v1928_v53 }
 0x7e4   : > { %4412 = vmatmul.msk.f32.vlgmr.msrb.gmra.mxu3 %vm660_vm1, %v1859_v57  ;;  %v1934_v26 = vmul.f32 %v5331_v22, %v1933_v58 }
 0x7e5   : > { %2133 = vmatpush.msra.mxu3 %v2113_v59 }
 0x7e6   : > { %4415 = vmatmul.msk.f32.vlgmr.msrb.gmra.mxu2 %vm660_vm1, %v1904_v61  ;;  %4417 = vmatmul.msk.f32.vlgmr.msrb.gmra.mxu0 %vm660_vm1, %v1934_v26 }
 0x7ea   : > { %v1936_v63 = vpop.permute.xlu2 %1935 }
 0x7eb   : > { %1956 = vmatpush.msrb.mxu1 %v1936_v63  ;;  %v4611_v63 = vld [vmem:[%s6174_s10] ss:$0 sm:$0xff] }
 0x7ec   : > { %4416 = vmatmul.msk.f32.vlgmr.msra.gmra.mxu3 %vm660_vm1, %v1919_v60 }
 0x7f2   : > { %v2059_v52 = vpop.permute.xlu2 %2058 }
 0x7f3   : > { %2079 = vmatpush.msra.mxu1 %v2059_v52 }
 0x80b   : > { %v1805_v4 = vpop.xlane.xlu0 %1804 }
 0x80c   : > { %4696 = vrcp.f32 %v1805_v4  ;;  %v1886_v13 = vand.u32 2147483648, %v1805_v4  ;;  %v1884_v17 = vand.u32 2147483647, %v1805_v4  ;;  %vm1880_vm2 = vweird.f32 %v1805_v4 }
 0x80d   : > { %v1793_v12 = vpop.xlane.xlu1 %1792 }
 0x80e   : > { %4698 = vrcp.f32 %v1793_v12  ;;  %v1826_v1 = vand.u32 2147483648, %v1793_v12  ;;  %v1824_v25 = vand.u32 2147483647, %v1793_v12  ;;  %v1887_v27 = vor.u32 1.1754944e-38, %v1886_v13 }
 0x80f   : > { %vm1885_vm5 = vcmp.eq.f32.partialorder %v1884_v17, 8.507059e+37  ;;  %vm1820_vm8 = vweird.f32 %v1793_v12 }
 0x810   : > { %v1827_v10 = vor.u32 1.1754944e-38, %v1826_v1  ;;  %vm1825_vm10 = vcmp.eq.f32.partialorder %v1824_v25, 8.507059e+37 }
 0x812   : > { %v4697_v22 = vpop.eup %4696 }
 0x813   : > { %v1876_v2 = vmul.f32 %v4697_v22, %v1805_v4  ;;  %vm1881_vm15 = vweird.f32 %v4697_v22 }
 0x814   : > { %v4699_v6 = vpop.eup %4698  ;;  %vm1882_vm4 = vmor %vm1880_vm2, %vm1881_vm15 }
 0x815   : > { %v1877_v9 = vsub.f32 1.0, %v1876_v2  ;;  %v1816_v11 = vmul.f32 %v4699_v6, %v1793_v12  ;;  %vm1821_vm3 = vweird.f32 %v4699_v6 }
 0x816   : > { %vm1822_vm9 = vmor %vm1820_vm8, %vm1821_vm3  ;;  %vm2324_vm3 = vcmask 523264  }
 0x817   : > { %v1878_v15 = vmul.f32 %v4697_v22, %v1877_v9  ;;  %v1817_v20 = vsub.f32 1.0, %v1816_v11 }
 0x819   : > { %v1879_v21 = vadd.f32 %v4697_v22, %v1878_v15  ;;  %v1818_v24 = vmul.f32 %v4699_v6, %v1817_v20 }
 0x81b   : > { %v1883_v28 = vsel %vm1882_vm4, %v4697_v22, %v1879_v21  ;;  %v1819_v29 = vadd.f32 %v4699_v6, %v1818_v24 }
 0x81c   : > { %v1888_v7 = vsel %vm1885_vm5, %v1887_v27, %v1883_v28  ;;  %v2275_v27 = vld [vmem:[%s6177_s13 + $0x10] sm:$0xff]  ;;  %v2274_v28 = vld [vmem:[%s6177_s13 + $0x8] sm:$0xff] }
 0x81d   : > { %v1823_v34 = vsel %vm1822_vm9, %v4699_v6, %v1819_v29  ;;  %v1889_v0 = vmul.f32 %v5350_v32, %v1888_v7  ;;  %v2273_v29 = vld [vmem:[%s6177_s13] sm:$0xff] }
 0x81e   : > { %v1828_v36 = vsel %vm1825_vm10, %v1827_v10, %v1823_v34 }
 0x81f   : > { %v1829_v3 = vmul.f32 %v5352_v30, %v1828_v36  ;;  %v2084_v56 = vadd.f32 %v1904_v61, %v1889_v0 }
 0x821   : > { %4410 = vmatmul.msk.f32.vlgmr.msrb.gmra.mxu1 %vm660_vm1, %v1829_v3  ;;  %v1961_v37 = vadd.f32 %v5419_v35, %v1829_v3  ;;  %v2111_v40 = vadd.f32 %v2084_v56, %v1919_v60 }
 0x822   : > { %2202 = vmatpush.msrb.mxu1 %v1433_v19 }
 0x823   : > { %v5447_v5 = vadd.f32 %v1961_v37, %v1859_v57  ;;  %v5449_v42 = vadd.f32 %v2111_v40, %v1934_v26 }
 0x824   : > { %2203 = vmatpush.msrb.mxu1 %v1432_v46  ;;  %v4613_v46 = vld [vmem:[%s6176_s12 + $0x1] ss:$0 sm:$0xff] }
 0x826   : > { %2204 = vmatpush.msrb.mxu1 %v1431_v47 }
 0x828   : > { %2205 = vmatpush.msrb.mxu1 %v1430_v50  ;;  %v2316_v50 = vld [vmem:[%s6179_s15 + $0x20] sm:$0xff] }
 0x829   : > { %4414 = vmatmul.msk.f32.vlgmr.msra.gmra.mxu1 %vm660_vm1, %v1889_v0 }
 0x859   : > { %v2039_v35 = vpop.f32.mrf.mxu0 }
 0x861   : > { %v1985_v43 = vpop.f32.mrf.mxu2 }
 0x862   : > { %2043 = vrot.lane.b32.xlu2 %v1985_v43, %s6249_s19  ;;  %v2319_v43 = vld [vmem:[%s6179_s15 + $0x38] sm:$0xff] }
 0x863   : > { %v2162_v45 = vpop.f32.mrf.mxu0 }
 0x867   : > { %v2012_v39 = vpop.f32.mrf.mxu3 }
 0x869   : > { %v2108_v32 = vpop.f32.mrf.mxu2 }
 0x86a   : > { %2166 = vrot.lane.b32.xlu1 %v2108_v32, %s6249_s19  ;;  %2047 = vrot.lane.b32.xlu2 %v2012_v39, %s6250_s23  ;;  %v2318_v39 = vld [vmem:[%s6179_s15 + $0x30] sm:$0xff]  ;;  %v4612_v32 = vld [vmem:[%s6175_s11 + $0x1] ss:$0 sm:$0xff] }
 0x86f   : > { %v2135_v30 = vpop.f32.mrf.mxu3 }
 0x870   : > { %2170 = vrot.lane.b32.xlu0 %v2135_v30, %s6250_s23 }
 0x872   : > { %2051 = vrot.lane.b32.xlu2 %v2039_v35, %s6215_s29  ;;  %v2317_v35 = vld [vmem:[%s6179_s15 + $0x28] sm:$0xff] }
 0x87a   : > { %2174 = vrot.lane.b32.xlu2 %v2162_v45, %s6215_s29  ;;  %s6252_s29 = smov 40  }
 0x89e   : > { %v1958_v33 = vpop.f32.mrf.mxu1 }
 0x8a6   : > { %v2081_v14 = vpop.f32.mrf.mxu1 }
 0x8bc   : > { %v2044_v16 = vpop.permute.xlu2 %2043 }
 0x8bd   : > { %v2054_v53 = vsel %vm660_vm1, %v1958_v33, %v2044_v16 }
 0x8c4   : > { %v2048_v51 = vpop.permute.xlu2 %2047 }
 0x8c5   : > { %v2055_v44 = vsel %vm1200_vm6, %v2054_v53, %v2048_v51  ;;  %v2315_v53 = vld [vmem:[%s6179_s15 + $0x18] sm:$0xff] }
 0x8cc   : > { %v2052_v54 = vpop.permute.xlu2 %2051 }
 0x8cd   : > { %v2056_v57 = vsel %vm1202_vm7, %v2055_v44, %v2052_v54 }
 0x8ce   : > { %4418 = vmatmul.msk.f32.vlgmr.msrb.gmra.mxu1 %vm627_vm0, %v2056_v57 }
 0x8d4   : > { %v2175_v26 = vpop.permute.xlu2 %2174 }
 0x8dc   : > { %v2167_v58 = vpop.permute.xlu1 %2166 }
 0x8dd   : > { %v2177_v59 = vsel %vm660_vm1, %v2081_v14, %v2167_v58 }
 0x8e2   : > { %v2171_v61 = vpop.permute.xlu0 %2170 }
 0x8e3   : > { %v2178_v41 = vsel %vm1200_vm6, %v2177_v59, %v2171_v61 }
 0x8e4   : > { %v2179_v62 = vsel %vm1202_vm7, %v2178_v41, %v2175_v26 }
 0x8e5   : > { %4419 = vmatmul.msk.f32.gmra.mxu1 %vm627_vm0, %v2179_v62 }
 0x94b   : > { %v2207_v60 = vpop.f32.mrf.mxu1 }
 0x94c   : > { %v2208_v52 = vadd.f32 %v4611_v63, %v2207_v60  ;;  %v2313_v60 = vld [vmem:[%s6179_s15 + $0x8] sm:$0xff] }
 0x94e   : > { %v2213_v4 = vadd.f32 %v2208_v52, %v5238_v55  ;;  %v2312_v52 = vld [vmem:[%s6179_s15] sm:$0xff] }
 0x950   : > { %v2219_v12 = vsel %vm627_vm0, %v2213_v4, 0.0 }
 0x951   : > { %2220 = vadd.xlane.f32.xlu2 %v2219_v12 }
 0x962   : > { %v2210_v22 = vpop.f32.mrf.mxu1 }
 0x963   : > { %v2211_v2 = vadd.f32 %v4611_v63, %v2210_v22  ;;  %v2314_v63 = vld [vmem:[%s6179_s15 + $0x10] sm:$0xff] }
 0x965   : > { %v2214_v6 = vadd.f32 %v2211_v2, %v5244_v48  ;;  %v2276_v48 = vld [vmem:[%s6177_s13 + $0x18] sm:$0xff] }
 0x966   : > { %2299 = vmatpush.msrb.mxu3 %v2276_v48 }
 0x967   : > { %v2222_v9 = vsel %vm627_vm0, %v2214_v6, 0.0 }
 0x968   : > { %2223 = vadd.xlane.f32.xlu0 %v2222_v9  ;;  %2300 = vmatpush.msrb.mxu3 %v2275_v27 }
 0x96a   : > { %2301 = vmatpush.msrb.mxu3 %v2274_v28 }
 0x96c   : > { %2302 = vmatpush.msrb.mxu3 %v2273_v29 }
 0x96e   : > { %2339 = vmatpush.msra.mxu3 %v2319_v43  ;;  %v4428_v43 = vld [vmem:[%s6228_s3 + $0x20] sm:$0xff] }
 0x970   : > { %2340 = vmatpush.msra.mxu3 %v2318_v39 }
 0x972   : > { %2341 = vmatpush.msra.mxu3 %v2317_v35 }
 0x974   : > { %2342 = vmatpush.msra.mxu3 %v2316_v50 }
 0x976   : > { %2343 = vmatpush.msra.mxu3 %v2315_v53 }
 0x978   : > { %2344 = vmatpush.msra.mxu3 %v2314_v63 }
 0x97a   : > { %2345 = vmatpush.msra.mxu3 %v2313_v60 }
 0x97c   : > { %2346 = vmatpush.msra.mxu3 %v2312_v52 }
 0x9c4   : > { %v2221_v11 = vpop.xlane.xlu2 %2220 }
 0x9c5   : > { %v2225_v13 = vmul.f32 %v2221_v11, %v5207_v18 }
 0x9c7   : > { %v2227_v15 = vsub.f32 %v2213_v4, %v2225_v13  ;;  %v4614_v4 = vld [vmem:[%s6178_s14] ss:$0 sm:$0xff] }
 0x9c8   : > { %v4615_v13 = vld [vmem:[%s6180_s16] ss:$0 sm:$0xff] }
 0x9c9   : > { %v2229_v17 = vmul.f32 %v2227_v15, %v2227_v15 }
 0x9cb   : > { %v2231_v20 = vsel %vm627_vm0, %v2229_v17, 0.0 }
 0x9cc   : > { %2232 = vadd.xlane.f32.xlu1 %v2231_v20 }
 0x9db   : > { %v2224_v1 = vpop.xlane.xlu0 %2223 }
 0x9dc   : > { %v2226_v55 = vmul.f32 %v2224_v1, %v5207_v18 }
 0x9de   : > { %v2228_v21 = vsub.f32 %v2214_v6, %v2226_v55 }
 0x9e0   : > { %v2230_v24 = vmul.f32 %v2228_v21, %v2228_v21 }
 0x9e2   : > { %v2234_v25 = vsel %vm627_vm0, %v2230_v24, 0.0 }
 0x9e3   : > { %2235 = vadd.xlane.f32.xlu2 %v2234_v25 }
 0xa3f   : > { %v2233_v7 = vpop.xlane.xlu1 %2232 }
 0xa40   : > { %v2237_v10 = vmul.f32 %v2233_v7, %v5207_v18 }
 0xa42   : > { %v2239_v34 = vadd.f32 1e-06, %v2237_v10 }
 0xa44   : > { %4700 = vrsqrt.f32 %v2239_v34  ;;  %vm2247_vm12 = vweird.f32 %v2239_v34 }
 0xa4a   : > { %v4701_v0 = vpop.eup %4700 }
 0xa4b   : > { %v2242_v36 = vmul.f32 %v4701_v0, %v2239_v34  ;;  %vm2248_vm11 = vweird.f32 %v4701_v0 }
 0xa4c   : > { %vm2249_vm13 = vmor %vm2247_vm12, %vm2248_vm11 }
 0xa4d   : > { %v2243_v3 = vmul.f32 %v4701_v0, %v2242_v36 }
 0xa4f   : > { %v2244_v56 = vmul.f32 0.5, %v2243_v3 }
 0xa51   : > { %v2245_v37 = vsub.f32 1.5, %v2244_v56  ;;  %v4431_v56 = vld [vmem:[%s6228_s3 + $0x38] sm:$0xff] }
 0xa52   : > { %2449 = vmatpush.msra.mxu0 %v4431_v56 }
 0xa53   : > { %v2246_v40 = vmul.f32 %v4701_v0, %v2245_v37  ;;  %v4430_v37 = vld [vmem:[%s6228_s3 + $0x30] sm:$0xff] }
 0xa54   : > { %2450 = vmatpush.msra.mxu0 %v4430_v37 }
 0xa55   : > { %v2250_v30 = vsel %vm2249_vm13, %v4701_v0, %v2246_v40  ;;  %v4429_v40 = vld [vmem:[%s6228_s3 + $0x28] sm:$0xff] }
 0xa56   : > { %v2261_v45 = vmul.f32 %v2250_v30, %v2227_v15  ;;  %v2236_v19 = vpop.xlane.xlu2 %2235  ;;  %2451 = vmatpush.msra.mxu0 %v4429_v40 }
 0xa57   : > { %v2238_v47 = vmul.f32 %v2236_v19, %v5207_v18 }
 0xa58   : > { %v2266_v16 = vmul.f32 %v4612_v32, %v2261_v45  ;;  %2452 = vmatpush.msra.mxu0 %v4428_v43 }
 0xa59   : > { %v2240_v51 = vadd.f32 1e-06, %v2238_v47 }
 0xa5a   : > { %v2271_v33 = vadd.f32 %v4613_v46, %v2266_v16  ;;  %v4616_v16 = vld [vmem:[%s6175_s11 + $0x2] ss:$0 sm:$0xff] }
 0xa5b   : > { %4702 = vrsqrt.f32 %v2240_v51  ;;  %vm2257_vm15 = vweird.f32 %v2240_v51 }
 0xa5c   : > { %4422 = vmatmul.msk.f32.vlgmr.msrb.gmra.mxu3 %vm627_vm0, %v2271_v33 }
 0xa61   : > { %v4703_v44 = vpop.eup %4702 }
 0xa62   : > { %v2252_v54 = vmul.f32 %v4703_v44, %v2240_v51  ;;  %vm2258_vm14 = vweird.f32 %v4703_v44 }
 0xa63   : > { %vm2259_vm2 = vmor %vm2257_vm15, %vm2258_vm14 }
 0xa64   : > { %v2253_v57 = vmul.f32 %v4703_v44, %v2252_v54 }
 0xa66   : > { %v2254_v58 = vmul.f32 0.5, %v2253_v57 }
 0xa68   : > { %v2255_v14 = vsub.f32 1.5, %v2254_v58 }
 0xa6a   : > { %v2256_v59 = vmul.f32 %v4703_v44, %v2255_v14 }
 0xa6c   : > { %v2260_v61 = vsel %vm2259_vm2, %v4703_v44, %v2256_v59  ;;  %v4617_v44 = vld [vmem:[%s6176_s12 + $0x2] ss:$0 sm:$0xff] }
 0xa6d   : > { %v2262_v26 = vmul.f32 %v2260_v61, %v2228_v21 }
 0xa6f   : > { %v2267_v41 = vmul.f32 %v4612_v32, %v2262_v26 }
 0xa71   : > { %v2272_v62 = vadd.f32 %v4613_v46, %v2267_v41 }
 0xa73   : > { %4423 = vmatmul.msk.f32.gmra.mxu3 %vm627_vm0, %v2272_v62 }
 0xadf   : > { %v2304_v12 = vpop.f32.mrf.mxu3 }
 0xae0   : > { %v2305_v22 = vadd.f32 %v4614_v4, %v2304_v12 }
 0xae2   : > { %v2310_v2 = vmax.f32 %v2305_v22, 0.0  ;;  %v4618_v22 = vld [vmem:[%s6230_s4 + $0x1] ss:$0 sm:$0xff]  ;;  %s6262_s4 = sld [smem:[#allocation4_spill]] }
 0xae4   : > { %4424 = vmatmul.msk.f32.vlgmr.msra.gmra.mxu3 %vm2324_vm3, %v2310_v2 }
 0xaf6   : > { %v2307_v6 = vpop.f32.mrf.mxu3 }
 0xaf7   : > { %v2308_v9 = vadd.f32 %v4614_v4, %v2307_v6 }
 0xaf9   : > { %v2311_v11 = vmax.f32 %v2308_v9, 0.0 }
 0xafb   : > { %4425 = vmatmul.msk.f32.gmra.mxu3 %vm2324_vm3, %v2311_v11 }
 0xb67   : > { %v2348_v15 = vpop.f32.mrf.mxu3 }
 0xb68   : > { %v2349_v17 = vadd.f32 %v4615_v13, %v2348_v15 }
 0xb6a   : > { %v2354_v20 = vadd.f32 %v2349_v17, %v2271_v33 }
 0xb6c   : > { %v2360_v1 = vsel %vm627_vm0, %v2354_v20, 0.0 }
 0xb6d   : > { %2361 = vadd.xlane.f32.xlu2 %v2360_v1 }
 0xb7e   : > { %v2351_v55 = vpop.f32.mrf.mxu3 }
 0xb7f   : > { %v2352_v21 = vadd.f32 %v4615_v13, %v2351_v55 }
 0xb81   : > { %v2355_v24 = vadd.f32 %v2352_v21, %v2272_v62 }
 0xb83   : > { %v2363_v25 = vsel %vm627_vm0, %v2355_v24, 0.0 }
 0xb84   : > { %2364 = vadd.xlane.f32.xlu0 %v2363_v25 }
 0xbe0   : > { %v2362_v48 = vpop.xlane.xlu2 %2361 }
 0xbe1   : > { %v2366_v27 = vmul.f32 %v2362_v48, %v5207_v18 }
 0xbe3   : > { %v2368_v28 = vsub.f32 %v2354_v20, %v2366_v27 }
 0xbe5   : > { %v2370_v29 = vmul.f32 %v2368_v28, %v2368_v28 }
 0xbe7   : > { %v2372_v7 = vsel %vm627_vm0, %v2370_v29, 0.0 }
 0xbe8   : > { %2373 = vadd.xlane.f32.xlu1 %v2372_v7 }
 0xbf7   : > { %v2365_v10 = vpop.xlane.xlu0 %2364 }
 0xbf8   : > { %v2367_v34 = vmul.f32 %v2365_v10, %v5207_v18 }
 0xbfa   : > { %v2369_v0 = vsub.f32 %v2355_v24, %v2367_v34  ;;  %v5633_v34 = vld [vmem:[%s6231_s30] sm:$0xff] }
 0xbfc   : > { %v2371_v36 = vmul.f32 %v2369_v0, %v2369_v0 }
 0xbfe   : > { %v2375_v3 = vsel %vm627_vm0, %v2371_v36, 0.0 }
 0xbff   : > { %2376 = vadd.xlane.f32.xlu2 %v2375_v3 }
 0xc5b   : > { %v2374_v39 = vpop.xlane.xlu1 %2373 }
 0xc5c   : > { %v2378_v32 = vmul.f32 %v2374_v39, %v5207_v18 }
 0xc5e   : > { %v2380_v30 = vadd.f32 1e-06, %v2378_v32 }
 0xc60   : > { %4704 = vrsqrt.f32 %v2380_v30  ;;  %vm2388_vm5 = vweird.f32 %v2380_v30 }
 0xc66   : > { %v4705_v35 = vpop.eup %4704 }
 0xc67   : > { %v2383_v45 = vmul.f32 %v4705_v35, %v2380_v30  ;;  %vm2389_vm4 = vweird.f32 %v4705_v35 }
 0xc68   : > { %vm2390_vm8 = vmor %vm2388_vm5, %vm2389_vm4 }
 0xc69   : > { %v2384_v19 = vmul.f32 %v4705_v35, %v2383_v45 }
 0xc6b   : > { %v2385_v46 = vmul.f32 0.5, %v2384_v19 }
 0xc6d   : > { %v2386_v47 = vsub.f32 1.5, %v2385_v46 }
 0xc6f   : > { %v2387_v50 = vmul.f32 %v4705_v35, %v2386_v47 }
 0xc71   : > { %v2391_v51 = vsel %vm2390_vm8, %v4705_v35, %v2387_v50 }
 0xc72   : > { %v2402_v33 = vmul.f32 %v2391_v51, %v2368_v28  ;;  %v2377_v53 = vpop.xlane.xlu2 %2376 }
 0xc73   : > { %v2379_v54 = vmul.f32 %v2377_v53, %v5207_v18 }
 0xc74   : > { %v2407_v57 = vmul.f32 %v4616_v16, %v2402_v33 }
 0xc75   : > { %v2381_v58 = vadd.f32 1e-06, %v2379_v54 }
 0xc76   : > { %v5569_v14 = vadd.f32 %v4617_v44, %v2407_v57 }
 0xc77   : > { %4706 = vrsqrt.f32 %v2381_v58  ;;  %vm2398_vm10 = vweird.f32 %v2381_v58 }
 0xc78   : > { %4438 = vmatmul.msk.f32.vlgmr.msra.gmra.mxu0 %vm627_vm0, %v5569_v14 }
 0xc7d   : > { %v4707_v59 = vpop.eup %4706 }
 0xc7e   : > { %v2393_v61 = vmul.f32 %v4707_v59, %v2381_v58  ;;  %vm2399_vm9 = vweird.f32 %v4707_v59 }
 0xc7f   : > { %vm2400_vm11 = vmor %vm2398_vm10, %vm2399_vm9 }
 0xc80   : > { %v2394_v26 = vmul.f32 %v4707_v59, %v2393_v61 }
 0xc82   : > { %v2395_v41 = vmul.f32 0.5, %v2394_v26 }
 0xc84   : > { %v2396_v62 = vsub.f32 1.5, %v2395_v41 }
 0xc86   : > { %v2397_v63 = vmul.f32 %v4707_v59, %v2396_v62 }
 0xc88   : > { %v2401_v60 = vsel %vm2400_vm11, %v4707_v59, %v2397_v63 }
 0xc89   : > { %v2403_v52 = vmul.f32 %v2401_v60, %v2369_v0 }
 0xc8b   : > { %v2408_v4 = vmul.f32 %v4616_v16, %v2403_v52 }
 0xc8d   : > { %v5573_v12 = vadd.f32 %v4617_v44, %v2408_v4 }
 0xc8f   : > { %4439 = vmatmul.msk.f32.gmra.mxu0 %vm627_vm0, %v5573_v12 }
 0xcf5   : > { %v2454_v2 = vpop.f32.mrf.mxu0 }
 0xcf6   : > { %v5580_v6 = vadd.f32 %v4618_v22, %v2454_v2 }
 0xcf8   : > { %2461 = vrot.lane.b32.xlu2 %v5580_v6, %s6251_s28  ;;  %2487 = vrot.lane.b32.xlu1 %v5580_v6, %s6239_s22 }
 0xcf9   : > { %2489 = vrot.lane.b32.xlu0 %v5580_v6, %s6242_s25 }
 0xd00   : > { %2545 = vrot.lane.b32.xlu2 %v5580_v6, %s6244_s1 }
 0xd01   : > { %2517 = vrot.lane.b32.xlu0 %v5580_v6, %s6243_s0 }
 0xd0c   : > { %v2457_v9 = vpop.f32.mrf.mxu0 }
 0xd0d   : > { %v5592_v11 = vadd.f32 %v4618_v22, %v2457_v9 }
 0xd0f   : > { %2628 = vrot.lane.b32.xlu2 %v5592_v11, %s6243_s0  ;;  %2598 = vrot.lane.b32.xlu1 %v5592_v11, %s6239_s22 }
 0xd10   : > { %2600 = vrot.lane.b32.xlu0 %v5592_v11, %s6242_s25 }
 0xd17   : > { %2654 = vrot.lane.b32.xlu2 %v5592_v11, %s6241_s24  ;;  %2515 = vrot.lane.b32.xlu1 %v5580_v6, %s6240_s2 }
 0xd18   : > { %2543 = vrot.lane.b32.xlu0 %v5580_v6, %s6241_s24 }
 0xd1f   : > { %2656 = vrot.lane.b32.xlu1 %v5592_v11, %s6244_s1 }
 0xd20   : > { %2626 = vrot.lane.b32.xlu0 %v5592_v11, %s6240_s2 }
 0xd27   : > { %2572 = vrot.lane.b32.xlu1 %v5592_v11, %s6251_s28 }
 0xd52   : > { %v2462_v13 = vpop.permute.xlu2 %2461 }
 0xd53   : > { %4440 = vmatpush.xpose.msk.msra.mxu1 %vm660_vm1, %v2462_v13 }
 0xd56   : > { %4441 = vmatmul.msk.f32.vlgmr.msra.gmra.mxu1 %vm660_vm1, %v5580_v6 }
 0xd5a   : > { %v2546_v15 = vpop.permute.xlu2 %2545 }
 0xd5b   : > { %4446 = vmatpush.xpose.msk.msrb.mxu1 %vm660_vm1, %v2546_v15 }
 0xd69   : > { %v2629_v55 = vpop.permute.xlu2 %2628 }
 0xd6a   : > { %v2488_v20 = vpop.permute.xlu1 %2487 }
 0xd6b   : > { %v2490_v17 = vpop.permute.xlu0 %2489 }
 0xd6c   : > { %4442 = vmatpush.xpose.msk.msra.mxu2 %vm660_vm1, %v2490_v17 }
 0xd6f   : > { %4443 = vmatmul.msk.f32.vlgmr.msra.gmra.mxu2 %vm660_vm1, %v2488_v20 }
 0xd71   : > { %v2655_v29 = vpop.permute.xlu2 %2654 }
 0xd73   : > { %v2518_v1 = vpop.permute.xlu0 %2517 }
 0xd74   : > { %4444 = vmatpush.xpose.msk.msrb.mxu0 %vm660_vm1, %v2518_v1 }
 0xd78   : > { %4452 = vmatpush.xpose.msk.msra.mxu0 %vm660_vm1, %v2629_v55 }
 0xd81   : > { %v2599_v21 = vpop.permute.xlu1 %2598 }
 0xd82   : > { %v2601_v24 = vpop.permute.xlu0 %2600 }
 0xd83   : > { %4450 = vmatpush.xpose.msk.msrb.mxu3 %vm660_vm1, %v2601_v24 }
 0xd86   : > { %4451 = vmatmul.msk.f32.vlgmr.msrb.gmra.mxu3 %vm660_vm1, %v2599_v21 }
 0xd89   : > { %v2516_v25 = vpop.permute.xlu1 %2515 }
 0xd8a   : > { %v2544_v48 = vpop.permute.xlu0 %2543  ;;  %4445 = vmatmul.msk.f32.vlgmr.msrb.gmra.mxu0 %vm660_vm1, %v2516_v25 }
 0xd8b   : > { %4447 = vmatmul.msk.f32.vlgmr.msrb.gmra.mxu1 %vm660_vm1, %v2544_v48 }
 0xd91   : > { %v2657_v27 = vpop.permute.xlu1 %2656 }
 0xd92   : > { %v2627_v28 = vpop.permute.xlu0 %2626  ;;  %4454 = vmatpush.xpose.msk.msra.mxu1 %vm660_vm1, %v2657_v27 }
 0xd93   : > { %4453 = vmatmul.msk.f32.vlgmr.msra.gmra.mxu0 %vm660_vm1, %v2627_v28 }
 0xd95   : > { %4455 = vmatmul.msk.f32.vlgmr.msra.gmra.mxu1 %vm660_vm1, %v2655_v29 }
 0xd99   : > { %v2573_v7 = vpop.permute.xlu1 %2572 }
 0xd9a   : > { %4448 = vmatpush.xpose.msk.msrb.mxu2 %vm660_vm1, %v2573_v7 }
 0xd9d   : > { %4449 = vmatmul.msk.f32.vlgmr.msrb.gmra.mxu2 %vm660_vm1, %v5592_v11 }
 0xdd3   : > { %v2484_v3 = vpop.f32.mrf.mxu1 }
 0xdd4   : > { %v2682_v33 = vadd.f32 %v5633_v34, %v2484_v3  ;;  %v4591_v3 = vpack.i.bf16 %v5592_v11, %v5580_v6 }
 0xdd6   : > { %v2690_v53 = vsel %vm660_vm1, %v2682_v33, -inf }
 0xdf2   : > { %v2512_v10 = vpop.f32.mrf.mxu2 }
 0xdf3   : > { %v2683_v0 = vadd.f32 %v5633_v34, %v2512_v10 }
 0xdf5   : > { %v2693_v36 = vsel %vm660_vm1, %v2683_v0, -inf }
 0xdf6   : > { %2694 = vmax.xlane.f32.xlu0 %v2693_v36 }
 0xe07   : > { %v2540_v56 = vpop.f32.mrf.mxu0 }
 0xe08   : > { %v2684_v37 = vadd.f32 %v5633_v34, %v2540_v56  ;;  %v2568_v40 = vpop.f32.mrf.mxu1 }
 0xe09   : > { %v2685_v43 = vadd.f32 %v5633_v34, %v2568_v40  ;;  %v2623_v32 = vpop.f32.mrf.mxu3 }
 0xe0a   : > { %v2696_v39 = vsel %vm660_vm1, %v2684_v37, -inf  ;;  %v2687_v35 = vadd.f32 %v5633_v34, %v2623_v32 }
 0xe0b   : > { %2697 = vmax.xlane.f32.xlu2 %v2696_v39  ;;  %v2699_v30 = vsel %vm660_vm1, %v2685_v43, -inf }
 0xe0c   : > { %2700 = vmax.xlane.f32.xlu1 %v2699_v30  ;;  %v2705_v47 = vsel %vm660_vm1, %v2687_v35, -inf }
 0xe10   : > { %v2651_v45 = vpop.f32.mrf.mxu0 }
 0xe11   : > { %v2688_v19 = vadd.f32 %v5633_v34, %v2651_v45 }
 0xe12   : > { %v2679_v46 = vpop.f32.mrf.mxu1 }
 0xe13   : > { %v2689_v50 = vadd.f32 %v5633_v34, %v2679_v46  ;;  %2706 = vmax.xlane.f32.xlu2 %v2705_v47  ;;  %v2708_v16 = vsel %vm660_vm1, %v2688_v19, -inf }
 0xe14   : > { %2709 = vmax.xlane.f32.xlu0 %v2708_v16 }
 0xe15   : > { %v2711_v51 = vsel %vm660_vm1, %v2689_v50, -inf }
 0xe16   : > { %2712 = vmax.xlane.f32.xlu1 %v2711_v51 }
 0xe1b   : > { %2691 = vmax.xlane.f32.xlu2 %v2690_v53 }
 0xe20   : > { %v2595_v44 = vpop.f32.mrf.mxu2 }
 0xe21   : > { %v2686_v54 = vadd.f32 %v5633_v34, %v2595_v44 }
 0xe23   : > { %v2702_v57 = vsel %vm660_vm1, %v2686_v54, -inf }
 0xe24   : > { %2703 = vmax.xlane.f32.xlu0 %v2702_v57 }
 0xe69   : > { %v2695_v58 = vpop.xlane.xlu0 %2694 }
 0xe6a   : > { %v2715_v59 = vsub.f32 %v2683_v0, %v2695_v58 }
 0xe6c   : > { %v2724_v61 = vmul.f32 1.442695, %v2715_v59 }
 0xe6e   : > { %4708 = vpow2.f32 %v2724_v61 }
 0xe74   : > { %v5651_v26 = vpop.eup %4708 }
 0xe75   : > { %v2741_v41 = vsel %vm660_vm1, %v5651_v26, 0.0 }
 0xe76   : > { %2742 = vadd.xlane.f32.xlu1 %v2741_v41 }
 0xe7e   : > { %v2698_v62 = vpop.xlane.xlu2 %2697 }
 0xe7f   : > { %v2701_v63 = vpop.xlane.xlu1 %2700  ;;  %v2716_v60 = vsub.f32 %v2684_v37, %v2698_v62 }
 0xe80   : > { %v2717_v52 = vsub.f32 %v2685_v43, %v2701_v63 }
 0xe81   : > { %v2726_v4 = vmul.f32 1.442695, %v2716_v60 }
 0xe82   : > { %v2728_v22 = vmul.f32 1.442695, %v2717_v52 }
 0xe83   : > { %4710 = vpow2.f32 %v2726_v4 }
 0xe84   : > { %4712 = vpow2.f32 %v2728_v22 }
 0xe86   : > { %v2707_v2 = vpop.xlane.xlu2 %2706 }
 0xe87   : > { %v2710_v9 = vpop.xlane.xlu0 %2709  ;;  %v2719_v13 = vsub.f32 %v2687_v35, %v2707_v2 }
 0xe88   : > { %v2720_v15 = vsub.f32 %v2688_v19, %v2710_v9 }
 0xe89   : > { %v5655_v17 = vpop.eup %4710  ;;  %v2732_v20 = vmul.f32 1.442695, %v2719_v13  ;;  %v2713_v1 = vpop.xlane.xlu1 %2712 }
 0xe8a   : > { %v5657_v55 = vpop.eup %4712  ;;  %v2734_v21 = vmul.f32 1.442695, %v2720_v15  ;;  %v2721_v24 = vsub.f32 %v2689_v50, %v2713_v1  ;;  %v2744_v25 = vsel %vm660_vm1, %v5655_v17, 0.0 }
 0xe8b   : > { %4714 = vpow2.f32 %v2732_v20  ;;  %v2747_v48 = vsel %vm660_vm1, %v5657_v55, 0.0  ;;  %2745 = vadd.xlane.f32.xlu2 %v2744_v25 }
 0xe8c   : > { %4716 = vpow2.f32 %v2734_v21  ;;  %v2736_v27 = vmul.f32 1.442695, %v2721_v24  ;;  %2748 = vadd.xlane.f32.xlu0 %v2747_v48 }
 0xe8e   : > { %4718 = vpow2.f32 %v2736_v27  ;;  %v2692_v56 = vpop.xlane.xlu2 %2691 }
 0xe8f   : > { %v2714_v40 = vsub.f32 %v2682_v33, %v2692_v56 }
 0xe91   : > { %v5663_v28 = vpop.eup %4714  ;;  %v2722_v39 = vmul.f32 1.442695, %v2714_v40 }
 0xe92   : > { %v5665_v29 = vpop.eup %4716  ;;  %v2753_v7 = vsel %vm660_vm1, %v5663_v28, 0.0 }
 0xe93   : > { %v2756_v10 = vsel %vm660_vm1, %v5665_v29, 0.0  ;;  %2754 = vadd.xlane.f32.xlu1 %v2753_v7  ;;  %4720 = vpow2.f32 %v2722_v39 }
 0xe94   : > { %v5671_v0 = vpop.eup %4718  ;;  %2757 = vadd.xlane.f32.xlu2 %v2756_v10 }
 0xe95   : > { %v2759_v36 = vsel %vm660_vm1, %v5671_v0, 0.0 }
 0xe96   : > { %2760 = vadd.xlane.f32.xlu0 %v2759_v36 }
 0xe97   : > { %v2704_v37 = vpop.xlane.xlu0 %2703 }
 0xe98   : > { %v2718_v43 = vsub.f32 %v2686_v54, %v2704_v37 }
 0xe99   : > { %v5684_v30 = vpop.eup %4720 }
 0xe9a   : > { %v2730_v32 = vmul.f32 1.442695, %v2718_v43  ;;  %v2738_v45 = vsel %vm660_vm1, %v5684_v30, 0.0 }
 0xe9c   : > { %4722 = vpow2.f32 %v2730_v32 }
 0xea2   : > { %v5686_v35 = vpop.eup %4722 }
 0xeaa   : > { %4592 = vrot.lane.b32.xlu0 %v4591_v3, %s6252_s29 }
 0xeac   : > { %4587 = vrot.lane.b32.xlu2 %v4591_v3, %s6253_s21  ;;  %4582 = vrot.lane.b32.xlu1 %v4591_v3, %s6254_s8 }
 0xeb4   : > { %2882 = vrot.lane.b32.xlu2 %v5580_v6, %s6255_s17  ;;  %v2750_v6 = vsel %vm660_vm1, %v5686_v35, 0.0 }
 0xebc   : > { %3005 = vrot.lane.b32.xlu2 %v5592_v11, %s6255_s17  ;;  %s4810_s17 = smov 32  }
 0xed4   : > { %2739 = vadd.xlane.f32.xlu0 %v2738_v45 }
 0xed6   : > { %2751 = vadd.xlane.f32.xlu1 %v2750_v6 }
 0xee9   : > { %v5692_v11 = vpop.xlane.xlu1 %2742 }
 0xeea   : > { %4724 = vrcp.f32 %v5692_v11  ;;  %v2788_v3 = vand.u32 2147483648, %v5692_v11  ;;  %vm2782_vm11 = vweird.f32 %v5692_v11 }
 0xef0   : > { %v5698_v47 = vpop.eup %4724 }
 0xef1   : > { %v2778_v44 = vmul.f32 %v5698_v47, %v5692_v11  ;;  %vm2783_vm4 = vweird.f32 %v5698_v47 }
 0xef3   : > { %v2779_v62 = vsub.f32 1.0, %v2778_v44 }
 0xef5   : > { %v2780_v1 = vmul.f32 %v5698_v47, %v2779_v62 }
 0xef7   : > { %v2781_v39 = vadd.f32 %v5698_v47, %v2780_v1 }
 0xefe   : > { %v2746_v19 = vpop.xlane.xlu2 %2745 }
 0xeff   : > { %v5695_v46 = vpop.xlane.xlu0 %2748  ;;  %4726 = vrcp.f32 %v2746_v19  ;;  %v2803_v58 = vand.u32 2147483648, %v2746_v19  ;;  %v2801_v41 = vand.u32 2147483647, %v2746_v19  ;;  %vm2797_vm13 = vweird.f32 %v2746_v19 }
 0xf00   : > { %4728 = vrcp.f32 %v5695_v46  ;;  %vm2812_vm9 = vweird.f32 %v5695_v46  ;;  %v2816_v45 = vand.u32 2147483647, %v5695_v46 }
 0xf01   : > { %v2804_v52 = vor.u32 1.1754944e-38, %v2803_v58  ;;  %vm2802_vm15 = vcmp.eq.f32.partialorder %v2801_v41, 8.507059e+37  ;;  %v2789_v41 = vor.u32 1.1754944e-38, %v2788_v3 }
 0xf05   : > { %v4727_v50 = vpop.eup %4726 }
 0xf06   : > { %v5700_v16 = vpop.eup %4728  ;;  %v2793_v51 = vmul.f32 %v4727_v50, %v2746_v19  ;;  %v5702_v33 = vpop.xlane.xlu1 %2754  ;;  %vm2798_vm12 = vweird.f32 %v4727_v50 }
 0xf07   : > { %v2758_v53 = vpop.xlane.xlu2 %2757  ;;  %v2808_v54 = vmul.f32 %v5700_v16, %v5695_v46  ;;  %vm2799_vm14 = vmor %vm2797_vm13, %vm2798_vm12  ;;  %vm2813_vm5 = vweird.f32 %v5700_v16  ;;  %v2848_v1 = vand.u32 2147483648, %v5702_v33 }
 0xf08   : > { %v2794_v57 = vsub.f32 1.0, %v2793_v51  ;;  %4730 = vrcp.f32 %v2758_v53  ;;  %v2863_v10 = vand.u32 2147483648, %v2758_v53  ;;  %v2861_v37 = vand.u32 2147483647, %v2758_v53  ;;  %vm5740_vm12 = vmor %vm2812_vm9, %vm2813_vm5 }
 0xf09   : > { %4732 = vrcp.f32 %v5702_v33  ;;  %v5709_v59 = vpop.xlane.xlu0 %2760  ;;  %v2809_v63 = vsub.f32 1.0, %v2808_v54  ;;  %vm2857_vm8 = vweird.f32 %v2758_v53 }
 0xf0a   : > { %v2795_v61 = vmul.f32 %v4727_v50, %v2794_v57  ;;  %4734 = vrcp.f32 %v5709_v59  ;;  %v2864_v19 = vor.u32 1.1754944e-38, %v2863_v10  ;;  %vm2862_vm13 = vcmp.eq.f32.partialorder %v2861_v37, 8.507059e+37 }
 0xf0b   : > { %v2810_v21 = vmul.f32 %v5700_v16, %v2809_v63  ;;  %vm2872_vm5 = vweird.f32 %v5709_v59 }
 0xf0c   : > { %v2796_v60 = vadd.f32 %v4727_v50, %v2795_v61 }
 0xf0d   : > { %v2811_v40 = vadd.f32 %v5700_v16, %v2810_v21  ;;  %v4433_v21 = vld [vmem:[%s6169_s5 + $0x20] sm:$0xff] }
 0xf0e   : > { %v4731_v4 = vpop.eup %4730  ;;  %v2800_v22 = vsel %vm2799_vm14, %v4727_v50, %v2796_v60  ;;  %v2786_v50 = vand.u32 2147483647, %v5692_v11  ;;  %vm2784_vm14 = vmor %vm2782_vm11, %vm2783_vm4 }
 0xf0f   : > { %v5712_v2 = vpop.eup %4732  ;;  %v2805_v9 = vsel %vm2802_vm15, %v2804_v52, %v2800_v22  ;;  %v2853_v13 = vmul.f32 %v4731_v4, %v2758_v53  ;;  %v4588_v15 = vpop.permute.xlu2 %4587  ;;  %vm2858_vm2 = vweird.f32 %v4731_v4  ;;  %v2785_v11 = vsel %vm2784_vm14, %v5698_v47, %v2781_v39 }
 0xf10   : > { %v5714_v20 = vpop.eup %4734  ;;  %v4590_v48 = vunpack.i.h.bf16 %v4588_v15  ;;  %v4589_v27 = vunpack.i.l.bf16 %v4588_v15  ;;  %v2838_v7 = vmul.f32 %v5712_v2, %v5702_v33  ;;  %v5723_v36 = vmul.f32 %v5655_v17, %v2805_v9  ;;  %vm2859_vm10 = vmor %vm2857_vm8, %vm2858_vm2 }
 0xf11   : > { %v2854_v24 = vsub.f32 1.0, %v2853_v13  ;;  %v2868_v25 = vmul.f32 %v5714_v20, %v5709_v59  ;;  %v2818_v17 = vand.u32 2147483648, %v5695_v46  ;;  %v2815_v46 = vsel %vm5740_vm12, %v5700_v16, %v2811_v40 }
 0xf12   : > { %2957 = vmatpush.msrb.mxu0 %v4589_v27  ;;  %v2839_v6 = vsub.f32 1.0, %v2838_v7  ;;  %vm2817_vm15 = vcmp.eq.f32.partialorder %v2816_v45, 8.507059e+37  ;;  %vm2787_vm2 = vcmp.eq.f32.partialorder %v2786_v50, 8.507059e+37  ;;  %vm2873_vm4 = vweird.f32 %v5714_v20 }
 0xf13   : > { %v2855_v56 = vmul.f32 %v4731_v4, %v2854_v24  ;;  %v2869_v43 = vsub.f32 1.0, %v2868_v25  ;;  %4458 = vmatmul.msk.f32.vlgmr.msrb.gmra.mxu0 %vm660_vm1, %v5723_v36  ;;  %v2819_v58 = vor.u32 1.1754944e-38, %v2818_v17  ;;  %v2790_v60 = vsel %vm2787_vm2, %v2789_v41, %v2785_v11  ;;  %vm5768_vm9 = vmor %vm2872_vm5, %vm2873_vm4 }
 0xf14   : > { %3080 = vmatpush.msra.mxu0 %v4590_v48  ;;  %v2840_v62 = vmul.f32 %v5712_v2, %v2839_v6  ;;  %vm2843_vm8 = vweird.f32 %v5712_v2  ;;  %v2876_v9 = vand.u32 2147483647, %v5709_v59  ;;  %v2846_v27 = vand.u32 2147483647, %v5702_v33 }
 0xf15   : > { %v2856_v32 = vadd.f32 %v4731_v4, %v2855_v56  ;;  %v2870_v57 = vmul.f32 %v5714_v20, %v2869_v43  ;;  %v2820_v63 = vsel %vm2817_vm15, %v2819_v58, %v2815_v46 }
 0xf16   : > { %v2841_v22 = vadd.f32 %v5712_v2, %v2840_v62  ;;  %v5765_v15 = vmul.f32 %v5657_v55, %v2820_v63  ;;  %v2791_v55 = vmul.f32 %v5651_v26, %v2790_v60  ;;  %vm2877_vm12 = vcmp.eq.f32.partialorder %v2876_v9, 8.507059e+37 }
 0xf17   : > { %v2860_v53 = vsel %vm2859_vm10, %v4731_v4, %v2856_v32  ;;  %v2883_v44 = vpop.permute.xlu2 %2882  ;;  %v2871_v52 = vadd.f32 %v5714_v20, %v2870_v57  ;;  %vm2842_vm10 = vweird.f32 %v5702_v33  ;;  %v2849_v33 = vor.u32 1.1754944e-38, %v2848_v1  ;;  %v4434_v1 = vld [vmem:[%s6169_s5 + $0x28] sm:$0xff] }
 0xf18   : > { %v2865_v54 = vsel %vm2862_vm13, %v2864_v19, %v2860_v53  ;;  %2903 = vmatpush.msra.mxu2 %v2883_v44  ;;  %vm2844_vm11 = vmor %vm2842_vm10, %vm2843_vm8  ;;  %vm2847_vm13 = vcmp.eq.f32.partialorder %v2846_v27, 8.507059e+37 }
 0xf19   : > { %v5752_v61 = vmul.f32 %v5665_v29, %v2865_v54  ;;  %v2878_v29 = vand.u32 2147483648, %v5709_v59  ;;  %v2875_v59 = vsel %vm5768_vm9, %v5714_v20, %v2871_v52  ;;  %v2845_v10 = vsel %vm2844_vm11, %v5712_v2, %v2841_v22 }
 0xf1a   : > { %v2850_v20 = vsel %vm2847_vm13, %v2849_v33, %v2845_v10 }
 0xf1b   : > { %4462 = vmatmul.msk.f32.vlgmr.msra.gmra.mxu0 %vm660_vm1, %v5752_v61  ;;  %v2879_v7 = vor.u32 1.1754944e-38, %v2878_v29  ;;  %v2851_v26 = vmul.f32 %v5663_v28, %v2850_v20 }
 0xf1c   : > { %v4593_v16 = vpop.permute.xlu0 %4592 }
 0xf1d   : > { %v4595_v47 = vunpack.i.h.bf16 %v4593_v16  ;;  %v4594_v4 = vunpack.i.l.bf16 %v4593_v16  ;;  %v2880_v3 = vsel %vm2877_vm12, %v2879_v7, %v2875_v59 }
 0xf1e   : > { %v4583_v13 = vpop.permute.xlu1 %4582  ;;  %v2881_v56 = vmul.f32 %v5671_v0, %v2880_v3 }
 0xf1f   : > { %v4585_v24 = vunpack.i.h.bf16 %v4583_v13  ;;  %v4584_v25 = vunpack.i.l.bf16 %v4583_v13  ;;  %v3006_v48 = vpop.permute.xlu2 %3005  ;;  %2984 = vmatpush.msrb.mxu1 %v4594_v4 }
 0xf20   : > { %3026 = vmatpush.msrb.mxu2 %v3006_v48  ;;  %4459 = vmatmul.msk.f32.vlgmr.msrb.gmra.mxu1 %vm660_vm1, %v5765_v15 }
 0xf21   : > { %3107 = vmatpush.msra.mxu1 %v4595_v47  ;;  %2930 = vmatpush.msra.mxu3 %v4584_v25 }
 0xf22   : > { %4457 = vmatmul.msk.f32.vlgmr.msra.gmra.mxu3 %vm660_vm1, %v2791_v55 }
 0xf23   : > { %3053 = vmatpush.msrb.mxu3 %v4585_v24 }
 0xf28   : > { %4463 = vmatmul.msk.f32.vlgmr.msra.gmra.mxu1 %vm660_vm1, %v2881_v56 }
 0xf2a   : > { %4461 = vmatmul.msk.f32.vlgmr.msrb.gmra.mxu3 %vm660_vm1, %v2851_v26 }
 0xf47   : > { %v2740_v37 = vpop.xlane.xlu0 %2739 }
 0xf48   : > { %4736 = vrcp.f32 %v2740_v37  ;;  %v2773_v45 = vand.u32 2147483648, %v2740_v37  ;;  %v2771_v19 = vand.u32 2147483647, %v2740_v37  ;;  %vm2767_vm15 = vweird.f32 %v2740_v37 }
 0xf49   : > { %v2752_v40 = vpop.xlane.xlu1 %2751 }
 0xf4a   : > { %4738 = vrcp.f32 %v2752_v40  ;;  %v2833_v50 = vand.u32 2147483648, %v2752_v40  ;;  %v2831_v53 = vand.u32 2147483647, %v2752_v40  ;;  %v2774_v44 = vor.u32 1.1754944e-38, %v2773_v45 }
 0xf4b   : > { %vm2772_vm5 = vcmp.eq.f32.partialorder %v2771_v19, 8.507059e+37  ;;  %vm2827_vm8 = vweird.f32 %v2752_v40 }
 0xf4c   : > { %v2834_v11 = vor.u32 1.1754944e-38, %v2833_v50  ;;  %vm2832_vm10 = vcmp.eq.f32.partialorder %v2831_v53, 8.507059e+37 }
 0xf4e   : > { %v4737_v2 = vpop.eup %4736 }
 0xf4f   : > { %v2763_v43 = vmul.f32 %v4737_v2, %v2740_v37  ;;  %vm2768_vm14 = vweird.f32 %v4737_v2 }
 0xf50   : > { %v4739_v39 = vpop.eup %4738  ;;  %vm2769_vm4 = vmor %vm2767_vm15, %vm2768_vm14 }
 0xf51   : > { %v2764_v17 = vsub.f32 1.0, %v2763_v43  ;;  %v2823_v32 = vmul.f32 %v4739_v39, %v2752_v40  ;;  %vm2828_vm2 = vweird.f32 %v4739_v39  ;;  %v4619_v40 = vld [vmem:[%s6170_s6 + $0x1] ss:$0 sm:$0xff] }
 0xf52   : > { %vm2829_vm9 = vmor %vm2827_vm8, %vm2828_vm2 }
 0xf53   : > { %v2765_v6 = vmul.f32 %v4737_v2, %v2764_v17  ;;  %v2824_v0 = vsub.f32 1.0, %v2823_v32 }
 0xf55   : > { %v2766_v51 = vadd.f32 %v4737_v2, %v2765_v6  ;;  %v2825_v28 = vmul.f32 %v4739_v39, %v2824_v0 }
 0xf57   : > { %v2770_v46 = vsel %vm2769_vm4, %v4737_v2, %v2766_v51  ;;  %v2826_v54 = vadd.f32 %v4739_v39, %v2825_v28  ;;  %v4468_v51 = vld [vmem:[%s6171_s7 + $0x20] sm:$0xff] }
 0xf58   : > { %v2775_v57 = vsel %vm2772_vm5, %v2774_v44, %v2770_v46  ;;  %v4470_v46 = vld [vmem:[%s6171_s7 + $0x30] sm:$0xff] }
 0xf59   : > { %v2830_v58 = vsel %vm2829_vm9, %v4739_v39, %v2826_v54  ;;  %v2776_v41 = vmul.f32 %v5684_v30, %v2775_v57 }
 0xf5a   : > { %v2835_v62 = vsel %vm2832_vm10, %v2834_v11, %v2830_v58 }
 0xf5b   : > { %4456 = vmatmul.msk.f32.vlgmr.msra.gmra.mxu2 %vm660_vm1, %v2776_v41  ;;  %v2836_v63 = vmul.f32 %v5686_v35, %v2835_v62  ;;  %v2908_v60 = vadd.f32 %v2791_v55, %v2776_v41 }
 0xf5d   : > { %v2935_v52 = vadd.f32 %v2908_v60, %v5723_v36  ;;  %v3031_v16 = vadd.f32 %v2851_v26, %v2836_v63 }
 0xf5f   : > { %v5793_v29 = vadd.f32 %v2935_v52, %v5765_v15  ;;  %v3058_v47 = vadd.f32 %v3031_v16, %v5752_v61  ;;  %v4436_v61 = vld [vmem:[%s6169_s5 + $0x38] sm:$0xff]  ;;  %v4435_v15 = vld [vmem:[%s6169_s5 + $0x30] sm:$0xff] }
 0xf60   : > { %3149 = vmatpush.msra.mxu2 %v4436_v61  ;;  %v4620_v61 = vld [vmem:[%s6175_s11 + $0x3] ss:$0 sm:$0xff] }
 0xf61   : > { %v5796_v4 = vadd.f32 %v3058_v47, %v2881_v56 }
 0xf62   : > { %3150 = vmatpush.msra.mxu2 %v4435_v15 }
 0xf63   : > { %4460 = vmatmul.msk.f32.vlgmr.msrb.gmra.mxu2 %vm660_vm1, %v2836_v63 }
 0xf64   : > { %3151 = vmatpush.msra.mxu2 %v4434_v1 }
 0xf66   : > { %3152 = vmatpush.msra.mxu2 %v4433_v21  ;;  %v4621_v21 = vld [vmem:[%s6176_s12 + $0x3] ss:$0 sm:$0xff] }
 0xf90   : > { %v2959_v22 = vpop.f32.mrf.mxu0 }
 0xf91   : > { %2994 = vrot.lane.b32.xlu2 %v2959_v22, %s6250_s23 }
 0xf98   : > { %v3082_v36 = vpop.f32.mrf.mxu0 }
 0xf9d   : > { %v2986_v30 = vpop.f32.mrf.mxu1 }
 0xfa5   : > { %v2932_v9 = vpop.f32.mrf.mxu3  ;;  %v3109_v13 = vpop.f32.mrf.mxu1 }
 0xfa6   : > { %3121 = vrot.lane.b32.xlu1 %v3109_v13, %s6260_s18  ;;  %2990 = vrot.lane.b32.xlu2 %v2932_v9, %s6249_s19 }
 0xfad   : > { %v3055_v35 = vpop.f32.mrf.mxu3 }
 0xfae   : > { %3113 = vrot.lane.b32.xlu0 %v3055_v35, %s6249_s19  ;;  %2998 = vrot.lane.b32.xlu2 %v2986_v30, %s6260_s18 }
 0xfb6   : > { %3117 = vrot.lane.b32.xlu2 %v3082_v36, %s6250_s23  ;;  %v4622_v36 = vld [vmem:[%s6261_s27 + $0x1] ss:$0 sm:$0xff] }
 0xfde   : > { %v2905_v48 = vpop.f32.mrf.mxu2 }
 0xfe6   : > { %v3028_v10 = vpop.f32.mrf.mxu2 }
 0xfeb   : > { %v2995_v24 = vpop.permute.xlu2 %2994 }
0x1000   : > { %v2991_v25 = vpop.permute.xlu2 %2990 }
0x1001   : > { %v3001_v27 = vsel %vm660_vm1, %v2905_v48, %v2991_v25 }
0x1002   : > { %v3002_v59 = vsel %vm1200_vm6, %v3001_v27, %v2995_v24 }
0x1008   : > { %v2999_v55 = vpop.permute.xlu2 %2998 }
0x1009   : > { %v3003_v7 = vsel %vm1202_vm7, %v3002_v59, %v2999_v55 }
0x100a   : > { %4464 = vmatmul.msk.f32.vlgmr.msra.gmra.mxu2 %vm627_vm0, %v3003_v7 }
0x1010   : > { %v3118_v3 = vpop.permute.xlu2 %3117 }
0x1018   : > { %v3122_v56 = vpop.permute.xlu1 %3121 }
0x1020   : > { %v3114_v33 = vpop.permute.xlu0 %3113 }
0x1021   : > { %v3124_v20 = vsel %vm660_vm1, %v3028_v10, %v3114_v33 }
0x1022   : > { %v3125_v26 = vsel %vm1200_vm6, %v3124_v20, %v3118_v3 }
0x1023   : > { %v3126_v37 = vsel %vm1202_vm7, %v3125_v26, %v3122_v56 }
0x1024   : > { %4465 = vmatmul.msk.f32.gmra.mxu2 %vm627_vm0, %v3126_v37 }
0x108d   : > { %v3154_v2 = vpop.f32.mrf.mxu2 }
0x108e   : > { %v3155_v43 = vadd.f32 %v4619_v40, %v3154_v2 }
0x1090   : > { %v3160_v39 = vadd.f32 %v3155_v43, %v5569_v14  ;;  %v4469_v14 = vld [vmem:[%s6171_s7 + $0x28] sm:$0xff]  ;;  %v4785_v43 = vld [vmem:[%s6262_s4] sm:$0xff] }
0x1091   : > { %v4601_v53 = vpack.i.bf16 %v4468_v51, %v4469_v14 }
0x1092   : > { %v3166_v17 = vsel %vm627_vm0, %v3160_v39, 0.0 }
0x1093   : > { %3167 = vadd.xlane.f32.xlu2 %v3166_v17 }
0x10a7   : > { %v3157_v32 = vpop.f32.mrf.mxu2 }
0x10a8   : > { %v3158_v45 = vadd.f32 %v4619_v40, %v3157_v32 }
0x10aa   : > { %v3161_v6 = vadd.f32 %v3158_v45, %v5573_v12  ;;  %v4471_v12 = vld [vmem:[%s6171_s7 + $0x38] sm:$0xff] }
0x10ab   : > { %3255 = vmatpush.msra.mxu3 %v4471_v12  ;;  %v4596_v63 = vpack.i.bf16 %v4470_v46, %v4471_v12 }
0x10ac   : > { %v3169_v19 = vsel %vm627_vm0, %v3161_v6, 0.0 }
0x10ad   : > { %3170 = vadd.xlane.f32.xlu0 %v3169_v19  ;;  %3256 = vmatpush.msra.mxu3 %v4470_v46 }
0x10af   : > { %3257 = vmatpush.msra.mxu3 %v4469_v14 }
0x10b1   : > { %3258 = vmatpush.msra.mxu3 %v4468_v51 }
0x10c1   : > { %4602 = vrot.lane.b32.xlu0 %v4601_v53, %s6251_s28 }
0x1106   : > { %v3168_v0 = vpop.xlane.xlu2 %3167 }
0x1107   : > { %v3172_v50 = vmul.f32 %v3168_v0, %v5207_v18 }
0x1109   : > { %v3174_v28 = vsub.f32 %v3160_v39, %v3172_v50 }
0x110b   : > { %v3176_v44 = vmul.f32 %v3174_v28, %v3174_v28 }
0x110d   : > { %v3178_v54 = vsel %vm627_vm0, %v3176_v44, 0.0 }
0x110e   : > { %3179 = vadd.xlane.f32.xlu1 %v3178_v54 }
0x1120   : > { %v3171_v57 = vpop.xlane.xlu0 %3170 }
0x1121   : > { %v3173_v11 = vmul.f32 %v3171_v57, %v5207_v18 }
0x1123   : > { %v3175_v58 = vsub.f32 %v3161_v6, %v3173_v11  ;;  %v4786_v6 = vld [vmem:[%s6262_s4 + $0x8] sm:$0xff] }
0x1125   : > { %v3177_v41 = vmul.f32 %v3175_v58, %v3175_v58 }
0x1127   : > { %v3181_v62 = vsel %vm627_vm0, %v3177_v41, 0.0  ;;  %3282 = vrot.lane.b32.xlu1 %v4622_v36, %s6251_s28 }
0x1128   : > { %3182 = vadd.xlane.f32.xlu2 %v3181_v62 }
0x1133   : > { %v4603_v7 = vpop.permute.xlu0 %4602 }
0x1134   : > { %v4604_v20 = vunpack.i.l.bf16 %v4603_v7  ;;  %v4605_v37 = vunpack.i.h.bf16 %v4603_v7 }
0x1140   : > { %4597 = vrot.lane.b32.xlu2 %v4596_v63, %s6251_s28 }
0x1181   : > { %v3180_v60 = vpop.xlane.xlu1 %3179 }
0x1182   : > { %v3184_v52 = vmul.f32 %v3180_v60, %v5207_v18 }
0x1184   : > { %v3186_v16 = vadd.f32 1e-06, %v3184_v52 }
0x1186   : > { %4740 = vrsqrt.f32 %v3186_v16  ;;  %vm3194_vm12 = vweird.f32 %v3186_v16 }
0x118c   : > { %v4741_v47 = vpop.eup %4740 }
0x118d   : > { %v3189_v22 = vmul.f32 %v4741_v47, %v3186_v16  ;;  %vm3195_vm11 = vweird.f32 %v4741_v47 }
0x118e   : > { %vm3196_vm13 = vmor %vm3194_vm12, %vm3195_vm11 }
0x118f   : > { %v3190_v30 = vmul.f32 %v4741_v47, %v3189_v22 }
0x1191   : > { %v3191_v9 = vmul.f32 0.5, %v3190_v30 }
0x1193   : > { %v3192_v13 = vsub.f32 1.5, %v3191_v9 }
0x1195   : > { %v3193_v35 = vmul.f32 %v4741_v47, %v3192_v13 }
0x1197   : > { %v3197_v15 = vsel %vm3196_vm13, %v4741_v47, %v3193_v35 }
0x1198   : > { %v3208_v1 = vmul.f32 %v3197_v15, %v3174_v28 }
0x1199   : > { %v3283_v0 = vpop.permute.xlu1 %3282 }
0x119a   : > { %v3213_v24 = vmul.f32 %v4620_v61, %v3208_v1 }
0x119b   : > { %v3183_v25 = vpop.xlane.xlu2 %3182 }
0x119c   : > { %v3185_v48 = vmul.f32 %v3183_v25, %v5207_v18  ;;  %v5862_v27 = vadd.f32 %v4621_v21, %v3213_v24 }
0x119e   : > { %v3187_v59 = vadd.f32 1e-06, %v3185_v48  ;;  %4478 = vmatmul.msk.f32.vlgmr.msra.gmra.mxu3 %vm627_vm0, %v5862_v27 }
0x11a0   : > { %4742 = vrsqrt.f32 %v3187_v59  ;;  %vm3204_vm15 = vweird.f32 %v3187_v59 }
0x11a3   : > { %v4598_v55 = vpop.permute.xlu2 %4597 }
0x11a4   : > { %v4599_v10 = vunpack.i.l.bf16 %v4598_v55  ;;  %v4600_v3 = vunpack.i.h.bf16 %v4598_v55 }
0x11a6   : > { %v4743_v33 = vpop.eup %4742  ;;  %3297 = vmatpush.msrb.mxu0 %v4599_v10 }
0x11a7   : > { %v3199_v56 = vmul.f32 %v4743_v33, %v3187_v59  ;;  %vm3205_vm14 = vweird.f32 %v4743_v33 }
0x11a8   : > { %3298 = vmatpush.msrb.mxu0 %v4600_v3  ;;  %vm3206_vm2 = vmor %vm3204_vm15, %vm3205_vm14 }
0x11a9   : > { %v3200_v26 = vmul.f32 %v4743_v33, %v3199_v56 }
0x11aa   : > { %3299 = vmatpush.msrb.mxu0 %v4604_v20 }
0x11ab   : > { %v3201_v40 = vmul.f32 0.5, %v3200_v26 }
0x11ac   : > { %3300 = vmatpush.msrb.mxu0 %v4605_v37 }
0x11ad   : > { %v3202_v2 = vsub.f32 1.5, %v3201_v40  ;;  %4480 = vmatmul.msk.f32.vlgmr.msrb.gmra.mxu0 %vm627_vm0, %v4785_v43 }
0x11af   : > { %v3203_v39 = vmul.f32 %v4743_v33, %v3202_v2 }
0x11b1   : > { %v3207_v17 = vsel %vm3206_vm2, %v4743_v33, %v3203_v39 }
0x11b2   : > { %v3209_v32 = vmul.f32 %v3207_v17, %v3175_v58 }
0x11b4   : > { %v3214_v45 = vmul.f32 %v4620_v61, %v3209_v32 }
0x11b5   : > { %4481 = vmatmul.msk.f32.gmra.mxu0 %vm627_vm0, %v4786_v6 }
0x11b6   : > { %v5870_v19 = vadd.f32 %v4621_v21, %v3214_v45 }
0x11b8   : > { %4479 = vmatmul.msk.f32.gmra.mxu3 %vm627_vm0, %v5870_v19 }
0x1221   : > { %v3260_v14 = vpop.f32.mrf.mxu3 }
0x1222   : > { %v3261_v28 = vadd.f32 %v4622_v36, %v3260_v14 }
0x122a   : > { %v3302_v50 = vpop.f32.mrf.mxu0 }
0x122b   : > { %v5874_v51 = vadd.f32 %v3302_v50, %v3283_v0 }
0x122d   : > { %3392 = vrot.lane.b32.xlu2 %v5874_v51, %s6241_s24  ;;  %3364 = vrot.lane.b32.xlu0 %v5874_v51, %s6240_s2 }
0x122e   : > { %4482 = vmatpush.xpose.msk.msrb.mxu1 %vm660_vm1, %v5874_v51 }
0x1231   : > { %4483 = vmatmul.msk.f32.vlgmr.msrb.gmra.mxu1 %vm660_vm1, %v3261_v28 }
0x1232   : > { %v3305_v53 = vpop.f32.mrf.mxu0 }
0x1233   : > { %v5883_v12 = vadd.f32 %v3305_v53, %v3283_v0 }
0x1235   : > { %3474 = vrot.lane.b32.xlu1 %v5883_v12, %s6240_s2  ;;  %4490 = vmatpush.xpose.msk.msra.mxu0 %vm660_vm1, %v5883_v12 }
0x1236   : > { %3390 = vrot.lane.b32.xlu2 %v3261_v28, %s6241_s24  ;;  %3362 = vrot.lane.b32.xlu0 %v3261_v28, %s6240_s2 }
0x123b   : > { %v3263_v44 = vpop.f32.mrf.mxu3 }
0x123c   : > { %v3264_v46 = vadd.f32 %v4622_v36, %v3263_v44 }
0x123e   : > { %3336 = vrot.lane.b32.xlu2 %v5874_v51, %s6239_s22  ;;  %3502 = vrot.lane.b32.xlu0 %v5883_v12, %s6241_s24 }
0x123f   : > { %3472 = vrot.lane.b32.xlu1 %v3264_v46, %s6240_s2  ;;  %4491 = vmatmul.msk.f32.vlgmr.msra.gmra.mxu0 %vm660_vm1, %v3264_v46 }
0x1246   : > { %3334 = vrot.lane.b32.xlu2 %v3261_v28, %s6239_s22  ;;  %3500 = vrot.lane.b32.xlu0 %v3264_v46, %s6241_s24  ;;  %s6265_s24 = sld [smem:[#allocation12_spill]] }
0x1247   : > { %3446 = vrot.lane.b32.xlu1 %v5883_v12, %s6239_s22 }
0x124e   : > { %3444 = vrot.lane.b32.xlu0 %v3264_v46, %s6239_s22 }
0x1287   : > { %v3393_v54 = vpop.permute.xlu2 %3392 }
0x1288   : > { %4488 = vmatpush.xpose.msk.msrb.mxu3 %vm660_vm1, %v3393_v54 }
0x1290   : > { %v3391_v57 = vpop.permute.xlu2 %3390 }
0x1291   : > { %4489 = vmatmul.msk.f32.vlgmr.msrb.gmra.mxu3 %vm660_vm1, %v3391_v57 }
0x1298   : > { %v3337_v11 = vpop.permute.xlu2 %3336 }
0x1299   : > { %4484 = vmatpush.xpose.msk.msra.mxu1 %vm660_vm1, %v3337_v11 }
0x129f   : > { %v3365_v58 = vpop.permute.xlu0 %3364 }
0x12a0   : > { %v3335_v41 = vpop.permute.xlu2 %3334  ;;  %4486 = vmatpush.xpose.msk.msrb.mxu2 %vm660_vm1, %v3365_v58 }
0x12a1   : > { %4485 = vmatmul.msk.f32.vlgmr.msra.gmra.mxu1 %vm660_vm1, %v3335_v41 }
0x12a7   : > { %v3475_v62 = vpop.permute.xlu1 %3474 }
0x12a8   : > { %v3363_v63 = vpop.permute.xlu0 %3362  ;;  %4494 = vmatpush.xpose.msk.msra.mxu2 %vm660_vm1, %v3475_v62 }
0x12a9   : > { %4487 = vmatmul.msk.f32.vlgmr.msrb.gmra.mxu2 %vm660_vm1, %v3363_v63 }
0x12ae   : > { %v3331_v60 = vpop.f32.mrf.mxu1 }
0x12af   : > { %v5910_v52 = vadd.f32 %v5633_v34, %v3331_v60 }
0x12b0   : > { %v3503_v16 = vpop.permute.xlu0 %3502 }
0x12b1   : > { %v3473_v47 = vpop.permute.xlu1 %3472  ;;  %4496 = vmatpush.xpose.msk.msra.mxu3 %vm660_vm1, %v3503_v16  ;;  %v3536_v22 = vsel %vm660_vm1, %v5910_v52, -inf }
0x12b2   : > { %4495 = vmatmul.msk.f32.vlgmr.msra.gmra.mxu2 %vm660_vm1, %v3473_v47  ;;  %3537 = vmax.xlane.f32.xlu0 %v3536_v22 }
0x12b8   : > { %v3501_v30 = vpop.permute.xlu0 %3500 }
0x12b9   : > { %v3447_v9 = vpop.permute.xlu1 %3446  ;;  %4497 = vmatmul.msk.f32.vlgmr.msra.gmra.mxu3 %vm660_vm1, %v3501_v30 }
0x12ba   : > { %4492 = vmatpush.xpose.msk.msrb.mxu1 %vm660_vm1, %v3447_v9 }
0x12bc   : > { %v3441_v3 = vpop.f32.mrf.mxu0 }
0x12bd   : > { %v5932_v26 = vadd.f32 %v5633_v34, %v3441_v3 }
0x12bf   : > { %v3548_v40 = vsel %vm660_vm1, %v5932_v26, -inf }
0x12c0   : > { %v3445_v13 = vpop.permute.xlu0 %3444 }
0x12c1   : > { %4493 = vmatmul.msk.f32.vlgmr.msrb.gmra.mxu1 %vm660_vm1, %v3445_v13 }
0x1314   : > { %v3415_v35 = vpop.f32.mrf.mxu3 }
0x1315   : > { %v3531_v36 = vadd.f32 %v5633_v34, %v3415_v35 }
0x1317   : > { %v3545_v61 = vsel %vm660_vm1, %v3531_v36, -inf }
0x1318   : > { %3546 = vmax.xlane.f32.xlu1 %v3545_v61 }
0x131e   : > { %v3359_v15 = vpop.f32.mrf.mxu1 }
0x131f   : > { %v3529_v1 = vadd.f32 %v5633_v34, %v3359_v15 }
0x1321   : > { %v3539_v21 = vsel %vm660_vm1, %v3529_v1, -inf }
0x1322   : > { %3540 = vmax.xlane.f32.xlu0 %v3539_v21 }
0x1325   : > { %v3538_v17 = vpop.xlane.xlu0 %3537 }
0x1326   : > { %v3560_v21 = vsub.f32 %v5910_v52, %v3538_v17 }
0x132c   : > { %v3387_v24 = vpop.f32.mrf.mxu2 }
0x132d   : > { %v3530_v25 = vadd.f32 %v5633_v34, %v3387_v24 }
0x132f   : > { %v3542_v48 = vsel %vm660_vm1, %v3530_v25, -inf }
0x1330   : > { %3543 = vmax.xlane.f32.xlu2 %v3542_v48 }
0x1335   : > { %v3497_v56 = vpop.f32.mrf.mxu2 }
0x1336   : > { %3809 = vrot.lane.b32.xlu0 %v5874_v51, %s6244_s1  ;;  %v3534_v37 = vadd.f32 %v5633_v34, %v3497_v56 }
0x1338   : > { %v3554_v2 = vsel %vm660_vm1, %v3534_v37, -inf }
0x133c   : > { %v3525_v59 = vpop.f32.mrf.mxu3 }
0x133d   : > { %v3535_v55 = vadd.f32 %v5633_v34, %v3525_v59 }
0x133e   : > { %v3469_v7 = vpop.f32.mrf.mxu1 }
0x133f   : > { %v3533_v10 = vadd.f32 %v5633_v34, %v3469_v7  ;;  %v3557_v33 = vsel %vm660_vm1, %v3535_v55, -inf }
0x1340   : > { %3558 = vmax.xlane.f32.xlu1 %v3557_v33 }
0x1341   : > { %v3551_v20 = vsel %vm660_vm1, %v3533_v10, -inf }
0x1342   : > { %3552 = vmax.xlane.f32.xlu2 %v3551_v20 }
0x1348   : > { %3549 = vmax.xlane.f32.xlu1 %v3548_v40 }
0x134a   : > { %3555 = vmax.xlane.f32.xlu2 %v3554_v2 }
0x1362   : > { %3782 = vrot.lane.b32.xlu2 %v5874_v51, %s6243_s0 }
0x138b   : > { %v3547_v43 = vpop.xlane.xlu1 %3546 }
0x138c   : > { %v3563_v39 = vsub.f32 %v3531_v36, %v3547_v43 }
0x138e   : > { %v3574_v32 = vmul.f32 1.442695, %v3563_v39 }
0x1390   : > { %4744 = vpow2.f32 %v3574_v32 }
0x1395   : > { %v3541_v45 = vpop.xlane.xlu0 %3540 }
0x1396   : > { %v5940_v6 = vpop.eup %4744  ;;  %v3561_v0 = vsub.f32 %v3529_v1, %v3541_v45 }
0x1397   : > { %v3593_v34 = vsel %vm660_vm1, %v5940_v6, 0.0 }
0x1398   : > { %v3570_v50 = vmul.f32 1.442695, %v3561_v0  ;;  %3594 = vadd.xlane.f32.xlu0 %v3593_v34 }
0x139a   : > { %4746 = vpow2.f32 %v3570_v50 }
0x13a0   : > { %v5944_v14 = vpop.eup %4746 }
0x13a1   : > { %v3587_v28 = vsel %vm660_vm1, %v5944_v14, 0.0 }
0x13a2   : > { %3588 = vadd.xlane.f32.xlu1 %v3587_v28 }
0x13a3   : > { %v3544_v53 = vpop.xlane.xlu2 %3543 }
0x13a4   : > { %v3562_v44 = vsub.f32 %v3530_v25, %v3544_v53  ;;  %v3568_v25 = vmul.f32 1.442695, %v3560_v21 }
0x13a6   : > { %v3572_v46 = vmul.f32 1.442695, %v3562_v44 }
0x13a8   : > { %4748 = vpow2.f32 %v3572_v46  ;;  %v3810_v54 = vpop.permute.xlu0 %3809 }
0x13a9   : > { %3830 = vmatpush.msrb.mxu3 %v3810_v54 }
0x13ac   : > { %3905 = vrot.lane.b32.xlu0 %v5883_v12, %s6243_s0 }
0x13ae   : > { %v5950_v57 = vpop.eup %4748 }
0x13af   : > { %v3590_v11 = vsel %vm660_vm1, %v5950_v57, 0.0 }
0x13b0   : > { %3591 = vadd.xlane.f32.xlu2 %v3590_v11 }
0x13b3   : > { %v3559_v22 = vpop.xlane.xlu1 %3558 }
0x13b4   : > { %v3567_v9 = vsub.f32 %v3535_v55, %v3559_v22 }
0x13b5   : > { %v3553_v58 = vpop.xlane.xlu2 %3552 }
0x13b6   : > { %v3565_v41 = vsub.f32 %v3533_v10, %v3553_v58  ;;  %v3582_v36 = vmul.f32 1.442695, %v3567_v9 }
0x13b8   : > { %v3578_v62 = vmul.f32 1.442695, %v3565_v41 }
0x13ba   : > { %4750 = vpow2.f32 %v3578_v62 }
0x13bb   : > { %v3550_v24 = vpop.xlane.xlu1 %3549 }
0x13bc   : > { %v3564_v48 = vsub.f32 %v5932_v26, %v3550_v24 }
0x13bd   : > { %v3556_v63 = vpop.xlane.xlu2 %3555 }
0x13be   : > { %v3566_v60 = vsub.f32 %v3534_v37, %v3556_v63  ;;  %v3576_v59 = vmul.f32 1.442695, %v3564_v48 }
0x13c0   : > { %v5954_v16 = vpop.eup %4750  ;;  %v3580_v47 = vmul.f32 1.442695, %v3566_v60 }
0x13c1   : > { %v3599_v30 = vsel %vm660_vm1, %v5954_v16, 0.0 }
0x13c2   : > { %4752 = vpow2.f32 %v3580_v47  ;;  %3600 = vadd.xlane.f32.xlu1 %v3599_v30 }
0x13c3   : > { %4754 = vpow2.f32 %v3582_v36 }
0x13c4   : > { %4756 = vpow2.f32 %v3568_v25 }
0x13c5   : > { %v3783_v13 = vpop.permute.xlu2 %3782  ;;  %4758 = vpow2.f32 %v3576_v59 }
0x13c6   : > { %3803 = vmatpush.msrb.mxu2 %v3783_v13 }
0x13c8   : > { %v5958_v35 = vpop.eup %4752 }
0x13c9   : > { %v3602_v61 = vsel %vm660_vm1, %v5958_v35, 0.0  ;;  %v5962_v15 = vpop.eup %4754 }
0x13ca   : > { %3603 = vadd.xlane.f32.xlu2 %v3602_v61  ;;  %v3605_v1 = vsel %vm660_vm1, %v5962_v15, 0.0  ;;  %v5978_v55 = vpop.eup %4756 }
0x13cb   : > { %v3584_v7 = vsel %vm660_vm1, %v5978_v55, 0.0  ;;  %v5982_v10 = vpop.eup %4758 }
0x13d6   : > { %3606 = vadd.xlane.f32.xlu0 %v3605_v1 }
0x13db   : > { %3755 = vrot.lane.b32.xlu1 %v5874_v51, %s6242_s25 }
0x13e2   : > { %3932 = vrot.lane.b32.xlu2 %v5883_v12, %s6244_s1 }
0x13ea   : > { %3878 = vrot.lane.b32.xlu0 %v5883_v12, %s6242_s25 }
0x13f2   : > { %3728 = vrot.lane.b32.xlu0 %v5874_v51, %s6251_s28  ;;  %v3596_v51 = vsel %vm660_vm1, %v5982_v10, 0.0 }
0x13fa   : > { %3851 = vrot.lane.b32.xlu0 %v5883_v12, %s6251_s28  ;;  %s6266_s28 = sld [smem:[#allocation11_spill]] }
0x1405   : > { %3585 = vadd.xlane.f32.xlu1 %v3584_v7 }
0x140b   : > { %v3595_v52 = vpop.xlane.xlu0 %3594  ;;  %3597 = vadd.xlane.f32.xlu2 %v3596_v51 }
0x140c   : > { %4760 = vrcp.f32 %v3595_v52  ;;  %v3664_v20 = vand.u32 2147483648, %v3595_v52  ;;  %v3662_v26 = vand.u32 2147483647, %v3595_v52  ;;  %vm3658_vm5 = vweird.f32 %v3595_v52 }
0x140e   : > { %v3665_v40 = vor.u32 1.1754944e-38, %v3664_v20  ;;  %vm3663_vm9 = vcmp.eq.f32.partialorder %v3662_v26, 8.507059e+37 }
0x1412   : > { %v4761_v33 = vpop.eup %4760 }
0x1413   : > { %v3654_v3 = vmul.f32 %v4761_v33, %v3595_v52  ;;  %vm3659_vm4 = vweird.f32 %v4761_v33 }
0x1414   : > { %vm3660_vm8 = vmor %vm3658_vm5, %vm3659_vm4 }
0x1415   : > { %v3655_v12 = vsub.f32 1.0, %v3654_v3  ;;  %v3589_v0 = vpop.xlane.xlu1 %3588 }
0x1416   : > { %v3634_v36 = vand.u32 2147483648, %v3589_v0  ;;  %vm3628_vm15 = vweird.f32 %v3589_v0  ;;  %v3632_v61 = vand.u32 2147483647, %v3589_v0 }
0x1417   : > { %v3656_v56 = vmul.f32 %v4761_v33, %v3655_v12 }
0x1418   : > { %v3635_v48 = vor.u32 1.1754944e-38, %v3634_v36  ;;  %vm3633_vm4 = vcmp.eq.f32.partialorder %v3632_v61, 8.507059e+37 }
0x1419   : > { %v3657_v37 = vadd.f32 %v4761_v33, %v3656_v56 }
0x141b   : > { %v3661_v2 = vsel %vm3660_vm8, %v4761_v33, %v3657_v37 }
0x141c   : > { %v3666_v43 = vsel %vm3663_vm9, %v3665_v40, %v3661_v2 }
0x141d   : > { %v5987_v39 = vmul.f32 %v5940_v6, %v3666_v43 }
0x141e   : > { %v3906_v17 = vpop.permute.xlu0 %3905 }
0x141f   : > { %4501 = vmatmul.msk.f32.vlgmr.msrb.gmra.mxu3 %vm660_vm1, %v5987_v39  ;;  %3926 = vmatpush.msra.mxu2 %v3906_v17 }
0x1423   : > { %v3592_v32 = vpop.xlane.xlu2 %3591 }
0x1424   : > { %4762 = vrcp.f32 %v3592_v32  ;;  %v3649_v28 = vand.u32 2147483648, %v3592_v32  ;;  %v3647_v44 = vand.u32 2147483647, %v3592_v32  ;;  %vm3643_vm11 = vweird.f32 %v3592_v32 }
0x1425   : > { %4764 = vrcp.f32 %v3589_v0 }
0x1426   : > { %v3650_v6 = vor.u32 1.1754944e-38, %v3649_v28  ;;  %vm3648_vm13 = vcmp.eq.f32.partialorder %v3647_v44, 8.507059e+37 }
0x142a   : > { %v4763_v45 = vpop.eup %4762 }
0x142b   : > { %v3639_v34 = vmul.f32 %v4763_v45, %v3592_v32  ;;  %vm3644_vm10 = vweird.f32 %v4763_v45  ;;  %v4765_v11 = vpop.eup %4764 }
0x142c   : > { %vm3645_vm12 = vmor %vm3643_vm11, %vm3644_vm10  ;;  %v3624_v62 = vmul.f32 %v4765_v11, %v3589_v0  ;;  %vm3629_vm14 = vweird.f32 %v4765_v11 }
0x142d   : > { %v3640_v50 = vsub.f32 1.0, %v3639_v34  ;;  %vm3630_vm2 = vmor %vm3628_vm15, %vm3629_vm14 }
0x142e   : > { %v3625_v60 = vsub.f32 1.0, %v3624_v62 }
0x142f   : > { %v3641_v53 = vmul.f32 %v4763_v45, %v3640_v50 }
0x1430   : > { %v3626_v22 = vmul.f32 %v4765_v11, %v3625_v60 }
0x1431   : > { %v3642_v46 = vadd.f32 %v4763_v45, %v3641_v53 }
0x1432   : > { %v3627_v9 = vadd.f32 %v4765_v11, %v3626_v22 }
0x1433   : > { %v3646_v54 = vsel %vm3645_vm12, %v4763_v45, %v3642_v46 }
0x1434   : > { %v3651_v58 = vsel %vm3648_vm13, %v3650_v6, %v3646_v54  ;;  %v3631_v24 = vsel %vm3630_vm2, %v4765_v11, %v3627_v9 }
0x1435   : > { %v5992_v41 = vmul.f32 %v5950_v57, %v3651_v58  ;;  %v3601_v63 = vpop.xlane.xlu1 %3600  ;;  %v3636_v33 = vsel %vm3633_vm4, %v3635_v48, %v3631_v24 }
0x1436   : > { %4766 = vrcp.f32 %v3601_v63  ;;  %v5997_v37 = vmul.f32 %v5944_v14, %v3636_v33  ;;  %v3694_v0 = vand.u32 2147483648, %v3601_v63  ;;  %vm3688_vm12 = vweird.f32 %v3601_v63 }
0x1437   : > { %4500 = vmatmul.msk.f32.vlgmr.msrb.gmra.mxu2 %vm660_vm1, %v5992_v41  ;;  %v3692_v14 = vand.u32 2147483647, %v3601_v63 }
0x1438   : > { %v3695_v46 = vor.u32 1.1754944e-38, %v3694_v0 }
0x1439   : > { %vm3693_vm2 = vcmp.eq.f32.partialorder %v3692_v14, 8.507059e+37 }
0x143c   : > { %v4767_v30 = vpop.eup %4766 }
0x143d   : > { %v3604_v47 = vpop.xlane.xlu2 %3603  ;;  %v3684_v21 = vmul.f32 %v4767_v30, %v3601_v63  ;;  %vm3689_vm11 = vweird.f32 %v4767_v30 }
0x143e   : > { %4768 = vrcp.f32 %v3604_v47  ;;  %v3709_v59 = vand.u32 2147483648, %v3604_v47  ;;  %v3707_v51 = vand.u32 2147483647, %v3604_v47  ;;  %vm3703_vm8 = vweird.f32 %v3604_v47  ;;  %vm3690_vm13 = vmor %vm3688_vm12, %vm3689_vm11 }
0x143f   : > { %v3685_v3 = vsub.f32 1.0, %v3684_v21 }
0x1440   : > { %v3710_v20 = vor.u32 1.1754944e-38, %v3709_v59  ;;  %vm3708_vm10 = vcmp.eq.f32.partialorder %v3707_v51, 8.507059e+37 }
0x1441   : > { %v3686_v40 = vmul.f32 %v4767_v30, %v3685_v3 }
0x1443   : > { %v3687_v45 = vadd.f32 %v4767_v30, %v3686_v40 }
0x1444   : > { %v4769_v13 = vpop.eup %4768 }
0x1445   : > { %v3699_v1 = vmul.f32 %v4769_v13, %v3604_v47  ;;  %v3933_v57 = vpop.permute.xlu2 %3932  ;;  %vm3704_vm5 = vweird.f32 %v4769_v13  ;;  %v3691_v44 = vsel %vm3690_vm13, %v4767_v30, %v3687_v45 }
0x1446   : > { %3953 = vmatpush.msra.mxu3 %v3933_v57  ;;  %vm3705_vm9 = vmor %vm3703_vm8, %vm3704_vm5  ;;  %v3696_v54 = vsel %vm3693_vm2, %v3695_v46, %v3691_v44 }
0x1447   : > { %v3700_v25 = vsub.f32 1.0, %v3699_v1  ;;  %v3697_v63 = vmul.f32 %v5954_v16, %v3696_v54 }
0x1449   : > { %v3701_v7 = vmul.f32 %v4769_v13, %v3700_v25  ;;  %v3607_v52 = vpop.xlane.xlu0 %3606 }
0x144a   : > { %4770 = vrcp.f32 %v3607_v52  ;;  %v3724_v50 = vand.u32 2147483648, %v3607_v52  ;;  %v3722_v53 = vand.u32 2147483647, %v3607_v52  ;;  %vm3718_vm15 = vweird.f32 %v3607_v52 }
0x144b   : > { %v3702_v12 = vadd.f32 %v4769_v13, %v3701_v7 }
0x144c   : > { %v3725_v6 = vor.u32 1.1754944e-38, %v3724_v50  ;;  %vm3723_vm5 = vcmp.eq.f32.partialorder %v3722_v53, 8.507059e+37  ;;  %v4475_v50 = vld [vmem:[%s6173_s9 + $0x30] sm:$0xff]  ;;  %v4473_v53 = vld [vmem:[%s6173_s9 + $0x20] sm:$0xff] }
0x144d   : > { %v3706_v56 = vsel %vm3705_vm9, %v4769_v13, %v3702_v12  ;;  %v3756_v26 = vpop.permute.xlu1 %3755 }
0x144e   : > { %v3711_v2 = vsel %vm3708_vm10, %v3710_v20, %v3706_v56  ;;  %3776 = vmatpush.msra.mxu1 %v3756_v26 }
0x144f   : > { %4499 = vmatmul.msk.f32.vlgmr.msra.gmra.mxu1 %vm660_vm1, %v5997_v37  ;;  %v6002_v43 = vmul.f32 %v5958_v35, %v3711_v2 }
0x1450   : > { %v4771_v17 = vpop.eup %4770 }
0x1451   : > { %v3714_v32 = vmul.f32 %v4771_v17, %v3607_v52  ;;  %4504 = vmatmul.msk.f32.vlgmr.msra.gmra.mxu2 %vm660_vm1, %v6002_v43  ;;  %vm3719_vm14 = vweird.f32 %v4771_v17 }
0x1452   : > { %vm3720_vm4 = vmor %vm3718_vm15, %vm3719_vm14 }
0x1453   : > { %v3715_v34 = vsub.f32 1.0, %v3714_v32 }
0x1455   : > { %v3716_v28 = vmul.f32 %v4771_v17, %v3715_v34 }
0x1457   : > { %v3717_v35 = vadd.f32 %v4771_v17, %v3716_v28  ;;  %v4474_v28 = vld [vmem:[%s6173_s9 + $0x28] sm:$0xff] }
0x1459   : > { %v3721_v11 = vsel %vm3720_vm4, %v4771_v17, %v3717_v35 }
0x145a   : > { %v3726_v58 = vsel %vm3723_vm5, %v3725_v6, %v3721_v11 }
0x145b   : > { %v3727_v62 = vmul.f32 %v5962_v15, %v3726_v58 }
0x145c   : > { %v3879_v60 = vpop.permute.xlu0 %3878 }
0x145d   : > { %3899 = vmatpush.msrb.mxu1 %v3879_v60  ;;  %4505 = vmatmul.msk.f32.vlgmr.msra.gmra.mxu3 %vm660_vm1, %v3727_v62 }
0x145e   : > { %4503 = vmatmul.msk.f32.vlgmr.msrb.gmra.mxu1 %vm660_vm1, %v3697_v63 }
0x1464   : > { %v3729_v47 = vpop.permute.xlu0 %3728 }
0x1465   : > { %3749 = vmatpush.msrb.mxu0 %v3729_v47 }
0x146c   : > { %v3852_v22 = vpop.permute.xlu0 %3851 }
0x146d   : > { %3872 = vmatpush.msra.mxu0 %v3852_v22 }
0x1478   : > { %v3586_v30 = vpop.xlane.xlu1 %3585 }
0x1479   : > { %4772 = vrcp.f32 %v3586_v30  ;;  %v3619_v15 = vand.u32 2147483648, %v3586_v30  ;;  %v3617_v16 = vand.u32 2147483647, %v3586_v30  ;;  %vm3613_vm9 = vweird.f32 %v3586_v30 }
0x147b   : > { %v3620_v25 = vor.u32 1.1754944e-38, %v3619_v15  ;;  %vm3618_vm11 = vcmp.eq.f32.partialorder %v3617_v16, 8.507059e+37 }
0x147e   : > { %v3598_v9 = vpop.xlane.xlu2 %3597 }
0x147f   : > { %v4773_v13 = vpop.eup %4772  ;;  %4774 = vrcp.f32 %v3598_v9  ;;  %v3679_v51 = vand.u32 2147483648, %v3598_v9  ;;  %v3677_v33 = vand.u32 2147483647, %v3598_v9  ;;  %vm3673_vm13 = vweird.f32 %v3598_v9 }
0x1480   : > { %v3609_v36 = vmul.f32 %v4773_v13, %v3586_v30  ;;  %vm3614_vm8 = vweird.f32 %v4773_v13 }
0x1481   : > { %vm3615_vm10 = vmor %vm3613_vm9, %vm3614_vm8  ;;  %v3680_v56 = vor.u32 1.1754944e-38, %v3679_v51  ;;  %vm3678_vm15 = vcmp.eq.f32.partialorder %v3677_v33, 8.507059e+37 }
0x1482   : > { %v3610_v61 = vsub.f32 1.0, %v3609_v36 }
0x1484   : > { %v3611_v1 = vmul.f32 %v4773_v13, %v3610_v61 }
0x1485   : > { %v4775_v57 = vpop.eup %4774 }
0x1486   : > { %v3612_v21 = vadd.f32 %v4773_v13, %v3611_v1  ;;  %v3669_v24 = vmul.f32 %v4775_v57, %v3598_v9  ;;  %vm3674_vm12 = vweird.f32 %v4775_v57 }
0x1487   : > { %vm3675_vm14 = vmor %vm3673_vm13, %vm3674_vm12 }
0x1488   : > { %v3616_v48 = vsel %vm3615_vm10, %v4773_v13, %v3612_v21  ;;  %v3670_v59 = vsub.f32 1.0, %v3669_v24  ;;  %v4623_v13 = vld [vmem:[%s6174_s10 + $0x1] ss:$0 sm:$0xff] }
0x1489   : > { %v3621_v7 = vsel %vm3618_vm11, %v3620_v25, %v3616_v48 }
0x148a   : > { %v3671_v52 = vmul.f32 %v4775_v57, %v3670_v59  ;;  %v3622_v3 = vmul.f32 %v5978_v55, %v3621_v7 }
0x148c   : > { %v3672_v12 = vadd.f32 %v4775_v57, %v3671_v52  ;;  %4498 = vmatmul.msk.f32.vlgmr.msrb.gmra.mxu0 %vm660_vm1, %v3622_v3  ;;  %v6013_v20 = vadd.f32 %v5997_v37, %v3622_v3 }
0x148e   : > { %v3676_v26 = vsel %vm3675_vm14, %v4775_v57, %v3672_v12 }
0x148f   : > { %v3681_v40 = vsel %vm3678_vm15, %v3680_v56, %v3676_v26  ;;  %v4512_v56 = vld [vmem:[%s6177_s13 + $0x30] sm:$0xff]  ;;  %v4511_v26 = vld [vmem:[%s6177_s13 + $0x28] sm:$0xff] }
0x1490   : > { %v3682_v2 = vmul.f32 %v5982_v10, %v3681_v40  ;;  %v4510_v40 = vld [vmem:[%s6177_s13 + $0x20] sm:$0xff] }
0x1492   : > { %v3877_v17 = vadd.f32 %v3697_v63, %v3682_v2 }
0x1494   : > { %4502 = vmatmul.msk.f32.vlgmr.msra.gmra.mxu0 %vm660_vm1, %v3682_v2  ;;  %v3904_v32 = vadd.f32 %v3877_v17, %v6002_v43  ;;  %v4476_v43 = vld [vmem:[%s6173_s9 + $0x38] sm:$0xff] }
0x1495   : > { %3995 = vmatpush.msrb.mxu0 %v4476_v43 }
0x1496   : > { %v6018_v55 = vadd.f32 %v3904_v32, %v3727_v62 }
0x1497   : > { %3996 = vmatpush.msrb.mxu0 %v4475_v50 }
0x1499   : > { %3997 = vmatpush.msrb.mxu0 %v4474_v28  ;;  %v4520_v28 = vld [vmem:[%s6179_s15 + $0x58] sm:$0xff] }
0x149b   : > { %3998 = vmatpush.msrb.mxu0 %v4473_v53 }
0x14a2   : > { %v3832_v14 = vpop.f32.mrf.mxu3 }
0x14ba   : > { %v3805_v45 = vpop.f32.mrf.mxu2 }
0x14cc   : > { %v3778_v0 = vpop.f32.mrf.mxu1 }
0x14cd   : > { %3836 = vrot.lane.b32.xlu0 %v3778_v0, %s6249_s19  ;;  %v4523_v0 = vld [vmem:[%s6179_s15 + $0x70] sm:$0xff] }
0x14d4   : > { %v3928_v37 = vpop.f32.mrf.mxu2 }
0x14d5   : > { %3840 = vrot.lane.b32.xlu0 %v3805_v45, %s6250_s23  ;;  %3963 = vrot.lane.b32.xlu2 %v3928_v37, %s6250_s23  ;;  %v4524_v45 = vld [vmem:[%s6179_s15 + $0x78] sm:$0xff]  ;;  %v4522_v37 = vld [vmem:[%s6179_s15 + $0x68] sm:$0xff] }
0x14d6   : > { %4135 = vmatpush.msrb.mxu2 %v4524_v45 }
0x14d8   : > { %4136 = vmatpush.msrb.mxu2 %v4523_v0  ;;  %v1258_v0 = vadd.f32 %v5159_v8, %v5120_v38 }
0x14da   : > { %4137 = vmatpush.msrb.mxu2 %v4522_v37  ;;  %v1285_v37 = vadd.f32 %v1258_v0, %v5137_v49  ;;  %v3781_v49 = vadd.f32 %v6013_v20, %v5992_v41 }
0x14db   : > { %v3901_v34 = vpop.f32.mrf.mxu1 }
0x14dc   : > { %3959 = vrot.lane.b32.xlu1 %v3901_v34, %s6249_s19 }
0x14dd   : > { %3844 = vrot.lane.b32.xlu0 %v3832_v14, %s6260_s18 }
0x14e0   : > { %v3955_v10 = vpop.f32.mrf.mxu3 }
0x14e5   : > { %3967 = vrot.lane.b32.xlu0 %v3955_v10, %s6260_s18  ;;  %v4521_v10 = vld [vmem:[%s6179_s15 + $0x60] sm:$0xff] }
0x14e6   : > { %4138 = vmatpush.msrb.mxu2 %v4521_v10 }
0x14e8   : > { %4139 = vmatpush.msrb.mxu2 %v4520_v28 }
0x1509   : > { %v3751_v35 = vpop.f32.mrf.mxu0 }
0x1511   : > { %v3874_v60 = vpop.f32.mrf.mxu0 }
0x152f   : > { %v3964_v47 = vpop.permute.xlu2 %3963 }
0x153f   : > { %v3837_v44 = vpop.permute.xlu0 %3836 }
0x1540   : > { %v3847_v6 = vsel %vm660_vm1, %v3751_v35, %v3837_v44 }
0x1547   : > { %v3841_v46 = vpop.permute.xlu0 %3840 }
0x1548   : > { %v3848_v54 = vsel %vm1200_vm6, %v3847_v6, %v3841_v46 }
0x154e   : > { %v3960_v62 = vpop.permute.xlu1 %3959 }
0x154f   : > { %v3845_v11 = vpop.permute.xlu0 %3844  ;;  %v3970_v63 = vsel %vm660_vm1, %v3874_v60, %v3960_v62 }
0x1550   : > { %v3849_v58 = vsel %vm1202_vm7, %v3848_v54, %v3845_v11  ;;  %v3971_v30 = vsel %vm1200_vm6, %v3970_v63, %v3964_v47  ;;  %v4625_v47 = vld [vmem:[%s6176_s12 + $0x4] ss:$0 sm:$0xff] }
0x1551   : > { %4506 = vmatmul.msk.f32.vlgmr.msrb.gmra.mxu0 %vm627_vm0, %v3849_v58  ;;  %v4624_v58 = vld [vmem:[%s6175_s11 + $0x4] ss:$0 sm:$0xff] }
0x1557   : > { %v3968_v22 = vpop.permute.xlu0 %3967 }
0x1558   : > { %v3972_v9 = vsel %vm1202_vm7, %v3971_v30, %v3968_v22 }
0x1559   : > { %4507 = vmatmul.msk.f32.gmra.mxu0 %vm627_vm0, %v3972_v9 }
0x15ce   : > { %v4000_v36 = vpop.f32.mrf.mxu0 }
0x15cf   : > { %v4001_v61 = vadd.f32 %v4623_v13, %v4000_v36 }
0x15d1   : > { %v4006_v15 = vadd.f32 %v4001_v61, %v5862_v27 }
0x15d3   : > { %v4012_v1 = vsel %vm627_vm0, %v4006_v15, 0.0 }
0x15d4   : > { %4013 = vadd.xlane.f32.xlu0 %v4012_v1 }
0x15d6   : > { %v4003_v16 = vpop.f32.mrf.mxu0 }
0x15d7   : > { %v4004_v57 = vadd.f32 %v4623_v13, %v4003_v16 }
0x15d9   : > { %v4007_v21 = vadd.f32 %v4004_v57, %v5870_v19  ;;  %v4513_v19 = vld [vmem:[%s6177_s13 + $0x38] sm:$0xff]  ;;  %v4519_v57 = vld [vmem:[%s6179_s15 + $0x50] sm:$0xff] }
0x15da   : > { %4094 = vmatpush.msra.mxu1 %v4513_v19  ;;  %4140 = vmatpush.msrb.mxu2 %v4519_v57 }
0x15db   : > { %v4015_v24 = vsel %vm627_vm0, %v4007_v21, 0.0 }
0x15dc   : > { %4016 = vadd.xlane.f32.xlu2 %v4015_v24  ;;  %4095 = vmatpush.msra.mxu1 %v4512_v56  ;;  %v4517_v24 = vld [vmem:[%s6179_s15 + $0x40] sm:$0xff] }
0x15de   : > { %4096 = vmatpush.msra.mxu1 %v4511_v26 }
0x15e0   : > { %4097 = vmatpush.msra.mxu1 %v4510_v40 }
0x1647   : > { %v4014_v25 = vpop.xlane.xlu0 %4013 }
0x1648   : > { %v4018_v48 = vmul.f32 %v4014_v25, %v5207_v18  ;;  %v4626_v25 = vld [vmem:[%s6178_s14 + $0x1] ss:$0 sm:$0xff] }
0x164a   : > { %v4020_v59 = vsub.f32 %v4006_v15, %v4018_v48 }
0x164c   : > { %v4022_v7 = vmul.f32 %v4020_v59, %v4020_v59 }
0x164e   : > { %v4024_v51 = vsel %vm627_vm0, %v4022_v7, 0.0 }
0x164f   : > { %4025 = vadd.xlane.f32.xlu1 %v4024_v51  ;;  %v4017_v52 = vpop.xlane.xlu2 %4016 }
0x1650   : > { %v4019_v27 = vmul.f32 %v4017_v52, %v5207_v18 }
0x1652   : > { %v4021_v33 = vsub.f32 %v4007_v21, %v4019_v27  ;;  %v4518_v21 = vld [vmem:[%s6179_s15 + $0x48] sm:$0xff] }
0x1653   : > { %4141 = vmatpush.msrb.mxu2 %v4518_v21 }
0x1654   : > { %v4023_v3 = vmul.f32 %v4021_v33, %v4021_v33 }
0x1655   : > { %4142 = vmatpush.msrb.mxu2 %v4517_v24 }
0x1656   : > { %v4027_v12 = vsel %vm627_vm0, %v4023_v3, 0.0 }
0x1657   : > { %4028 = vadd.xlane.f32.xlu0 %v4027_v12 }
0x16c2   : > { %v4026_v2 = vpop.xlane.xlu1 %4025 }
0x16c3   : > { %v4030_v17 = vmul.f32 %v4026_v2, %v5207_v18 }
0x16c5   : > { %v4032_v32 = vadd.f32 1e-06, %v4030_v17 }
0x16c7   : > { %4776 = vrsqrt.f32 %v4032_v32  ;;  %vm4040_vm4 = vweird.f32 %v4032_v32 }
0x16ca   : > { %v4029_v34 = vpop.xlane.xlu0 %4028 }
0x16cb   : > { %v4031_v14 = vmul.f32 %v4029_v34, %v5207_v18  ;;  %v1327_v34 = vmul.f32 0.25, %v1285_v37 }
0x16cd   : > { %v4777_v43 = vpop.eup %4776  ;;  %v4033_v50 = vadd.f32 1e-06, %v4031_v14 }
0x16ce   : > { %v4035_v53 = vmul.f32 %v4777_v43, %v4032_v32  ;;  %vm4041_vm2 = vweird.f32 %v4777_v43  ;;  %v2015_v32 = vadd.f32 %v5447_v5, %v5399_v31 }
0x16cf   : > { %4778 = vrsqrt.f32 %v4033_v50  ;;  %vm4042_vm5 = vmor %vm4040_vm4, %vm4041_vm2  ;;  %vm4050_vm9 = vweird.f32 %v4033_v50  ;;  %vm4248_vm4 = vcmask 326656  }
0x16d0   : > { %v4036_v44 = vmul.f32 %v4777_v43, %v4035_v53  ;;  %v2057_v45 = vmul.f32 0.25, %v2015_v32 }
0x16d2   : > { %v4037_v46 = vmul.f32 0.5, %v4036_v44  ;;  %v3808_v44 = vadd.f32 %v3781_v49, %v5987_v39 }
0x16d4   : > { %v4038_v35 = vsub.f32 1.5, %v4037_v46  ;;  %v3850_v46 = vmul.f32 0.25, %v3808_v44 }
0x16d5   : > { %v4779_v6 = vpop.eup %4778 }
0x16d6   : > { %v4039_v54 = vmul.f32 %v4777_v43, %v4038_v35  ;;  %v4045_v11 = vmul.f32 %v4779_v6, %v4033_v50  ;;  %vm4051_vm8 = vweird.f32 %v4779_v6  ;;  %v2180_v35 = vmul.f32 0.25, %v5449_v42 }
0x16d7   : > { %vm4052_vm10 = vmor %vm4050_vm9, %vm4051_vm8  ;;  %vm4252_vm8 = vcmask 457728  }
0x16d8   : > { %v4043_v62 = vsel %vm4042_vm5, %v4777_v43, %v4039_v54  ;;  %v4046_v60 = vmul.f32 %v4779_v6, %v4045_v11  ;;  %v3973_v54 = vmul.f32 0.25, %v6018_v55  ;;  %v3127_v11 = vmul.f32 0.25, %v5796_v4 }
0x16d9   : > { %v4054_v63 = vmul.f32 %v4043_v62, %v4020_v59  ;;  %vm4250_vm5 = vcmask 392192  }
0x16da   : > { %v4047_v22 = vmul.f32 0.5, %v4046_v60 }
0x16db   : > { %v4059_v30 = vmul.f32 %v4624_v58, %v4054_v63 }
0x16dc   : > { %v4048_v9 = vsub.f32 1.5, %v4047_v22 }
0x16dd   : > { %v4064_v13 = vadd.f32 %v4625_v47, %v4059_v30 }
0x16de   : > { %v4049_v36 = vmul.f32 %v4779_v6, %v4048_v9 }
0x16df   : > { %4515 = vmatmul.msk.f32.vlgmr.msra.gmra.mxu1 %vm627_vm0, %v4064_v13 }
0x16e0   : > { %v4053_v61 = vsel %vm4052_vm10, %v4779_v6, %v4049_v36  ;;  %v3004_v6 = vmul.f32 0.25, %v5793_v29 }
0x16e1   : > { %v4055_v15 = vmul.f32 %v4053_v61, %v4021_v33  ;;  %v4627_v33 = vld [vmem:[%s6180_s16 + $0x1] ss:$0 sm:$0xff] }
0x16e3   : > { %v4060_v1 = vmul.f32 %v4624_v58, %v4055_v15  ;;  %v4629_v15 = vld [vmem:[%s6176_s12 + $0x5] ss:$0 sm:$0xff] }
0x16e5   : > { %v4065_v16 = vadd.f32 %v4625_v47, %v4060_v1 }
0x16e7   : > { %4516 = vmatmul.msk.f32.gmra.mxu1 %vm627_vm0, %v4065_v16 }
0x175c   : > { %v4099_v48 = vpop.f32.mrf.mxu1 }
0x175d   : > { %v4100_v59 = vadd.f32 %v4626_v25, %v4099_v48  ;;  %v1204_v48 = vmul.f32 0.25, %v5155_v23 }
0x175f   : > { %v4105_v7 = vmax.f32 %v4100_v59, 0.0 }
0x1761   : > { %4526 = vmatmul.msk.f32.vlgmr.msrb.gmra.mxu2 %vm2324_vm3, %v4105_v7 }
0x1764   : > { %v4102_v51 = vpop.f32.mrf.mxu1 }
0x1765   : > { %v4103_v52 = vadd.f32 %v4626_v25, %v4102_v51 }
0x1767   : > { %v4106_v27 = vmax.f32 %v4103_v52, 0.0 }
0x1769   : > { %4527 = vmatmul.msk.f32.gmra.mxu2 %vm2324_vm3, %v4106_v27 }
0x17e4   : > { %v4144_v3 = vpop.f32.mrf.mxu2 }
0x17e5   : > { %v4145_v12 = vadd.f32 %v4627_v33, %v4144_v3 }
0x17e7   : > { %v4150_v19 = vadd.f32 %v4145_v12, %v4064_v13  ;;  %v4628_v13 = vld [vmem:[%s6175_s11 + $0x5] ss:$0 sm:$0xff] }
0x17e9   : > { %v4156_v56 = vsel %vm627_vm0, %v4150_v19, 0.0 }
0x17ea   : > { %4157 = vadd.xlane.f32.xlu2 %v4156_v56 }
0x17ec   : > { %v4147_v26 = vpop.f32.mrf.mxu2 }
0x17ed   : > { %v4148_v40 = vadd.f32 %v4627_v33, %v4147_v26 }
0x17ef   : > { %v4151_v2 = vadd.f32 %v4148_v40, %v4065_v16 }
0x17f1   : > { %v4159_v17 = vsel %vm627_vm0, %v4151_v2, 0.0 }
0x17f2   : > { %4160 = vadd.xlane.f32.xlu0 %v4159_v17 }
0x1802   : > { %4217 = vrot.lane.b32.xlu2 %v2057_v45, %s6249_s19  ;;  %s6263_s19 = smov 48  }
0x180a   : > { %4229 = vrot.lane.b32.xlu2 %v1327_v34, %s4810_s17 }
0x185d   : > { %v4158_v14 = vpop.xlane.xlu2 %4157 }
0x185e   : > { %v4162_v10 = vmul.f32 %v4158_v14, %v5207_v18 }
0x1860   : > { %v4164_v43 = vsub.f32 %v4150_v19, %v4162_v10 }
0x1862   : > { %v4166_v50 = vmul.f32 %v4164_v43, %v4164_v43 }
0x1864   : > { %v4168_v28 = vsel %vm627_vm0, %v4166_v50, 0.0 }
0x1865   : > { %v4161_v31 = vpop.xlane.xlu0 %4160  ;;  %4169 = vadd.xlane.f32.xlu0 %v4168_v28  ;;  %v4218_v57 = vpop.permute.xlu2 %4217 }
0x1866   : > { %v4163_v5 = vmul.f32 %v4161_v31, %v5207_v18  ;;  %v4244_v52 = vsel %vm660_vm1, %v1204_v48, %v4218_v57 }
0x1868   : > { %v4165_v38 = vsub.f32 %v4151_v2, %v4163_v5 }
0x186a   : > { %v4167_v8 = vmul.f32 %v4165_v38, %v4165_v38 }
0x186c   : > { %v4171_v53 = vsel %vm627_vm0, %v4167_v8, 0.0 }
0x186d   : > { %4172 = vadd.xlane.f32.xlu1 %v4171_v53  ;;  %v4230_v56 = vpop.permute.xlu2 %4229 }
0x1879   : > { %4225 = vrot.lane.b32.xlu0 %v3850_v46, %s6260_s18 }
0x1881   : > { %4233 = vrot.lane.b32.xlu0 %v2180_v35, %s6252_s29 }
0x1886   : > { %4221 = vrot.lane.b32.xlu1 %v3004_v6, %s6250_s23  ;;  %s6264_s23 = sld [smem:[#allocation3_spill]] }
0x1889   : > { %4241 = vrot.lane.b32.xlu0 %v3973_v54, %s6254_s8 }
0x188c   : > { %p601_p4 = scmp.lt.s32.totalorder %s6264_s23, 1 }
0x188e   : > { %4237 = vrot.lane.b32.xlu1 %v3127_v11, %s6263_s19  ;;  %s6271_s23 = smov (!%p601_p4, %s6264_s23), 1 }
0x188f   : > { %s4360_s4 = sshll.u32 %s6271_s23, 3 }
0x1890   : > { %s608_s25 = scalar_lea.vmem %s6265_s24, %s4360_s4  ;;  %s604_s30 = scalar_lea.vmem %s6266_s28, %s4360_s4 }
0x18d8   : > { %v4170_v39 = vpop.xlane.xlu0 %4169 }
0x18d9   : > { %v4174_v41 = vmul.f32 %v4170_v39, %v5207_v18 }
0x18db   : > { %v4176_v20 = vadd.f32 1e-06, %v4174_v41 }
0x18dd   : > { %4780 = vrsqrt.f32 %v4176_v20  ;;  %vm4184_vm12 = vweird.f32 %v4176_v20 }
0x18e0   : > { %v4173_v42 = vpop.xlane.xlu1 %4172 }
0x18e1   : > { %v4175_v58 = vmul.f32 %v4173_v42, %v5207_v18 }
0x18e3   : > { %v4781_v62 = vpop.eup %4780  ;;  %v4177_v29 = vadd.f32 1e-06, %v4175_v58 }
0x18e4   : > { %v4179_v60 = vmul.f32 %v4781_v62, %v4176_v20  ;;  %vm4185_vm11 = vweird.f32 %v4781_v62 }
0x18e5   : > { %4782 = vrsqrt.f32 %v4177_v29  ;;  %vm4186_vm13 = vmor %vm4184_vm12, %vm4185_vm11  ;;  %vm4194_vm15 = vweird.f32 %v4177_v29 }
0x18e6   : > { %v4180_v63 = vmul.f32 %v4781_v62, %v4179_v60 }
0x18e8   : > { %v4181_v55 = vmul.f32 0.5, %v4180_v63 }
0x18ea   : > { %v4182_v47 = vsub.f32 1.5, %v4181_v55 }
0x18eb   : > { %v4783_v22 = vpop.eup %4782  ;;  %v4226_v9 = vpop.permute.xlu0 %4225 }
0x18ec   : > { %v4183_v4 = vmul.f32 %v4781_v62, %v4182_v47  ;;  %v4189_v30 = vmul.f32 %v4783_v22, %v4177_v29  ;;  %vm4195_vm14 = vweird.f32 %v4783_v22 }
0x18ed   : > { %vm4196_vm2 = vmor %vm4194_vm15, %vm4195_vm14 }
0x18ee   : > { %v4187_v18 = vsel %vm4186_vm13, %v4781_v62, %v4183_v4  ;;  %v4190_v36 = vmul.f32 %v4783_v22, %v4189_v30 }
0x18ef   : > { %v4198_v61 = vmul.f32 %v4187_v18, %v4164_v43 }
0x18f0   : > { %v4191_v1 = vmul.f32 0.5, %v4190_v36 }
0x18f1   : > { %v4203_v16 = vmul.f32 %v4628_v13, %v4198_v61 }
0x18f2   : > { %v4192_v21 = vsub.f32 1.5, %v4191_v1 }
0x18f3   : > { %v4208_v24 = vadd.f32 %v4629_v15, %v4203_v16  ;;  %v4234_v51 = vpop.permute.xlu0 %4233 }
0x18f4   : > { %v4193_v25 = vmul.f32 %v4783_v22, %v4192_v21 }
0x18f6   : > { %v4197_v59 = vsel %vm4196_vm2, %v4783_v22, %v4193_v25 }
0x18f7   : > { %v4199_v7 = vmul.f32 %v4197_v59, %v4165_v38 }
0x18f8   : > { %v4222_v27 = vpop.permute.xlu1 %4221 }
0x18f9   : > { %v4245_v33 = vsel %vm1200_vm6, %v4244_v52, %v4222_v27  ;;  %v4204_v3 = vmul.f32 %v4628_v13, %v4199_v7 }
0x18fa   : > { %v4246_v12 = vsel %vm1202_vm7, %v4245_v33, %v4226_v9 }
0x18fb   : > { %v4209_v19 = vadd.f32 %v4629_v15, %v4204_v3  ;;  %v4247_v23 = vsel %vm627_vm0, %v4246_v12, %v4230_v56  ;;  %v4242_v2 = vpop.permute.xlu0 %4241 }
0x18fc   : > { %v4249_v40 = vsel %vm4248_vm4, %v4247_v23, %v4234_v51 }
0x18fd   : > { %4211 = vrot.lane.b32.xlu2 %v4209_v19, %s4810_s17 }
0x1900   : > { %v4238_v26 = vpop.permute.xlu1 %4237 }
0x1901   : > { %v4251_v17 = vsel %vm4250_vm5, %v4249_v40, %v4238_v26 }
0x1902   : > { %v4253_v32 = vsel %vm4252_vm8, %v4251_v17, %v4242_v2 }
0x1903   : > { %4254 = vst.msk [vmem:[%s608_s25] sm:$0xff] %vm2324_vm3, %v4253_v32 }
0x1957   : > { %v4212_v45 = vpop.permute.xlu2 %4211 }
0x1958   : > { %v4214_v0 = vsel %vm627_vm0, %v4208_v24, %v4212_v45 }
0x1959   : > { %4215 = vst.msk [vmem:[%s604_s30] sm:$0xff] %vm2324_vm3, %v4214_v0 }
0x195a PF: > { %s6267_s21 = sld [smem:[#allocation2_spill]] }
0x1960   : > { %s29_s27 = sadd.s32 1, %s6267_s21  }
0x1961   : > { %p26_p5 = scmp.ge.s32.totalorder %s29_s27, 4  }
0x1963   :  { %28 = sbr.rel (!%p26_p5) target bundleno = 9 (0x9), region = 155 }

</bundles_post_ra>
